<compile_context>
chip_gen: v7x
topology: tpu7x:2x2x1
jax: 0.10.0
libtpu: 0.0.40
codegen_flags: <defaults>
</compile_context>

<pallas_src>
import functools

import jax
import jax.numpy as jnp
from jax import lax
from jax.experimental import pallas as pl
from jax.experimental.pallas import tpu as pltpu


# -----------------------------------------------------------------------------
# Fused kernel: conv1+bn1+relu -> conv2+bn2 -> SE -> +identity -> relu
# -----------------------------------------------------------------------------
def fused_resse_kernel(x_ref, r1_ref, s1_ref, t1_ref, r2_ref, s2_ref, t2_ref,
                       f1w_ref, f1b_ref, f2w_ref, f2b_ref,
                       o_ref, xp_ref, *, Bt, D, H, W, C):
    M = Bt * D * H
    WC = W * C
    GW = (W + 2) * C          # lane width of one (kd, kh) slab (interior + w halos)

    # Zero the padded scratch ONCE.  Interior lanes [0, WC) of rows
    # [1:D+1, 1:H+1] are fully rewritten before every conv; the d/h/w halo
    # border is never written again, so it stays zero across grid steps
    # (grid axis is "arbitrary" -> sequential; scratch persists).
    @pl.when(pl.program_id(0) == 0)
    def _():
        xp_ref[...] = jnp.zeros_like(xp_ref)

    def write_interior(vol_f32):
        # Lane-aligned interior store (starts at lane 0, width WC); bf16 cast once.
        xp_ref[:, 1:D + 1, 1:H + 1, 0:WC] = vol_f32.astype(jnp.bfloat16)

    def conv_bn(r_ref, s_ref, t_ref):
        # 9 accumulating MXU matmuls, one per (kd, kh) slab; f32 accumulation.
        acc = jnp.zeros((M, WC), jnp.float32)
        for kd in range(3):
            for kh in range(3):
                g = kd * 3 + kh
                lhs = xp_ref[:, kd:kd + D, kh:kh + H, :].reshape(M, GW)   # bf16
                acc = acc + jnp.dot(lhs, r_ref[g],
                                    preferred_element_type=jnp.float32)
        return acc * s_ref[...] + t_ref[...]                              # folded BN

    # conv1 + bn1 + relu
    write_interior(x_ref[...])
    h1 = jnp.maximum(conv_bn(r1_ref, s1_ref, t1_ref), 0.0)                # (M, WC)

    # conv2 + bn2
    write_interior(h1.reshape(Bt, D, H, WC))
    out2 = conv_bn(r2_ref, s2_ref, t2_ref).reshape(Bt, D * H, WC)

    # --- SE -------------------------------------------------------------------
    # Global average pool: sublane reduction over D*H first (XLU); the mean over
    # w and the 1/(D*H*W) factor are folded into f1w wrapper-side.
    pool = jnp.sum(out2, axis=1)                                           # (Bt, WC)
    hid = jnp.maximum(
        jnp.dot(pool, f1w_ref[...], preferred_element_type=jnp.float32)
        + f1b_ref[...], 0.0)                                               # (Bt, Crp)
    # fc2 weight/bias are pre-tiled over w -> gate is already lane-dense (Bt, WC).
    gate = jax.nn.sigmoid(
        jnp.dot(hid, f2w_ref[...], preferred_element_type=jnp.float32)
        + f2b_ref[...])                                                    # (Bt, WC)

    # channel scale + residual + final ReLU (drop_rate=0, downsample=None)
    identity = x_ref[...].reshape(Bt, D * H, WC)
    o_ref[...] = jnp.maximum(out2 * gate[:, None, :] + identity, 0.0)


# -----------------------------------------------------------------------------
# Wrapper-side helpers
# -----------------------------------------------------------------------------
def _build_toeplitz_rhs(w_dhwio, W):
    """(3,3,3,Ci,Co) weight -> (9, (W+2)*Ci, W*Co) block-Toeplitz RHS whose row
    order matches the kernel's padded-w lane layout: interior w=0..W-1 first,
    then left halo (p=0), then right halo (p=W+1)."""
    KD, KH, KW, Ci, Co = w_dhwio.shape
    Wp = W + 2
    # lane-position l -> padded-w position
    perm = jnp.array(list(range(1, W + 1)) + [0, W + 1])
    wg = w_dhwio.reshape(KD * KH, KW, Ci, Co)                      # (9, 3, Ci, Co)
    # sel[kw, p, w] = 1 iff p == w + kw  (p = padded-w position)
    sel = jnp.stack([jnp.eye(Wp, W, k=-kw, dtype=w_dhwio.dtype) for kw in range(KW)])
    sel = sel[:, perm, :]                                          # permute rows to lane order
    r = jnp.einsum("kpw,gkio->gpiwo", sel, wg)                     # (9, Wp, Ci, W, Co)
    return r.reshape(KD * KH, Wp * Ci, W * Co)


def _fold_bn(gamma, beta, mean, var, eps=1e-5):
    scale = gamma / jnp.sqrt(var + eps)
    return scale, beta - mean * scale


def residual_se_block_forward(x_ncdhw, p):
    B, C, D, H, W = x_ncdhw.shape
    WC = W * C
    GW = (W + 2) * C
    Cr = p["fc1_w"].shape[0]
    Crp = max(8, ((Cr + 7) // 8) * 8)          # pad SE hidden dim (exactly equivalent)

    # NCDHW -> NDHWC -> lane-dense (B, D, H, W*C)
    x3 = jnp.transpose(x_ncdhw, (0, 2, 3, 4, 1)).astype(jnp.float32).reshape(B, D, H, WC)

    # conv weights OIDHW -> DHWIO, folded into per-(kd,kh) block-Toeplitz RHS (bf16)
    w1 = jnp.transpose(p["conv1_w"], (2, 3, 4, 1, 0))
    w2 = jnp.transpose(p["conv2_w"], (2, 3, 4, 1, 0))
    r1 = _build_toeplitz_rhs(w1, W).astype(jnp.bfloat16)           # (9, GW, WC)
    r2 = _build_toeplitz_rhs(w2, W).astype(jnp.bfloat16)

    # folded BN affine, tiled over w so it is lane-dense (1, W*C)
    s1, t1 = _fold_bn(*p["bn1"])
    s2, t2 = _fold_bn(*p["bn2"])
    s1w = jnp.tile(s1, W).reshape(1, WC).astype(jnp.float32)
    t1w = jnp.tile(t1, W).reshape(1, WC).astype(jnp.float32)
    s2w = jnp.tile(s2, W).reshape(1, WC).astype(jnp.float32)
    t2w = jnp.tile(t2, W).reshape(1, WC).astype(jnp.float32)

    # SE FC operands: fold mean-over-w (and 1/(D*H*W)) into fc1, broadcast-over-w
    # into fc2, zero-pad hidden dim Cr -> Crp (mathematically identical).
    f1w = jnp.zeros((C, Crp), jnp.float32).at[:, :Cr].set(p["fc1_w"].T)
    f1w = jnp.tile(f1w, (W, 1)) * (1.0 / float(D * H * W))         # (WC, Crp)
    f1b = jnp.zeros((1, Crp), jnp.float32).at[0, :Cr].set(p["fc1_b"])
    f2w = jnp.zeros((Crp, C), jnp.float32).at[:Cr, :].set(p["fc2_w"].T)
    f2w = jnp.tile(f2w, (1, W))                                    # (Crp, WC)
    f2b = jnp.tile(p["fc2_b"], W).reshape(1, WC).astype(jnp.float32)

    # Batch-tile so the conv matmul M = bt*D*H lands in [128, 256] when possible.
    bt = 1
    for cand in range(min(B, max(1, 256 // (D * H))), 0, -1):
        if B % cand == 0:
            bt = cand
            break

    kern = functools.partial(fused_resse_kernel, Bt=bt, D=D, H=H, W=W, C=C)
    inv2 = lambda b: (0, 0)
    inv3 = lambda b: (0, 0, 0)

    out3 = pl.pallas_call(
        kern,
        out_shape=jax.ShapeDtypeStruct((B, D * H, WC), jnp.float32),
        grid=(B // bt,),
        in_specs=[
            pl.BlockSpec((bt, D, H, WC), lambda b: (b, 0, 0, 0)),   # x / identity
            pl.BlockSpec((9, GW, WC), inv3),                        # conv1 Toeplitz RHS
            pl.BlockSpec((1, WC), inv2),                            # bn1 scale
            pl.BlockSpec((1, WC), inv2),                            # bn1 shift
            pl.BlockSpec((9, GW, WC), inv3),                        # conv2 Toeplitz RHS
            pl.BlockSpec((1, WC), inv2),                            # bn2 scale
            pl.BlockSpec((1, WC), inv2),                            # bn2 shift
            pl.BlockSpec((WC, Crp), inv2),                          # fc1 weight (folded)
            pl.BlockSpec((1, Crp), inv2),                           # fc1 bias
            pl.BlockSpec((Crp, WC), inv2),                          # fc2 weight (folded)
            pl.BlockSpec((1, WC), inv2),                            # fc2 bias
        ],
        out_specs=pl.BlockSpec((bt, D * H, WC), lambda b: (b, 0, 0)),
        scratch_shapes=[
            pltpu.VMEM((bt, D + 2, H + 2, GW), jnp.bfloat16),       # halo-padded slab
        ],
        compiler_params=pltpu.CompilerParams(
            # "arbitrary": zero-once scratch reuse requires a sequential grid.
            dimension_semantics=("arbitrary",),
            vmem_limit_bytes=32 * 1024 * 1024,
        ),
    )(x3, r1, s1w, t1w, r2, s2w, t2w, f1w, f1b, f2w, f2b)

    out = out3.reshape(B, D, H, W, C)
    return jnp.transpose(out, (0, 4, 1, 2, 3))                     # back to NCDHW


# -----------------------------------------------------------------------------
# Pure-JAX reference (NCDHW, mirrors the PyTorch forward in eval mode)
# -----------------------------------------------------------------------------
def reference_forward(x, p):
    def conv(a, w):
        return lax.conv_general_dilated(
            a, w, window_strides=(1, 1, 1),
            padding=((1, 1), (1, 1), (1, 1)),
            dimension_numbers=("NCDHW", "OIDHW", "NCDHW"))

    def bn(a, bn_p):
        g, b, m, v = bn_p
        s = g / jnp.sqrt(v + 1e-5)
        sh = b - m * s
        return a * s[None, :, None, None, None] + sh[None, :, None, None, None]

    out = jax.nn.relu(bn(conv(x, p["conv1_w"]), p["bn1"]))
    out = bn(conv(out, p["conv2_w"]), p["bn2"])
    pool = jnp.mean(out, axis=(2, 3, 4))                           # (B, C)
    h = jax.nn.relu(pool @ p["fc1_w"].T + p["fc1_b"])
    y = jax.nn.sigmoid(h @ p["fc2_w"].T + p["fc2_b"])
    out = out * y[:, :, None, None, None]
    return jax.nn.relu(out + x)


# -----------------------------------------------------------------------------
# Deterministic parameter init + run
# -----------------------------------------------------------------------------
def make_params(key, channels, reduction=16):
    c, cr = channels, max(channels // reduction, 1)
    ks = jax.random.split(key, 12)
    return {
        "conv1_w": 0.05 * jax.random.normal(ks[0], (c, c, 3, 3, 3), jnp.float32),
        "conv2_w": 0.05 * jax.random.normal(ks[1], (c, c, 3, 3, 3), jnp.float32),
        "bn1": (jax.random.uniform(ks[2], (c,), jnp.float32, 0.5, 1.5),
                0.1 * jax.random.normal(ks[3], (c,), jnp.float32),
                0.1 * jax.random.normal(ks[4], (c,), jnp.float32),
                jax.random.uniform(ks[5], (c,), jnp.float32, 0.5, 1.5)),
        "bn2": (jax.random.uniform(ks[6], (c,), jnp.float32, 0.5, 1.5),
                0.1 * jax.random.normal(ks[7], (c,), jnp.float32),
                0.1 * jax.random.normal(ks[8], (c,), jnp.float32),
                jax.random.uniform(ks[9], (c,), jnp.float32, 0.5, 1.5)),
        "fc1_w": 0.5 * jax.random.normal(ks[10], (cr, c), jnp.float32),
        "fc1_b": jnp.zeros((cr,), jnp.float32),
        "fc2_w": 0.5 * jax.random.normal(ks[11], (c, cr), jnp.float32),
        "fc2_b": jnp.zeros((c,), jnp.float32),
    }


if __name__ == "__main__":
    B, C, D, H, W = 2, 16, 8, 8, 8            # channels=16, reduction=16 -> hidden=1
    key = jax.random.PRNGKey(0)
    kx, kp = jax.random.split(key)
    x = jax.random.normal(kx, (B, C, D, H, W), jnp.float32)
    params = make_params(kp, C, reduction=16)

    out = jax.jit(residual_se_block_forward)(x, params)
    out = jax.block_until_ready(out)

    ref = jax.block_until_ready(reference_forward(x, params))

    assert out.shape == ref.shape == (B, C, D, H, W)
    err = float(jnp.max(jnp.abs(out - ref)))
    scale = float(jnp.max(jnp.abs(ref))) + 1e-6
    assert err / scale < 2e-2, f"mismatch: max_err={err}, scale={scale}"

    print("KERNEL_OK")
</pallas_src>

<mosaic_0001>
module attributes {stable_mosaic.version = 11 : i64} {
  func.func @fused_resse_kernel(%arg0: i32, %arg1: memref<2x8x8x128xf32, #tpu.memory_space<vmem>>, %arg2: memref<9x160x128xbf16, #tpu.memory_space<vmem>>, %arg3: memref<1x128xf32, #tpu.memory_space<vmem>>, %arg4: memref<1x128xf32, #tpu.memory_space<vmem>>, %arg5: memref<9x160x128xbf16, #tpu.memory_space<vmem>>, %arg6: memref<1x128xf32, #tpu.memory_space<vmem>>, %arg7: memref<1x128xf32, #tpu.memory_space<vmem>>, %arg8: memref<128x8xf32, #tpu.memory_space<vmem>>, %arg9: memref<1x8xf32, #tpu.memory_space<vmem>>, %arg10: memref<8x128xf32, #tpu.memory_space<vmem>>, %arg11: memref<1x128xf32, #tpu.memory_space<vmem>>, %arg12: memref<2x64x128xf32, #tpu.memory_space<vmem>>, %arg13: memref<2x10x10x160xbf16, #tpu.memory_space<vmem>>) attributes {dimension_semantics = [#tpu.dimension_semantics<arbitrary>], iteration_bounds = array<i64: 1>, scalar_prefetch = 0 : i64, scratch_operands = 1 : i64, tpu.core_type = #tpu.core_type<tc>, window_params = [{transform_indices = @transform_0, window_bounds = array<i64: 2, 8, 8, 128>}, {pipeline_mode = #tpu.pipeline_mode<synchronous>, transform_indices = @transform_1, window_bounds = array<i64: 9, 160, 128>}, {pipeline_mode = #tpu.pipeline_mode<synchronous>, transform_indices = @transform_2, window_bounds = array<i64: 1, 128>}, {pipeline_mode = #tpu.pipeline_mode<synchronous>, transform_indices = @transform_3, window_bounds = array<i64: 1, 128>}, {pipeline_mode = #tpu.pipeline_mode<synchronous>, transform_indices = @transform_4, window_bounds = array<i64: 9, 160, 128>}, {pipeline_mode = #tpu.pipeline_mode<synchronous>, transform_indices = @transform_5, window_bounds = array<i64: 1, 128>}, {pipeline_mode = #tpu.pipeline_mode<synchronous>, transform_indices = @transform_6, window_bounds = array<i64: 1, 128>}, {pipeline_mode = #tpu.pipeline_mode<synchronous>, transform_indices = @transform_7, window_bounds = array<i64: 128, 8>}, {pipeline_mode = #tpu.pipeline_mode<synchronous>, transform_indices = @transform_8, window_bounds = array<i64: 1, 8>}, {pipeline_mode = #tpu.pipeline_mode<synchronous>, transform_indices = @transform_9, window_bounds = array<i64: 8, 128>}, {pipeline_mode = #tpu.pipeline_mode<synchronous>, transform_indices = @transform_10, window_bounds = array<i64: 1, 128>}, {transform_indices = @transform_11, window_bounds = array<i64: 2, 64, 128>}]} {
    %c0_i32 = arith.constant 0 : i32
    %0 = arith.cmpi eq, %arg0, %c0_i32 : i32
    %1 = arith.extui %0 : i1 to i32
    %c0_i32_0 = arith.constant 0 : i32
    %2 = arith.cmpi ne, %1, %c0_i32_0 : i32
    scf.if %2 {
      %cst_179 = arith.constant 0.000000e+00 : bf16
      %161 = vector.broadcast %cst_179 : bf16 to vector<2x10x10x160xbf16>
      %c0_180 = arith.constant 0 : index
      %c0_181 = arith.constant 0 : index
      %c0_182 = arith.constant 0 : index
      %c0_183 = arith.constant 0 : index
      %162 = vector.load %arg13[%c0_180, %c0_181, %c0_182, %c0_183] : memref<2x10x10x160xbf16, #tpu.memory_space<vmem>>, vector<2x10x10x160xbf16>
      tpu.vector_store %arg13[%c0_180, %c0_181, %c0_182, %c0_183], %161 {strides = array<i32>} : memref<2x10x10x160xbf16, #tpu.memory_space<vmem>>, vector<2x10x10x160xbf16>,
    } else {
    }
    %c0 = arith.constant 0 : index
    %c0_1 = arith.constant 0 : index
    %c0_2 = arith.constant 0 : index
    %c0_3 = arith.constant 0 : index
    %3 = vector.load %arg1[%c0, %c0_1, %c0_2, %c0_3] : memref<2x8x8x128xf32, #tpu.memory_space<vmem>>, vector<2x8x8x128xf32>
    %4 = arith.truncf %3 : vector<2x8x8x128xf32> to vector<2x8x8x128xbf16>
    %c0_4 = arith.constant 0 : index
    %c1 = arith.constant 1 : index
    %c1_5 = arith.constant 1 : index
    %c0_6 = arith.constant 0 : index
    %5 = vector.load %arg13[%c0_4, %c1, %c1_5, %c0_6] : memref<2x10x10x160xbf16, #tpu.memory_space<vmem>>, vector<2x8x8x128xbf16>
    tpu.vector_store %arg13[%c0_4, %c1, %c1_5, %c0_6], %4 {strides = array<i32>} : memref<2x10x10x160xbf16, #tpu.memory_space<vmem>>, vector<2x8x8x128xbf16>,
    %cst = arith.constant 0.000000e+00 : f32
    %6 = vector.broadcast %cst : f32 to vector<128x128xf32>
    %c0_7 = arith.constant 0 : index
    %c0_8 = arith.constant 0 : index
    %c0_9 = arith.constant 0 : index
    %c0_10 = arith.constant 0 : index
    %7 = vector.load %arg13[%c0_7, %c0_8, %c0_9, %c0_10] : memref<2x10x10x160xbf16, #tpu.memory_space<vmem>>, vector<2x8x8x160xbf16>
    %8 = vector.shape_cast %7 : vector<2x8x8x160xbf16> to vector<128x160xbf16>
    %c0_11 = arith.constant 0 : index
    %c0_12 = arith.constant 0 : index
    %c0_13 = arith.constant 0 : index
    %9 = vector.load %arg2[%c0_11, %c0_12, %c0_13] : memref<9x160x128xbf16, #tpu.memory_space<vmem>>, vector<1x160x128xbf16>
    %10 = vector.shape_cast %9 : vector<1x160x128xbf16> to vector<160x128xbf16>
    %cst_14 = arith.constant dense<0.000000e+00> : vector<128x128xf32>
    %11 = tpu.matmul %8, %10, %cst_14 {dimension_numbers = #tpu.dot_dimension_numbers<[1], [0], [0], [1], [0, 0, 1, 1], [], []>} : vector<128x160xbf16>, vector<160x128xbf16>, vector<128x128xf32> -> vector<128x128xf32>
    %12 = arith.addf %6, %11 : vector<128x128xf32>
    %c0_15 = arith.constant 0 : index
    %c0_16 = arith.constant 0 : index
    %c1_17 = arith.constant 1 : index
    %c0_18 = arith.constant 0 : index
    %13 = vector.load %arg13[%c0_15, %c0_16, %c1_17, %c0_18] : memref<2x10x10x160xbf16, #tpu.memory_space<vmem>>, vector<2x8x8x160xbf16>
    %14 = vector.shape_cast %13 : vector<2x8x8x160xbf16> to vector<128x160xbf16>
    %c1_19 = arith.constant 1 : index
    %c0_20 = arith.constant 0 : index
    %c0_21 = arith.constant 0 : index
    %15 = vector.load %arg2[%c1_19, %c0_20, %c0_21] : memref<9x160x128xbf16, #tpu.memory_space<vmem>>, vector<1x160x128xbf16>
    %16 = vector.shape_cast %15 : vector<1x160x128xbf16> to vector<160x128xbf16>
    %cst_22 = arith.constant dense<0.000000e+00> : vector<128x128xf32>
    %17 = tpu.matmul %14, %16, %cst_22 {dimension_numbers = #tpu.dot_dimension_numbers<[1], [0], [0], [1], [0, 0, 1, 1], [], []>} : vector<128x160xbf16>, vector<160x128xbf16>, vector<128x128xf32> -> vector<128x128xf32>
    %18 = arith.addf %12, %17 : vector<128x128xf32>
    %c0_23 = arith.constant 0 : index
    %c0_24 = arith.constant 0 : index
    %c2 = arith.constant 2 : index
    %c0_25 = arith.constant 0 : index
    %19 = vector.load %arg13[%c0_23, %c0_24, %c2, %c0_25] : memref<2x10x10x160xbf16, #tpu.memory_space<vmem>>, vector<2x8x8x160xbf16>
    %20 = vector.shape_cast %19 : vector<2x8x8x160xbf16> to vector<128x160xbf16>
    %c2_26 = arith.constant 2 : index
    %c0_27 = arith.constant 0 : index
    %c0_28 = arith.constant 0 : index
    %21 = vector.load %arg2[%c2_26, %c0_27, %c0_28] : memref<9x160x128xbf16, #tpu.memory_space<vmem>>, vector<1x160x128xbf16>
    %22 = vector.shape_cast %21 : vector<1x160x128xbf16> to vector<160x128xbf16>
    %cst_29 = arith.constant dense<0.000000e+00> : vector<128x128xf32>
    %23 = tpu.matmul %20, %22, %cst_29 {dimension_numbers = #tpu.dot_dimension_numbers<[1], [0], [0], [1], [0, 0, 1, 1], [], []>} : vector<128x160xbf16>, vector<160x128xbf16>, vector<128x128xf32> -> vector<128x128xf32>
    %24 = arith.addf %18, %23 : vector<128x128xf32>
    %c0_30 = arith.constant 0 : index
    %c1_31 = arith.constant 1 : index
    %c0_32 = arith.constant 0 : index
    %c0_33 = arith.constant 0 : index
    %25 = vector.load %arg13[%c0_30, %c1_31, %c0_32, %c0_33] : memref<2x10x10x160xbf16, #tpu.memory_space<vmem>>, vector<2x8x8x160xbf16>
    %26 = vector.shape_cast %25 : vector<2x8x8x160xbf16> to vector<128x160xbf16>
    %c3 = arith.constant 3 : index
    %c0_34 = arith.constant 0 : index
    %c0_35 = arith.constant 0 : index
    %27 = vector.load %arg2[%c3, %c0_34, %c0_35] : memref<9x160x128xbf16, #tpu.memory_space<vmem>>, vector<1x160x128xbf16>
    %28 = vector.shape_cast %27 : vector<1x160x128xbf16> to vector<160x128xbf16>
    %cst_36 = arith.constant dense<0.000000e+00> : vector<128x128xf32>
    %29 = tpu.matmul %26, %28, %cst_36 {dimension_numbers = #tpu.dot_dimension_numbers<[1], [0], [0], [1], [0, 0, 1, 1], [], []>} : vector<128x160xbf16>, vector<160x128xbf16>, vector<128x128xf32> -> vector<128x128xf32>
    %30 = arith.addf %24, %29 : vector<128x128xf32>
    %c0_37 = arith.constant 0 : index
    %c1_38 = arith.constant 1 : index
    %c1_39 = arith.constant 1 : index
    %c0_40 = arith.constant 0 : index
    %31 = vector.load %arg13[%c0_37, %c1_38, %c1_39, %c0_40] : memref<2x10x10x160xbf16, #tpu.memory_space<vmem>>, vector<2x8x8x160xbf16>
    %32 = vector.shape_cast %31 : vector<2x8x8x160xbf16> to vector<128x160xbf16>
    %c4 = arith.constant 4 : index
    %c0_41 = arith.constant 0 : index
    %c0_42 = arith.constant 0 : index
    %33 = vector.load %arg2[%c4, %c0_41, %c0_42] : memref<9x160x128xbf16, #tpu.memory_space<vmem>>, vector<1x160x128xbf16>
    %34 = vector.shape_cast %33 : vector<1x160x128xbf16> to vector<160x128xbf16>
    %cst_43 = arith.constant dense<0.000000e+00> : vector<128x128xf32>
    %35 = tpu.matmul %32, %34, %cst_43 {dimension_numbers = #tpu.dot_dimension_numbers<[1], [0], [0], [1], [0, 0, 1, 1], [], []>} : vector<128x160xbf16>, vector<160x128xbf16>, vector<128x128xf32> -> vector<128x128xf32>
    %36 = arith.addf %30, %35 : vector<128x128xf32>
    %c0_44 = arith.constant 0 : index
    %c1_45 = arith.constant 1 : index
    %c2_46 = arith.constant 2 : index
    %c0_47 = arith.constant 0 : index
    %37 = vector.load %arg13[%c0_44, %c1_45, %c2_46, %c0_47] : memref<2x10x10x160xbf16, #tpu.memory_space<vmem>>, vector<2x8x8x160xbf16>
    %38 = vector.shape_cast %37 : vector<2x8x8x160xbf16> to vector<128x160xbf16>
    %c5 = arith.constant 5 : index
    %c0_48 = arith.constant 0 : index
    %c0_49 = arith.constant 0 : index
    %39 = vector.load %arg2[%c5, %c0_48, %c0_49] : memref<9x160x128xbf16, #tpu.memory_space<vmem>>, vector<1x160x128xbf16>
    %40 = vector.shape_cast %39 : vector<1x160x128xbf16> to vector<160x128xbf16>
    %cst_50 = arith.constant dense<0.000000e+00> : vector<128x128xf32>
    %41 = tpu.matmul %38, %40, %cst_50 {dimension_numbers = #tpu.dot_dimension_numbers<[1], [0], [0], [1], [0, 0, 1, 1], [], []>} : vector<128x160xbf16>, vector<160x128xbf16>, vector<128x128xf32> -> vector<128x128xf32>
    %42 = arith.addf %36, %41 : vector<128x128xf32>
    %c0_51 = arith.constant 0 : index
    %c2_52 = arith.constant 2 : index
    %c0_53 = arith.constant 0 : index
    %c0_54 = arith.constant 0 : index
    %43 = vector.load %arg13[%c0_51, %c2_52, %c0_53, %c0_54] : memref<2x10x10x160xbf16, #tpu.memory_space<vmem>>, vector<2x8x8x160xbf16>
    %44 = vector.shape_cast %43 : vector<2x8x8x160xbf16> to vector<128x160xbf16>
    %c6 = arith.constant 6 : index
    %c0_55 = arith.constant 0 : index
    %c0_56 = arith.constant 0 : index
    %45 = vector.load %arg2[%c6, %c0_55, %c0_56] : memref<9x160x128xbf16, #tpu.memory_space<vmem>>, vector<1x160x128xbf16>
    %46 = vector.shape_cast %45 : vector<1x160x128xbf16> to vector<160x128xbf16>
    %cst_57 = arith.constant dense<0.000000e+00> : vector<128x128xf32>
    %47 = tpu.matmul %44, %46, %cst_57 {dimension_numbers = #tpu.dot_dimension_numbers<[1], [0], [0], [1], [0, 0, 1, 1], [], []>} : vector<128x160xbf16>, vector<160x128xbf16>, vector<128x128xf32> -> vector<128x128xf32>
    %48 = arith.addf %42, %47 : vector<128x128xf32>
    %c0_58 = arith.constant 0 : index
    %c2_59 = arith.constant 2 : index
    %c1_60 = arith.constant 1 : index
    %c0_61 = arith.constant 0 : index
    %49 = vector.load %arg13[%c0_58, %c2_59, %c1_60, %c0_61] : memref<2x10x10x160xbf16, #tpu.memory_space<vmem>>, vector<2x8x8x160xbf16>
    %50 = vector.shape_cast %49 : vector<2x8x8x160xbf16> to vector<128x160xbf16>
    %c7 = arith.constant 7 : index
    %c0_62 = arith.constant 0 : index
    %c0_63 = arith.constant 0 : index
    %51 = vector.load %arg2[%c7, %c0_62, %c0_63] : memref<9x160x128xbf16, #tpu.memory_space<vmem>>, vector<1x160x128xbf16>
    %52 = vector.shape_cast %51 : vector<1x160x128xbf16> to vector<160x128xbf16>
    %cst_64 = arith.constant dense<0.000000e+00> : vector<128x128xf32>
    %53 = tpu.matmul %50, %52, %cst_64 {dimension_numbers = #tpu.dot_dimension_numbers<[1], [0], [0], [1], [0, 0, 1, 1], [], []>} : vector<128x160xbf16>, vector<160x128xbf16>, vector<128x128xf32> -> vector<128x128xf32>
    %54 = arith.addf %48, %53 : vector<128x128xf32>
    %c0_65 = arith.constant 0 : index
    %c2_66 = arith.constant 2 : index
    %c2_67 = arith.constant 2 : index
    %c0_68 = arith.constant 0 : index
    %55 = vector.load %arg13[%c0_65, %c2_66, %c2_67, %c0_68] : memref<2x10x10x160xbf16, #tpu.memory_space<vmem>>, vector<2x8x8x160xbf16>
    %56 = vector.shape_cast %55 : vector<2x8x8x160xbf16> to vector<128x160xbf16>
    %c8 = arith.constant 8 : index
    %c0_69 = arith.constant 0 : index
    %c0_70 = arith.constant 0 : index
    %57 = vector.load %arg2[%c8, %c0_69, %c0_70] : memref<9x160x128xbf16, #tpu.memory_space<vmem>>, vector<1x160x128xbf16>
    %58 = vector.shape_cast %57 : vector<1x160x128xbf16> to vector<160x128xbf16>
    %cst_71 = arith.constant dense<0.000000e+00> : vector<128x128xf32>
    %59 = tpu.matmul %56, %58, %cst_71 {dimension_numbers = #tpu.dot_dimension_numbers<[1], [0], [0], [1], [0, 0, 1, 1], [], []>} : vector<128x160xbf16>, vector<160x128xbf16>, vector<128x128xf32> -> vector<128x128xf32>
    %60 = arith.addf %54, %59 : vector<128x128xf32>
    %c0_72 = arith.constant 0 : index
    %c0_73 = arith.constant 0 : index
    %61 = vector.load %arg3[%c0_72, %c0_73] : memref<1x128xf32, #tpu.memory_space<vmem>>, vector<1x128xf32>
    %62 = vector.broadcast %61 : vector<1x128xf32> to vector<128x128xf32>
    %63 = arith.mulf %60, %62 : vector<128x128xf32>
    %c0_74 = arith.constant 0 : index
    %c0_75 = arith.constant 0 : index
    %64 = vector.load %arg4[%c0_74, %c0_75] : memref<1x128xf32, #tpu.memory_space<vmem>>, vector<1x128xf32>
    %65 = vector.broadcast %64 : vector<1x128xf32> to vector<128x128xf32>
    %66 = arith.addf %63, %65 : vector<128x128xf32>
    %cst_76 = arith.constant 0.000000e+00 : f32
    %67 = vector.broadcast %cst_76 : f32 to vector<128x128xf32>
    %68 = arith.maximumf %66, %67 : vector<128x128xf32>
    %69 = vector.shape_cast %68 : vector<128x128xf32> to vector<2x8x8x128xf32>
    %70 = arith.truncf %69 : vector<2x8x8x128xf32> to vector<2x8x8x128xbf16>
    %c0_77 = arith.constant 0 : index
    %c1_78 = arith.constant 1 : index
    %c1_79 = arith.constant 1 : index
    %c0_80 = arith.constant 0 : index
    %71 = vector.load %arg13[%c0_77, %c1_78, %c1_79, %c0_80] : memref<2x10x10x160xbf16, #tpu.memory_space<vmem>>, vector<2x8x8x128xbf16>
    tpu.vector_store %arg13[%c0_77, %c1_78, %c1_79, %c0_80], %70 {strides = array<i32>} : memref<2x10x10x160xbf16, #tpu.memory_space<vmem>>, vector<2x8x8x128xbf16>,
    %cst_81 = arith.constant 0.000000e+00 : f32
    %72 = vector.broadcast %cst_81 : f32 to vector<128x128xf32>
    %c0_82 = arith.constant 0 : index
    %c0_83 = arith.constant 0 : index
    %c0_84 = arith.constant 0 : index
    %c0_85 = arith.constant 0 : index
    %73 = vector.load %arg13[%c0_82, %c0_83, %c0_84, %c0_85] : memref<2x10x10x160xbf16, #tpu.memory_space<vmem>>, vector<2x8x8x160xbf16>
    %74 = vector.shape_cast %73 : vector<2x8x8x160xbf16> to vector<128x160xbf16>
    %c0_86 = arith.constant 0 : index
    %c0_87 = arith.constant 0 : index
    %c0_88 = arith.constant 0 : index
    %75 = vector.load %arg5[%c0_86, %c0_87, %c0_88] : memref<9x160x128xbf16, #tpu.memory_space<vmem>>, vector<1x160x128xbf16>
    %76 = vector.shape_cast %75 : vector<1x160x128xbf16> to vector<160x128xbf16>
    %cst_89 = arith.constant dense<0.000000e+00> : vector<128x128xf32>
    %77 = tpu.matmul %74, %76, %cst_89 {dimension_numbers = #tpu.dot_dimension_numbers<[1], [0], [0], [1], [0, 0, 1, 1], [], []>} : vector<128x160xbf16>, vector<160x128xbf16>, vector<128x128xf32> -> vector<128x128xf32>
    %78 = arith.addf %72, %77 : vector<128x128xf32>
    %c0_90 = arith.constant 0 : index
    %c0_91 = arith.constant 0 : index
    %c1_92 = arith.constant 1 : index
    %c0_93 = arith.constant 0 : index
    %79 = vector.load %arg13[%c0_90, %c0_91, %c1_92, %c0_93] : memref<2x10x10x160xbf16, #tpu.memory_space<vmem>>, vector<2x8x8x160xbf16>
    %80 = vector.shape_cast %79 : vector<2x8x8x160xbf16> to vector<128x160xbf16>
    %c1_94 = arith.constant 1 : index
    %c0_95 = arith.constant 0 : index
    %c0_96 = arith.constant 0 : index
    %81 = vector.load %arg5[%c1_94, %c0_95, %c0_96] : memref<9x160x128xbf16, #tpu.memory_space<vmem>>, vector<1x160x128xbf16>
    %82 = vector.shape_cast %81 : vector<1x160x128xbf16> to vector<160x128xbf16>
    %cst_97 = arith.constant dense<0.000000e+00> : vector<128x128xf32>
    %83 = tpu.matmul %80, %82, %cst_97 {dimension_numbers = #tpu.dot_dimension_numbers<[1], [0], [0], [1], [0, 0, 1, 1], [], []>} : vector<128x160xbf16>, vector<160x128xbf16>, vector<128x128xf32> -> vector<128x128xf32>
    %84 = arith.addf %78, %83 : vector<128x128xf32>
    %c0_98 = arith.constant 0 : index
    %c0_99 = arith.constant 0 : index
    %c2_100 = arith.constant 2 : index
    %c0_101 = arith.constant 0 : index
    %85 = vector.load %arg13[%c0_98, %c0_99, %c2_100, %c0_101] : memref<2x10x10x160xbf16, #tpu.memory_space<vmem>>, vector<2x8x8x160xbf16>
    %86 = vector.shape_cast %85 : vector<2x8x8x160xbf16> to vector<128x160xbf16>
    %c2_102 = arith.constant 2 : index
    %c0_103 = arith.constant 0 : index
    %c0_104 = arith.constant 0 : index
    %87 = vector.load %arg5[%c2_102, %c0_103, %c0_104] : memref<9x160x128xbf16, #tpu.memory_space<vmem>>, vector<1x160x128xbf16>
    %88 = vector.shape_cast %87 : vector<1x160x128xbf16> to vector<160x128xbf16>
    %cst_105 = arith.constant dense<0.000000e+00> : vector<128x128xf32>
    %89 = tpu.matmul %86, %88, %cst_105 {dimension_numbers = #tpu.dot_dimension_numbers<[1], [0], [0], [1], [0, 0, 1, 1], [], []>} : vector<128x160xbf16>, vector<160x128xbf16>, vector<128x128xf32> -> vector<128x128xf32>
    %90 = arith.addf %84, %89 : vector<128x128xf32>
    %c0_106 = arith.constant 0 : index
    %c1_107 = arith.constant 1 : index
    %c0_108 = arith.constant 0 : index
    %c0_109 = arith.constant 0 : index
    %91 = vector.load %arg13[%c0_106, %c1_107, %c0_108, %c0_109] : memref<2x10x10x160xbf16, #tpu.memory_space<vmem>>, vector<2x8x8x160xbf16>
    %92 = vector.shape_cast %91 : vector<2x8x8x160xbf16> to vector<128x160xbf16>
    %c3_110 = arith.constant 3 : index
    %c0_111 = arith.constant 0 : index
    %c0_112 = arith.constant 0 : index
    %93 = vector.load %arg5[%c3_110, %c0_111, %c0_112] : memref<9x160x128xbf16, #tpu.memory_space<vmem>>, vector<1x160x128xbf16>
    %94 = vector.shape_cast %93 : vector<1x160x128xbf16> to vector<160x128xbf16>
    %cst_113 = arith.constant dense<0.000000e+00> : vector<128x128xf32>
    %95 = tpu.matmul %92, %94, %cst_113 {dimension_numbers = #tpu.dot_dimension_numbers<[1], [0], [0], [1], [0, 0, 1, 1], [], []>} : vector<128x160xbf16>, vector<160x128xbf16>, vector<128x128xf32> -> vector<128x128xf32>
    %96 = arith.addf %90, %95 : vector<128x128xf32>
    %c0_114 = arith.constant 0 : index
    %c1_115 = arith.constant 1 : index
    %c1_116 = arith.constant 1 : index
    %c0_117 = arith.constant 0 : index
    %97 = vector.load %arg13[%c0_114, %c1_115, %c1_116, %c0_117] : memref<2x10x10x160xbf16, #tpu.memory_space<vmem>>, vector<2x8x8x160xbf16>
    %98 = vector.shape_cast %97 : vector<2x8x8x160xbf16> to vector<128x160xbf16>
    %c4_118 = arith.constant 4 : index
    %c0_119 = arith.constant 0 : index
    %c0_120 = arith.constant 0 : index
    %99 = vector.load %arg5[%c4_118, %c0_119, %c0_120] : memref<9x160x128xbf16, #tpu.memory_space<vmem>>, vector<1x160x128xbf16>
    %100 = vector.shape_cast %99 : vector<1x160x128xbf16> to vector<160x128xbf16>
    %cst_121 = arith.constant dense<0.000000e+00> : vector<128x128xf32>
    %101 = tpu.matmul %98, %100, %cst_121 {dimension_numbers = #tpu.dot_dimension_numbers<[1], [0], [0], [1], [0, 0, 1, 1], [], []>} : vector<128x160xbf16>, vector<160x128xbf16>, vector<128x128xf32> -> vector<128x128xf32>
    %102 = arith.addf %96, %101 : vector<128x128xf32>
    %c0_122 = arith.constant 0 : index
    %c1_123 = arith.constant 1 : index
    %c2_124 = arith.constant 2 : index
    %c0_125 = arith.constant 0 : index
    %103 = vector.load %arg13[%c0_122, %c1_123, %c2_124, %c0_125] : memref<2x10x10x160xbf16, #tpu.memory_space<vmem>>, vector<2x8x8x160xbf16>
    %104 = vector.shape_cast %103 : vector<2x8x8x160xbf16> to vector<128x160xbf16>
    %c5_126 = arith.constant 5 : index
    %c0_127 = arith.constant 0 : index
    %c0_128 = arith.constant 0 : index
    %105 = vector.load %arg5[%c5_126, %c0_127, %c0_128] : memref<9x160x128xbf16, #tpu.memory_space<vmem>>, vector<1x160x128xbf16>
    %106 = vector.shape_cast %105 : vector<1x160x128xbf16> to vector<160x128xbf16>
    %cst_129 = arith.constant dense<0.000000e+00> : vector<128x128xf32>
    %107 = tpu.matmul %104, %106, %cst_129 {dimension_numbers = #tpu.dot_dimension_numbers<[1], [0], [0], [1], [0, 0, 1, 1], [], []>} : vector<128x160xbf16>, vector<160x128xbf16>, vector<128x128xf32> -> vector<128x128xf32>
    %108 = arith.addf %102, %107 : vector<128x128xf32>
    %c0_130 = arith.constant 0 : index
    %c2_131 = arith.constant 2 : index
    %c0_132 = arith.constant 0 : index
    %c0_133 = arith.constant 0 : index
    %109 = vector.load %arg13[%c0_130, %c2_131, %c0_132, %c0_133] : memref<2x10x10x160xbf16, #tpu.memory_space<vmem>>, vector<2x8x8x160xbf16>
    %110 = vector.shape_cast %109 : vector<2x8x8x160xbf16> to vector<128x160xbf16>
    %c6_134 = arith.constant 6 : index
    %c0_135 = arith.constant 0 : index
    %c0_136 = arith.constant 0 : index
    %111 = vector.load %arg5[%c6_134, %c0_135, %c0_136] : memref<9x160x128xbf16, #tpu.memory_space<vmem>>, vector<1x160x128xbf16>
    %112 = vector.shape_cast %111 : vector<1x160x128xbf16> to vector<160x128xbf16>
    %cst_137 = arith.constant dense<0.000000e+00> : vector<128x128xf32>
    %113 = tpu.matmul %110, %112, %cst_137 {dimension_numbers = #tpu.dot_dimension_numbers<[1], [0], [0], [1], [0, 0, 1, 1], [], []>} : vector<128x160xbf16>, vector<160x128xbf16>, vector<128x128xf32> -> vector<128x128xf32>
    %114 = arith.addf %108, %113 : vector<128x128xf32>
    %c0_138 = arith.constant 0 : index
    %c2_139 = arith.constant 2 : index
    %c1_140 = arith.constant 1 : index
    %c0_141 = arith.constant 0 : index
    %115 = vector.load %arg13[%c0_138, %c2_139, %c1_140, %c0_141] : memref<2x10x10x160xbf16, #tpu.memory_space<vmem>>, vector<2x8x8x160xbf16>
    %116 = vector.shape_cast %115 : vector<2x8x8x160xbf16> to vector<128x160xbf16>
    %c7_142 = arith.constant 7 : index
    %c0_143 = arith.constant 0 : index
    %c0_144 = arith.constant 0 : index
    %117 = vector.load %arg5[%c7_142, %c0_143, %c0_144] : memref<9x160x128xbf16, #tpu.memory_space<vmem>>, vector<1x160x128xbf16>
    %118 = vector.shape_cast %117 : vector<1x160x128xbf16> to vector<160x128xbf16>
    %cst_145 = arith.constant dense<0.000000e+00> : vector<128x128xf32>
    %119 = tpu.matmul %116, %118, %cst_145 {dimension_numbers = #tpu.dot_dimension_numbers<[1], [0], [0], [1], [0, 0, 1, 1], [], []>} : vector<128x160xbf16>, vector<160x128xbf16>, vector<128x128xf32> -> vector<128x128xf32>
    %120 = arith.addf %114, %119 : vector<128x128xf32>
    %c0_146 = arith.constant 0 : index
    %c2_147 = arith.constant 2 : index
    %c2_148 = arith.constant 2 : index
    %c0_149 = arith.constant 0 : index
    %121 = vector.load %arg13[%c0_146, %c2_147, %c2_148, %c0_149] : memref<2x10x10x160xbf16, #tpu.memory_space<vmem>>, vector<2x8x8x160xbf16>
    %122 = vector.shape_cast %121 : vector<2x8x8x160xbf16> to vector<128x160xbf16>
    %c8_150 = arith.constant 8 : index
    %c0_151 = arith.constant 0 : index
    %c0_152 = arith.constant 0 : index
    %123 = vector.load %arg5[%c8_150, %c0_151, %c0_152] : memref<9x160x128xbf16, #tpu.memory_space<vmem>>, vector<1x160x128xbf16>
    %124 = vector.shape_cast %123 : vector<1x160x128xbf16> to vector<160x128xbf16>
    %cst_153 = arith.constant dense<0.000000e+00> : vector<128x128xf32>
    %125 = tpu.matmul %122, %124, %cst_153 {dimension_numbers = #tpu.dot_dimension_numbers<[1], [0], [0], [1], [0, 0, 1, 1], [], []>} : vector<128x160xbf16>, vector<160x128xbf16>, vector<128x128xf32> -> vector<128x128xf32>
    %126 = arith.addf %120, %125 : vector<128x128xf32>
    %c0_154 = arith.constant 0 : index
    %c0_155 = arith.constant 0 : index
    %127 = vector.load %arg6[%c0_154, %c0_155] : memref<1x128xf32, #tpu.memory_space<vmem>>, vector<1x128xf32>
    %128 = vector.broadcast %127 : vector<1x128xf32> to vector<128x128xf32>
    %129 = arith.mulf %126, %128 : vector<128x128xf32>
    %c0_156 = arith.constant 0 : index
    %c0_157 = arith.constant 0 : index
    %130 = vector.load %arg7[%c0_156, %c0_157] : memref<1x128xf32, #tpu.memory_space<vmem>>, vector<1x128xf32>
    %131 = vector.broadcast %130 : vector<1x128xf32> to vector<128x128xf32>
    %132 = arith.addf %129, %131 : vector<128x128xf32>
    %133 = vector.shape_cast %132 : vector<128x128xf32> to vector<2x64x128xf32>
    %cst_158 = arith.constant dense<0.000000e+00> : vector<2x128xf32>
    %134 = vector.multi_reduction <add>, %133, %cst_158 [1] : vector<2x64x128xf32> to vector<2x128xf32>
    %c0_159 = arith.constant 0 : index
    %c0_160 = arith.constant 0 : index
    %135 = vector.load %arg8[%c0_159, %c0_160] : memref<128x8xf32, #tpu.memory_space<vmem>>, vector<128x8xf32>
    %cst_161 = arith.constant dense<0.000000e+00> : vector<2x8xf32>
    %136 = tpu.matmul %134, %135, %cst_161 {dimension_numbers = #tpu.dot_dimension_numbers<[1], [0], [0], [1], [0, 0, 1, 1], [], []>} : vector<2x128xf32>, vector<128x8xf32>, vector<2x8xf32> -> vector<2x8xf32>
    %c0_162 = arith.constant 0 : index
    %c0_163 = arith.constant 0 : index
    %137 = vector.load %arg9[%c0_162, %c0_163] : memref<1x8xf32, #tpu.memory_space<vmem>>, vector<1x8xf32>
    %138 = vector.broadcast %137 : vector<1x8xf32> to vector<2x8xf32>
    %139 = arith.addf %136, %138 : vector<2x8xf32>
    %cst_164 = arith.constant 0.000000e+00 : f32
    %140 = vector.broadcast %cst_164 : f32 to vector<2x8xf32>
    %141 = arith.maximumf %139, %140 : vector<2x8xf32>
    %c0_165 = arith.constant 0 : index
    %c0_166 = arith.constant 0 : index
    %142 = vector.load %arg10[%c0_165, %c0_166] : memref<8x128xf32, #tpu.memory_space<vmem>>, vector<8x128xf32>
    %cst_167 = arith.constant dense<0.000000e+00> : vector<2x128xf32>
    %143 = tpu.matmul %141, %142, %cst_167 {dimension_numbers = #tpu.dot_dimension_numbers<[1], [0], [0], [1], [0, 0, 1, 1], [], []>} : vector<2x8xf32>, vector<8x128xf32>, vector<2x128xf32> -> vector<2x128xf32>
    %c0_168 = arith.constant 0 : index
    %c0_169 = arith.constant 0 : index
    %144 = vector.load %arg11[%c0_168, %c0_169] : memref<1x128xf32, #tpu.memory_space<vmem>>, vector<1x128xf32>
    %145 = vector.broadcast %144 : vector<1x128xf32> to vector<2x128xf32>
    %146 = arith.addf %143, %145 : vector<2x128xf32>
    %147 = arith.negf %146 : vector<2x128xf32>
    %148 = math.exp %147 : vector<2x128xf32>
    %cst_170 = arith.constant 1.000000e+00 : f32
    %149 = vector.broadcast %cst_170 : f32 to vector<2x128xf32>
    %150 = arith.addf %149, %148 : vector<2x128xf32>
    %151 = arith.divf %149, %150 : vector<2x128xf32>
    %c0_171 = arith.constant 0 : index
    %c0_172 = arith.constant 0 : index
    %c0_173 = arith.constant 0 : index
    %c0_174 = arith.constant 0 : index
    %152 = vector.load %arg1[%c0_171, %c0_172, %c0_173, %c0_174] : memref<2x8x8x128xf32, #tpu.memory_space<vmem>>, vector<2x8x8x128xf32>
    %153 = vector.shape_cast %152 : vector<2x8x8x128xf32> to vector<2x64x128xf32>
    %154 = vector.shape_cast %151 : vector<2x128xf32> to vector<2x1x128xf32>
    %155 = vector.broadcast %154 : vector<2x1x128xf32> to vector<2x64x128xf32>
    %156 = arith.mulf %133, %155 : vector<2x64x128xf32>
    %157 = arith.addf %156, %153 : vector<2x64x128xf32>
    %cst_175 = arith.constant 0.000000e+00 : f32
    %158 = vector.broadcast %cst_175 : f32 to vector<2x64x128xf32>
    %159 = arith.maximumf %157, %158 : vector<2x64x128xf32>
    %c0_176 = arith.constant 0 : index
    %c0_177 = arith.constant 0 : index
    %c0_178 = arith.constant 0 : index
    %160 = vector.load %arg12[%c0_176, %c0_177, %c0_178] : memref<2x64x128xf32, #tpu.memory_space<vmem>>, vector<2x64x128xf32>
    tpu.vector_store %arg12[%c0_176, %c0_177, %c0_178], %159 {strides = array<i32>} : memref<2x64x128xf32, #tpu.memory_space<vmem>>, vector<2x64x128xf32>,
    return
  }
  func.func @transform_0(%arg0: i32) -> (i32, i32, i32, i32) {
    %c0_i32 = arith.constant 0 : i32
    %c0_i32_0 = arith.constant 0 : i32
    %c0_i32_1 = arith.constant 0 : i32
    %c0_i32_2 = arith.constant 0 : i32
    return %arg0, %c0_i32, %c0_i32_0, %c0_i32_1 : i32, i32, i32, i32
  }
  func.func @transform_1(%arg0: i32) -> (i32, i32, i32) {
    %c0_i32 = arith.constant 0 : i32
    %c0_i32_0 = arith.constant 0 : i32
    %c0_i32_1 = arith.constant 0 : i32
    %c0_i32_2 = arith.constant 0 : i32
    return %c0_i32, %c0_i32_0, %c0_i32_1 : i32, i32, i32
  }
  func.func @transform_2(%arg0: i32) -> (i32, i32) {
    %c0_i32 = arith.constant 0 : i32
    %c0_i32_0 = arith.constant 0 : i32
    %c0_i32_1 = arith.constant 0 : i32
    return %c0_i32, %c0_i32_0 : i32, i32
  }
  func.func @transform_3(%arg0: i32) -> (i32, i32) {
    %c0_i32 = arith.constant 0 : i32
    %c0_i32_0 = arith.constant 0 : i32
    %c0_i32_1 = arith.constant 0 : i32
    return %c0_i32, %c0_i32_0 : i32, i32
  }
  func.func @transform_4(%arg0: i32) -> (i32, i32, i32) {
    %c0_i32 = arith.constant 0 : i32
    %c0_i32_0 = arith.constant 0 : i32
    %c0_i32_1 = arith.constant 0 : i32
    %c0_i32_2 = arith.constant 0 : i32
    return %c0_i32, %c0_i32_0, %c0_i32_1 : i32, i32, i32
  }
  func.func @transform_5(%arg0: i32) -> (i32, i32) {
    %c0_i32 = arith.constant 0 : i32
    %c0_i32_0 = arith.constant 0 : i32
    %c0_i32_1 = arith.constant 0 : i32
    return %c0_i32, %c0_i32_0 : i32, i32
  }
  func.func @transform_6(%arg0: i32) -> (i32, i32) {
    %c0_i32 = arith.constant 0 : i32
    %c0_i32_0 = arith.constant 0 : i32
    %c0_i32_1 = arith.constant 0 : i32
    return %c0_i32, %c0_i32_0 : i32, i32
  }
  func.func @transform_7(%arg0: i32) -> (i32, i32) {
    %c0_i32 = arith.constant 0 : i32
    %c0_i32_0 = arith.constant 0 : i32
    %c0_i32_1 = arith.constant 0 : i32
    return %c0_i32, %c0_i32_0 : i32, i32
  }
  func.func @transform_8(%arg0: i32) -> (i32, i32) {
    %c0_i32 = arith.constant 0 : i32
    %c0_i32_0 = arith.constant 0 : i32
    %c0_i32_1 = arith.constant 0 : i32
    return %c0_i32, %c0_i32_0 : i32, i32
  }
  func.func @transform_9(%arg0: i32) -> (i32, i32) {
    %c0_i32 = arith.constant 0 : i32
    %c0_i32_0 = arith.constant 0 : i32
    %c0_i32_1 = arith.constant 0 : i32
    return %c0_i32, %c0_i32_0 : i32, i32
  }
  func.func @transform_10(%arg0: i32) -> (i32, i32) {
    %c0_i32 = arith.constant 0 : i32
    %c0_i32_0 = arith.constant 0 : i32
    %c0_i32_1 = arith.constant 0 : i32
    return %c0_i32, %c0_i32_0 : i32, i32
  }
  func.func @transform_11(%arg0: i32) -> (i32, i32, i32) {
    %c0_i32 = arith.constant 0 : i32
    %c0_i32_0 = arith.constant 0 : i32
    %c0_i32_1 = arith.constant 0 : i32
    return %arg0, %c0_i32, %c0_i32_0 : i32, i32, i32
  }
}

</mosaic_0001>

<bundles_post_ra>
// kernel: tile.38
= control target key start
LH: loop header
LB: loop body
LE: loop exit
PB: predicated region body
PF: predicated region fallthrough
CT: control target
= control target key end

     0   :  { %s22_s0 = inlined_call_operand.vmem [shape: f32[16], index: 0, kind: input, shape index: {}]   ;;  %s23_s1 = inlined_call_operand.vmem [shape: f32[8,16], index: 1, kind: output, shape index: {}]  }
   0x1   :  { %v4_v0 = vld [vmem:[%s22_s0] ss:$0 sm:$0xff] }
   0x2   :  { %5 = vst [vmem:[%s23_s1] sm:$0xff] %v4_v0 }

// kernel: tile.39
= control target key start
LH: loop header
LB: loop body
LE: loop exit
PB: predicated region body
PF: predicated region fallthrough
CT: control target
= control target key end

     0   :  { %s67_s10 = smov 112   ;;  %s68_s11 = smov 80   ;;  %vm3_vm0 = vcmask 130048   ;;  %vm9_vm1 = vcmask 1048448   ;;  %vm15_vm2 = vcmask 917248   ;;  %vm21_vm3 = vcmask 786048   ;;  %s111_s0 = inlined_call_operand.vmem [shape: f32[8,16], index: 0, kind: input, shape index: {}]   ;;  %s112_s1 = inlined_call_operand.vmem [shape: f32[1,128], index: 1, kind: output, shape index: {}]  }
   0x1   :  { %v53_v0 = vld [vmem:[%s111_s0 + $0x7] sm:$0x1]   ;;  %v55_v1 = vld [vmem:[%s111_s0 + $0x5] sm:$0x1]   ;;  %v54_v2 = vld [vmem:[%s111_s0 + $0x6] sm:$0x1]  }
   0x2   :  { %7 = vrot.lane.b32.xlu0 %v53_v0, %s67_s10  ;;  %19 = vrot.lane.b32.xlu1 %v55_v1, %s68_s11  ;;  %v56_v3 = vld [vmem:[%s111_s0 + $0x4] sm:$0x1]   ;;  %v2_v4 = vld [vmem:[%s111_s0] sm:$0x1]   ;;  %s69_s18 = smov 96   ;;  %s70_s19 = smov 64  }
   0x3   :  { %4 = vst.msk [vmem:[#allocation0] sm:$0x1] %vm3_vm0, %v2_v4   ;;  %v57_v5 = vld [vmem:[%s111_s0 + $0x3] sm:$0x1]   ;;  %v58_v6 = vld [vmem:[%s111_s0 + $0x2] sm:$0x1]  }
   0x4   :  { %s71_s24 = smov 48   ;;  %s72_s25 = smov 32   ;;  %v59_v7 = vld [vmem:[%s111_s0 + $0x1] sm:$0x1]   ;;  %vm27_vm4 = vcmask 654848   ;;  %vm33_vm5 = vcmask 523648  }
   0x5   :  { %s73_s0 = smov 16   ;;  %vm39_vm6 = vcmask 392448   ;;  %vm45_vm7 = vcmask 261248  }
   0x6   :  { %13 = vrot.lane.b32.xlu0 %v54_v2, %s69_s18  ;;  %25 = vrot.lane.b32.xlu1 %v56_v3, %s70_s19 }
   0xa   :  { %31 = vrot.lane.b32.xlu0 %v57_v5, %s71_s24  ;;  %37 = vrot.lane.b32.xlu1 %v58_v6, %s72_s25 }
   0xe   :  { %43 = vrot.lane.b32.xlu0 %v59_v7, %s73_s0 }
  0x74   :  { %v8_v8 = vpop.permute.xlu0 %7   ;;  %v20_v9 = vpop.permute.xlu1 %19  }
  0x75   :  { %10 = vst.msk [vmem:[#allocation0] sm:$0x1] %vm9_vm1, %v8_v8  }
  0x78   :  { %v14_v10 = vpop.permute.xlu0 %13   ;;  %v26_v11 = vpop.permute.xlu1 %25  }
  0x79   :  { %16 = vst.msk [vmem:[#allocation0] sm:$0x1] %vm15_vm2, %v14_v10  }
  0x7a   :  { %22 = vst.msk [vmem:[#allocation0] sm:$0x1] %vm21_vm3, %v20_v9  }
  0x7b   :  { %28 = vst.msk [vmem:[#allocation0] sm:$0x1] %vm27_vm4, %v26_v11  }
  0x7c   :  { %v32_v12 = vpop.permute.xlu0 %31   ;;  %v38_v13 = vpop.permute.xlu1 %37  }
  0x7d   :  { %34 = vst.msk [vmem:[#allocation0] sm:$0x1] %vm33_vm5, %v32_v12  }
  0x7e   :  { %40 = vst.msk [vmem:[#allocation0] sm:$0x1] %vm39_vm6, %v38_v13  }
  0x80   :  { %v44_v14 = vpop.permute.xlu0 %43  }
  0x81   :  { %46 = vst.msk [vmem:[#allocation0] sm:$0x1] %vm45_vm7, %v44_v14  }
  0x88   :  { %v50_v15 = vld [vmem:[#allocation0] sm:$0x1] }
  0x89   :  { %52 = vst [vmem:[%s112_s1] sm:$0x1] %v50_v15 }

// kernel: tile.64
= control target key start
LH: loop header
LB: loop body
LE: loop exit
PB: predicated region body
PF: predicated region fallthrough
CT: control target
= control target key end

     0   :  { %vm4_vm0 = vcmask 1047556   ;;  %s99_s14 = smov 112   ;;  %s100_s19 = smov 80   ;;  %vm6_vm1 = vcmask 130048   ;;  %vm16_vm2 = vcmask 1048448   ;;  %vm26_vm3 = vcmask 917248   ;;  %s196_s0 = inlined_call_operand.vmem [shape: f32[8,8,16], index: 0, kind: input, shape index: {}]   ;;  %s197_s1 = inlined_call_operand.vmem [shape: f32[8,128], index: 1, kind: output, shape index: {}]  }
   0x1   :  { %v78_v0 = vld [vmem:[%s196_s0 + $0x7] ss:$8 sm:$0xf]   ;;  %v82_v3 = vld [vmem:[%s196_s0 + $0x5] ss:$8 sm:$0xf]  }
   0x2   :  { %v79_v1 = vld [vmem:[%s196_s0 + $0x7] ss:$8 sm:$0xf0]   ;;  %v83_v4 = vld [vmem:[%s196_s0 + $0x5] ss:$8 sm:$0xf0]  }
   0x3   :  { %v13_v2 = vsel %vm4_vm0, %v79_v1, %v78_v0  ;;  %v33_v5 = vsel %vm4_vm0, %v83_v4, %v82_v3  ;;  %v80_v6 = vld [vmem:[%s196_s0 + $0x6] ss:$8 sm:$0xf]   ;;  %v84_v9 = vld [vmem:[%s196_s0 + $0x4] ss:$8 sm:$0xf]  }
   0x4   :  { %14 = vrot.lane.b32.xlu0 %v13_v2, %s99_s14  ;;  %v81_v7 = vld [vmem:[%s196_s0 + $0x6] ss:$8 sm:$0xf0]   ;;  %34 = vrot.lane.b32.xlu1 %v33_v5, %s100_s19  ;;  %v85_v10 = vld [vmem:[%s196_s0 + $0x4] ss:$8 sm:$0xf0]  }
   0x5   :  { %v23_v8 = vsel %vm4_vm0, %v81_v7, %v80_v6  ;;  %v86_v11 = vld [vmem:[%s196_s0 + $0x3] ss:$8 sm:$0xf]   ;;  %v43_v12 = vsel %vm4_vm0, %v85_v10, %v84_v9  ;;  %s101_s28 = smov 96   ;;  %s102_s4 = smov 64   ;;  %vm36_vm4 = vcmask 786048  }
   0x6   :  { %v87_v13 = vld [vmem:[%s196_s0 + $0x3] ss:$8 sm:$0xf0]   ;;  %v88_v14 = vld [vmem:[%s196_s0 + $0x2] ss:$8 sm:$0xf]  }
   0x7   :  { %v89_v15 = vld [vmem:[%s196_s0 + $0x2] ss:$8 sm:$0xf0]   ;;  %v53_v16 = vsel %vm4_vm0, %v87_v13, %v86_v11  ;;  %v90_v17 = vld [vmem:[%s196_s0 + $0x1] ss:$8 sm:$0xf]  }
   0x8   :  { %24 = vrot.lane.b32.xlu0 %v23_v8, %s101_s28  ;;  %44 = vrot.lane.b32.xlu1 %v43_v12, %s102_s4  ;;  %v63_v18 = vsel %vm4_vm0, %v89_v15, %v88_v14  ;;  %v91_v19 = vld [vmem:[%s196_s0 + $0x1] ss:$8 sm:$0xf0]   ;;  %v2_v20 = vld [vmem:[%s196_s0] ss:$8 sm:$0xf]  }
   0x9   :  { %v3_v21 = vld [vmem:[%s196_s0] ss:$8 sm:$0xf0]   ;;  %s103_s0 = smov 48   ;;  %s104_s13 = smov 32   ;;  %v73_v23 = vsel %vm4_vm0, %v91_v19, %v90_v17  ;;  %vm46_vm5 = vcmask 654848  }
   0xa   :  { %v5_v22 = vsel %vm4_vm0, %v3_v21, %v2_v20  ;;  %s105_s16 = smov 16   ;;  %vm56_vm6 = vcmask 523648   ;;  %vm66_vm7 = vcmask 392448   ;;  %vm76_vm8 = vcmask 261248  }
   0xb   :  { %7 = vst.msk [vmem:[%s197_s1] sm:$0xff] %vm6_vm1, %v5_v22  }
   0xc   :  { %54 = vrot.lane.b32.xlu0 %v53_v16, %s103_s0  ;;  %64 = vrot.lane.b32.xlu1 %v63_v18, %s104_s13 }
  0x10   :  { %74 = vrot.lane.b32.xlu0 %v73_v23, %s105_s16 }
  0x76   :  { %v15_v24 = vpop.permute.xlu0 %14   ;;  %v35_v25 = vpop.permute.xlu1 %34  }
  0x77   :  { %17 = vst.msk [vmem:[%s197_s1] sm:$0xff] %vm16_vm2, %v15_v24  }
  0x7a   :  { %v25_v26 = vpop.permute.xlu0 %24   ;;  %v45_v27 = vpop.permute.xlu1 %44  }
  0x7b   :  { %27 = vst.msk [vmem:[%s197_s1] sm:$0xff] %vm26_vm3, %v25_v26  }
  0x7c   :  { %37 = vst.msk [vmem:[%s197_s1] sm:$0xff] %vm36_vm4, %v35_v25  }
  0x7d   :  { %47 = vst.msk [vmem:[%s197_s1] sm:$0xff] %vm46_vm5, %v45_v27  }
  0x7e   :  { %v55_v28 = vpop.permute.xlu0 %54   ;;  %v65_v29 = vpop.permute.xlu1 %64  }
  0x7f   :  { %57 = vst.msk [vmem:[%s197_s1] sm:$0xff] %vm56_vm6, %v55_v28  }
  0x80   :  { %67 = vst.msk [vmem:[%s197_s1] sm:$0xff] %vm66_vm7, %v65_v29  }
  0x82   :  { %v75_v30 = vpop.permute.xlu0 %74  }
  0x83   :  { %77 = vst.msk [vmem:[%s197_s1] sm:$0xff] %vm76_vm8, %v75_v30  }

// kernel: residual_se_block_forward.1
= control target key start
LH: loop header
LB: loop body
LE: loop exit
PB: predicated region body
PF: predicated region fallthrough
CT: control target
= control target key end

     0   :  { %v13881_v0 = vmov 0   ;;  %vm43_vm0 = vcmask 1043456   ;;  %vm44_vm1 = vcmask 261124   ;;  %vm47_vm2 = vcmask 1040384   ;;  %s13869_s1 = inlined_call_operand.vmem [shape: bf16[9,160,128], index: 1, kind: input, shape index: {}]   ;;  %s13870_s0 = inlined_call_operand.vmem [shape: f32[2,8,8,128], index: 0, kind: input, shape index: {}]   ;;  %s13871_s4 = inlined_call_operand.vmem [shape: bf16[9,160,128], index: 4, kind: input, shape index: {}]   ;;  %s13872_s2 = inlined_call_operand.vmem [shape: f32[1,128], index: 2, kind: input, shape index: {}]   ;;  %s13873_s3 = inlined_call_operand.vmem [shape: f32[1,128], index: 3, kind: input, shape index: {}]   ;;  %s13874_s7 = inlined_call_operand.vmem [shape: f32[128,8], index: 7, kind: input, shape index: {}]   ;;  %s13875_s9 = inlined_call_operand.vmem [shape: f32[8,128], index: 9, kind: input, shape index: {}]   ;;  %s13876_s5 = inlined_call_operand.vmem [shape: f32[1,128], index: 5, kind: input, shape index: {}]   ;;  %s13877_s6 = inlined_call_operand.vmem [shape: f32[1,128], index: 6, kind: input, shape index: {}]   ;;  %s13878_s8 = inlined_call_operand.vmem [shape: f32[1,8], index: 8, kind: input, shape index: {}]   ;;  %s13879_s10 = inlined_call_operand.vmem [shape: f32[1,128], index: 10, kind: input, shape index: {}]   ;;  %s13880_s11 = inlined_call_operand.vmem [shape: f32[2,64,128], index: 11, kind: output, shape index: {}]  }
   0x1   :  { %873 = vmatprep.subr.bf16.mxu0 %v13881_v0  ;;  %v10132_v1 = vld [vmem:[%s13869_s1 + $0x50] sm:$0xff]   ;;  %4876 = vmatprep.subr.bf16.mxu1 %v13881_v0  ;;  %v10133_v2 = vld [vmem:[%s13869_s1 + $0x58] sm:$0xff]   ;;  %v10134_v3 = vld [vmem:[%s13869_s1 + $0x60] sm:$0xff]   ;;  %vm48_vm3 = vcmask 258052   ;;  %vm331_vm6 = vsmask.f32 7938 }
   0x2   :  { %874 = vmatpush1.bf16.msra.mxu0 %v10132_v1  ;;  %v10135_v4 = vld [vmem:[%s13869_s1 + $0x68] sm:$0xff]   ;;  %vm10499_vm4 = vmor %vm44_vm1, %vm43_vm0  ;;  %v89_v6 = vld [vmem:[%s13870_s0] sm:$0xff]  ;;  %vm337_vm7 = vsmask.f32 256  ;;  %vm484_vm8 = vsmask.f32 3328 }
   0x3   :  { %875 = vmatprep.subr.bf16.mxu0 %v13881_v0  ;;  %46 = vst.msk [vmem:[#allocation2] sm:$0xff] %vm10499_vm4, %v13881_v0  ;;  %vm10511_vm5 = vmor %vm48_vm3, %vm47_vm2  ;;  %v9500_v8 = vpack.c.bf16 %v89_v6, %v89_v6  ;;  %v90_v9 = vld [vmem:[%s13870_s0 + $0x8] sm:$0xff]  ;;  %v10136_v10 = vld [vmem:[%s13869_s1 + $0x70] sm:$0xff]   ;;  %vm485_vm9 = vsmask.f32 7440  ;;  %v13990_v17 = vmov 0 }
   0x4   :  { %51 = vst.msk [vmem:[#allocation2 + $0x10] sm:$0xff] %vm10499_vm4, %v13881_v0  ;;  %53 = vst.msk [vmem:[#allocation2 + $0x20] sm:$0xff] %vm10499_vm4, %v13881_v0  ;;  %v91_v13 = vld [vmem:[%s13870_s0 + $0x10] sm:$0xff]  ;;  %v9501_v14 = vpack.c.bf16 %v90_v9, %v90_v9  ;;  %v10137_v20 = vld [vmem:[%s13869_s1 + $0x78] sm:$0xff]   ;;  %v13993_v27 = vmov 0  ;;  %vm848_vm13 = vcmask 261120  }
   0x5   :  { %55 = vst.msk [vmem:[#allocation2 + $0x30] sm:$0xff] %vm10499_vm4, %v13881_v0  ;;  %57 = vst.msk [vmem:[#allocation2 + $0x40] sm:$0xff] %vm10499_vm4, %v13881_v0  ;;  %v170_v11 = vshrl.u32 %v9500_v8, 16  ;;  %v173_v12 = vshll.u32 %v9500_v8, 16  ;;  %v9502_v15 = vpack.c.bf16 %v91_v13, %v91_v13  ;;  %v92_v23 = vld [vmem:[%s13870_s0 + $0x18] sm:$0xff]  ;;  %v93_v24 = vld [vmem:[%s13870_s0 + $0x20] sm:$0xff] }
   0x6   :  { %876 = vmatpush1.bf16.msra.mxu0 %v10133_v2  ;;  %59 = vst.msk [vmem:[#allocation2 + $0x50] sm:$0xff] %vm10499_vm4, %v13881_v0  ;;  %61 = vst.msk [vmem:[#allocation2 + $0x60] sm:$0xff] %vm10499_vm4, %v13881_v0  ;;  %v178_v18 = vshrl.u32 %v9501_v14, 16  ;;  %v181_v19 = vshll.u32 %v9501_v14, 16  ;;  %v9503_v33 = vpack.c.bf16 %v92_v23, %v92_v23  ;;  %v9504_v44 = vpack.c.bf16 %v93_v24, %v93_v24  ;;  %v94_v50 = vld [vmem:[%s13870_s0 + $0x28] sm:$0xff]  ;;  %v10138_v51 = vld [vmem:[%s13869_s1 + $0x80] sm:$0xff]  }
   0x7   :  { %877 = vmatprep.subr.bf16.mxu0 %v13881_v0  ;;  %63 = vst.msk [vmem:[#allocation2 + $0x70] sm:$0xff] %vm10499_vm4, %v13881_v0  ;;  %65 = vst.msk [vmem:[#allocation2 + $0x80] sm:$0xff] %vm10499_vm4, %v13881_v0  ;;  %v172_v16 = vrot.slane %v170_v11, 7  ;;  %v186_v21 = vshrl.u32 %v9502_v15, 16  ;;  %v189_v22 = vshll.u32 %v9502_v15, 16  ;;  %v95_v61 = vld [vmem:[%s13870_s0 + $0x30] sm:$0xff] }
   0x8   :  { %67 = vst.msk [vmem:[#allocation2 + $0x90] sm:$0xff] %vm10499_vm4, %v13881_v0  ;;  %69 = vst.msk [vmem:[#allocation2 + $0xa0] sm:$0xff] %vm10499_vm4, %v13881_v0  ;;  %v180_v28 = vrot.slane %v178_v18, 7  ;;  %v194_v56 = vshrl.u32 %v9503_v33, 16  ;;  %v197_v60 = vshll.u32 %v9503_v33, 16  ;;  %v202_v1 = vshrl.u32 %v9504_v44, 16 }
   0x9   :  { %71 = vst.msk [vmem:[#allocation2 + $0xb0] sm:$0xff] %vm10499_vm4, %v13881_v0  ;;  %73 = vst.msk [vmem:[#allocation2 + $0xc0] sm:$0xff] %vm10499_vm4, %v13881_v0  ;;  %v175_v25 = vor.u32 %v173_v12, %v172_v16  ;;  %v176_v26 = vrot.slane %v172_v16, 4  ;;  %v188_v31 = vrot.slane %v186_v21, 7  ;;  %v205_v2 = vshll.u32 %v9504_v44, 16 }
   0xa   :  { %878 = vmatpush1.bf16.msra.mxu0 %v10134_v3  ;;  %75 = vst.msk [vmem:[#allocation2 + $0xd0] sm:$0xff] %vm10499_vm4, %v13881_v0  ;;  %77 = vst.msk [vmem:[#allocation2 + $0xe0] sm:$0xff] %vm10499_vm4, %v13881_v0  ;;  %v10663_v30 = vld [vmem:[#allocation2] sm:$0xff]  ;;  %v183_v39 = vor.u32 %v181_v19, %v180_v28  ;;  %v184_v42 = vrot.slane %v180_v28, 4  ;;  %v196_v63 = vrot.slane %v194_v56, 7  ;;  %v10696_v3 = vpack.c.bf16 %v94_v50, %v94_v50 }
   0xb   :  { %879 = vmatprep.subr.bf16.mxu0 %v13881_v0  ;;  %79 = vst.msk [vmem:[#allocation2 + $0xf0] sm:$0xff] %vm10499_vm4, %v13881_v0  ;;  %81 = vst.msk [vmem:[#allocation2 + $0x100] sm:$0xff] %vm10499_vm4, %v13881_v0  ;;  %v333_v29 = vld [vmem:[#allocation2 + $0x10] sm:$0xf]  ;;  %v342_v32 = vld [vmem:[#allocation2 + $0x20] sm:$0xf]  ;;  %v191_v47 = vor.u32 %v189_v22, %v188_v31  ;;  %v10701_v7 = vpack.c.bf16 %v95_v61, %v95_v61 }
   0xc   :  { %83 = vst.msk [vmem:[#allocation2 + $0x110] sm:$0xff] %vm10499_vm4, %v13881_v0  ;;  %85 = vst.msk [vmem:[#allocation2 + $0x120] sm:$0xff] %vm10499_vm4, %v13881_v0  ;;  %v488_v37 = vshrl.u32 %v10663_v30, 16  ;;  %v491_v38 = vshll.u32 %v10663_v30, 16  ;;  %v192_v48 = vrot.slane %v188_v31, 4  ;;  %v199_v8 = vor.u32 %v197_v60, %v196_v63 }
   0xd   :  { %87 = vst.msk [vmem:[#allocation2 + $0x130] sm:$0xff] %vm10499_vm4, %v13881_v0  ;;  %vm10644_vm10 = vmand %vm43_vm0, %vm331_vm6  ;;  %v348_v49 = vld [vmem:[#allocation2 + $0x30] sm:$0xf]  ;;  %v354_v6 = vld [vmem:[#allocation2 + $0x40] sm:$0xf]  ;;  %v200_v9 = vrot.slane %v196_v63, 4 }
   0xe   :  { %50 = vst.msk [vmem:[#allocation2 + $0x8] sm:$0x11] %vm10511_vm5, %v13881_v0  ;;  %52 = vst.msk [vmem:[#allocation2 + $0x18] sm:$0x11] %vm10511_vm5, %v13881_v0  ;;  %880 = vmatpush1.bf16.msra.mxu0 %v10135_v4  ;;  %v13991_v17 = vsel %vm10644_vm10, 4294967295, %v13990_v17  ;;  %v334_v34 = vsel %vm10644_vm10, %v175_v25, %v333_v29  ;;  %v490_v45 = vrot.slane %v488_v37, 4  ;;  %v343_v53 = vsel %vm10644_vm10, %v183_v39, %v342_v32 }
   0xf   :  { %54 = vst.msk [vmem:[#allocation2 + $0x28] sm:$0x11] %vm10511_vm5, %v13881_v0  ;;  %56 = vst.msk [vmem:[#allocation2 + $0x38] sm:$0x11] %vm10511_vm5, %v13881_v0  ;;  %881 = vmatprep.subr.bf16.mxu0 %v13881_v0  ;;  %v493_v46 = vrot.slane %v491_v38, 5  ;;  %v349_v58 = vsel %vm10644_vm10, %v191_v47, %v348_v49  ;;  %v10139_v4 = vld [vmem:[%s13869_s1 + $0x88] sm:$0xff]   ;;  %v355_v28 = vsel %vm10644_vm10, %v199_v8, %v354_v6 }
  0x10   :  { %58 = vst.msk [vmem:[#allocation2 + $0x48] sm:$0x11] %vm10511_vm5, %v13881_v0  ;;  %60 = vst.msk [vmem:[#allocation2 + $0x58] sm:$0x11] %vm10511_vm5, %v13881_v0  ;;  %v360_v12 = vld [vmem:[#allocation2 + $0x50] sm:$0xf] }
  0x11   :  { %62 = vst.msk [vmem:[#allocation2 + $0x68] sm:$0x11] %vm10511_vm5, %v13881_v0  ;;  %64 = vst.msk [vmem:[#allocation2 + $0x78] sm:$0x11] %vm10511_vm5, %v13881_v0  ;;  %v494_v57 = vor.u32 %v493_v46, %v490_v45  ;;  %v210_v16 = vshrl.u32 %v10696_v3, 16  ;;  %v213_v18 = vshll.u32 %v10696_v3, 16 }
  0x12   :  { %66 = vst.msk [vmem:[#allocation2 + $0x88] sm:$0x11] %vm10511_vm5, %v13881_v0  ;;  %68 = vst.msk [vmem:[#allocation2 + $0x98] sm:$0x11] %vm10511_vm5, %v13881_v0  ;;  %882 = vmatpush1.bf16.msra.mxu0 %v10136_v10  ;;  %v204_v10 = vrot.slane %v202_v1, 7  ;;  %v218_v19 = vshrl.u32 %v10701_v7, 16 }
  0x13   :  { %70 = vst.msk [vmem:[#allocation2 + $0xa8] sm:$0x11] %vm10511_vm5, %v13881_v0  ;;  %72 = vst.msk [vmem:[#allocation2 + $0xb8] sm:$0x11] %vm10511_vm5, %v13881_v0  ;;  %883 = vmatprep.subr.bf16.mxu0 %v13881_v0  ;;  %v495_v5 = vrot.slane %v494_v57, 4  ;;  %v97_v25 = vld [vmem:[%s13870_s0 + $0x40] sm:$0xff] }
  0x14   :  { %74 = vst.msk [vmem:[#allocation2 + $0xc8] sm:$0x11] %vm10511_vm5, %v13881_v0  ;;  %76 = vst.msk [vmem:[#allocation2 + $0xd8] sm:$0x11] %vm10511_vm5, %v13881_v0  ;;  %v207_v23 = vor.u32 %v205_v2, %v204_v10  ;;  %v208_v24 = vrot.slane %v204_v10, 4  ;;  %v221_v31 = vshll.u32 %v10701_v7, 16  ;;  %v10737_v44 = vpack.c.bf16 %v97_v25, %v97_v25 }
  0x15   :  { %78 = vst.msk [vmem:[#allocation2 + $0xe8] sm:$0x11] %vm10511_vm5, %v13881_v0  ;;  %80 = vst.msk [vmem:[#allocation2 + $0xf8] sm:$0x11] %vm10511_vm5, %v13881_v0  ;;  %v339_v35 = vld [vmem:[#allocation2 + $0x18] sm:$0x1] }
  0x16   :  { %82 = vst.msk [vmem:[#allocation2 + $0x108] sm:$0x11] %vm10511_vm5, %v13881_v0  ;;  %84 = vst.msk [vmem:[#allocation2 + $0x118] sm:$0x11] %vm10511_vm5, %v13881_v0  ;;  %v468_v36 = vld [vmem:[#allocation2 + $0x8] sm:$0x11]  ;;  %884 = vmatpush1.bf16.msra.mxu0 %v10137_v20  ;;  %v361_v37 = vsel %vm10644_vm10, %v207_v23, %v360_v12 }
  0x17   :  { %86 = vst.msk [vmem:[#allocation2 + $0x128] sm:$0x11] %vm10511_vm5, %v13881_v0  ;;  %88 = vst.msk [vmem:[#allocation2 + $0x138] sm:$0x11] %vm10511_vm5, %v13881_v0  ;;  %v497_v41 = vshll.u32 %v468_v36, 16  ;;  %885 = vmatprep.subr.bf16.mxu0 %v13881_v0  ;;  %v10140_v32 = vld [vmem:[%s13869_s1 + $0x90] sm:$0xff]  }
  0x18   :  { %13992 = vst [vmem:[#allocation3_spill] sm:$0xff] %v13991_v17  ;;  %vm10659_vm11 = vmand %vm47_vm2, %vm337_vm7  ;;  %v345_v43 = vld [vmem:[#allocation2 + $0x28] sm:$0x1]  ;;  %v351_v55 = vld [vmem:[#allocation2 + $0x38] sm:$0x1]  ;;  %v220_v3 = vrot.slane %v218_v19, 7 }
  0x19   :  { %v13994_v27 = vsel %vm10659_vm11, 4294967295, %v13993_v27  ;;  %335 = vst [vmem:[#allocation2 + $0x10] sm:$0xf] %v334_v34  ;;  %v340_v40 = vsel %vm10659_vm11, %v176_v26, %v339_v35  ;;  %v499_v52 = vrot.slane %v497_v41, 5  ;;  %v346_v54 = vsel %vm10659_vm11, %v184_v42, %v345_v43  ;;  %344 = vst [vmem:[#allocation2 + $0x20] sm:$0xf] %v343_v53 }
  0x1a   :  { %13995 = vst [vmem:[#allocation4_spill] sm:$0xff] %v13994_v27  ;;  %341 = vst [vmem:[#allocation2 + $0x18] sm:$0x1] %v340_v40  ;;  %v352_v59 = vsel %vm10659_vm11, %v192_v48, %v351_v55  ;;  %886 = vmatpush1.bf16.msra.mxu0 %v10138_v51  ;;  %v357_v11 = vld [vmem:[#allocation2 + $0x48] sm:$0x1]  ;;  %v10141_v49 = vld [vmem:[%s13869_s1 + $0x98] sm:$0xff]   ;;  %v223_v19 = vor.u32 %v221_v31, %v220_v3 }
  0x1b   :  { %347 = vst [vmem:[#allocation2 + $0x28] sm:$0x1] %v346_v54  ;;  %vm10692_vm12 = vmor %vm484_vm8, %vm485_vm9  ;;  %887 = vmatprep.subr.bf16.mxu0 %v13881_v0  ;;  %v363_v15 = vld [vmem:[#allocation2 + $0x58] sm:$0x1]  ;;  %v358_v29 = vsel %vm10659_vm11, %v200_v9, %v357_v11  ;;  %v212_v53 = vrot.slane %v210_v16, 7  ;;  %v10142_v7 = vld [vmem:[%s13869_s1] sm:$0xff]  }
  0x1c   :  { %350 = vst [vmem:[#allocation2 + $0x30] sm:$0xf] %v349_v58  ;;  %353 = vst [vmem:[#allocation2 + $0x38] sm:$0x1] %v352_v59  ;;  %v10708_v14 = vsel %vm10692_vm12, %v495_v5, %v499_v52  ;;  %v364_v38 = vsel %vm10659_vm11, %v208_v24, %v363_v15  ;;  %v366_v58 = vld [vmem:[#allocation2 + $0x60] sm:$0xf] }
  0x1d   :  { %356 = vst [vmem:[#allocation2 + $0x40] sm:$0xf] %v355_v28  ;;  %359 = vst [vmem:[#allocation2 + $0x48] sm:$0x1] %v358_v29  ;;  %v215_v61 = vor.u32 %v213_v18, %v212_v53  ;;  %v216_v63 = vrot.slane %v212_v53, 4  ;;  %vm1271_vm14 = vcmask 1042432  }
  0x1e   :  { %888 = vmatpush1.bf16.msra.mxu0 %v10139_v4  ;;  %362 = vst [vmem:[#allocation2 + $0x50] sm:$0xf] %v361_v37  ;;  %365 = vst [vmem:[#allocation2 + $0x58] sm:$0x1] %v364_v38  ;;  %v234_v4 = vshrl.u32 %v10737_v44, 16  ;;  %vm1272_vm15 = vcmask 1046532  }
  0x1f   :  { %889 = vmatprep.subr.bf16.mxu0 %v13881_v0  ;;  %v367_v11 = vsel %vm10644_vm10, %v215_v61, %v366_v58  ;;  %vm11076_vm0 = vmor %vm1271_vm14, %vm1272_vm15  ;;  %vm10419_vm1 = vmmov 0   ;;  %vm8153_vm2 = vcmask 1041409   ;;  %vm8235_vm3 = vcmask 64512  }
  0x20   :  { %v10704_v13 = vld [vmem:[#allocation2 + $0x10] sm:$0xff]  ;;  %v10726_v35 = vld [vmem:[#allocation2 + $0x20] sm:$0xff]  ;;  %368 = vst [vmem:[#allocation2 + $0x60] sm:$0xf] %v367_v11  ;;  %v100_v11 = vld [vmem:[%s13870_s0 + $0x58] sm:$0xff] }
  0x21   :  { %v469_v20 = vld [vmem:[#allocation2 + $0x18] sm:$0x11]  ;;  %v502_v21 = vshrl.u32 %v10704_v13, 16  ;;  %v505_v22 = vshll.u32 %v10704_v13, 16  ;;  %v516_v42 = vshrl.u32 %v10726_v35, 16  ;;  %v519_v43 = vshll.u32 %v10726_v35, 16 }
  0x22   :  { %v511_v26 = vshll.u32 %v469_v20, 16  ;;  %v470_v36 = vld [vmem:[#allocation2 + $0x28] sm:$0x11]  ;;  %890 = vmatpush1.bf16.msra.mxu0 %v10140_v32 }
  0x23   :  { %v504_v33 = vrot.slane %v502_v21, 4  ;;  %v507_v34 = vrot.slane %v505_v22, 5  ;;  %v10733_v40 = vld [vmem:[#allocation2 + $0x30] sm:$0xff]  ;;  %v471_v41 = vld [vmem:[#allocation2 + $0x38] sm:$0x11]  ;;  %v525_v46 = vshll.u32 %v470_v36, 16  ;;  %891 = vmatprep.subr.bf16.mxu0 %v13881_v0 }
  0x24   :  { %v513_v39 = vrot.slane %v511_v26, 5  ;;  %v530_v47 = vshrl.u32 %v10733_v40, 16  ;;  %v533_v48 = vshll.u32 %v10733_v40, 16  ;;  %v518_v50 = vrot.slane %v516_v42, 4  ;;  %v10753_v9 = vld [vmem:[#allocation2 + $0x40] sm:$0xff] }
  0x25   :  { %v508_v45 = vor.u32 %v507_v34, %v504_v33  ;;  %v521_v51 = vrot.slane %v519_v43, 5  ;;  %v539_v52 = vshll.u32 %v471_v41, 16  ;;  %v527_v55 = vrot.slane %v525_v46, 5  ;;  %v472_v10 = vld [vmem:[#allocation2 + $0x48] sm:$0x11]  ;;  %v10757_v15 = vld [vmem:[#allocation2 + $0x50] sm:$0xff] }
  0x26   :  { %v532_v56 = vrot.slane %v530_v47, 4  ;;  %v535_v57 = vrot.slane %v533_v48, 5  ;;  %892 = vmatpush1.bf16.msra.mxu0 %v10141_v49  ;;  %v473_v16 = vld [vmem:[#allocation2 + $0x58] sm:$0x11]  ;;  %v544_v18 = vshrl.u32 %v10753_v9, 16  ;;  %v553_v23 = vshll.u32 %v472_v10, 16 }
  0x27   :  { %v509_v54 = vrot.slane %v508_v45, 4  ;;  %v522_v59 = vor.u32 %v521_v51, %v518_v50  ;;  %v541_v60 = vrot.slane %v539_v52, 5  ;;  %v369_v20 = vld [vmem:[#allocation2 + $0x68] sm:$0x1]  ;;  %v372_v21 = vld [vmem:[#allocation2 + $0x70] sm:$0xf]  ;;  %1126 = vmatprep.subr.bf16.mxu0 %v13881_v0 }
  0x28   :  { %v536_v2 = vor.u32 %v535_v57, %v532_v56  ;;  %v558_v24 = vshrl.u32 %v10757_v15, 16  ;;  %v561_v25 = vshll.u32 %v10757_v15, 16  ;;  %v375_v26 = vld [vmem:[#allocation2 + $0x78] sm:$0x1]  ;;  %v546_v29 = vrot.slane %v544_v18, 4  ;;  %v10769_v33 = vld [vmem:[#allocation2 + $0xa0] sm:$0xff] }
  0x29   :  { %v514_v1 = vsel %vm10692_vm12, %v509_v54, %v513_v39  ;;  %v523_v8 = vrot.slane %v522_v59, 4  ;;  %v567_v32 = vshll.u32 %v473_v16, 16  ;;  %v476_v34 = vld [vmem:[#allocation2 + $0xa8] sm:$0x11]  ;;  %v555_v38 = vrot.slane %v553_v23, 5  ;;  %v10144_v57 = vld [vmem:[%s13869_s1 + $0x10] sm:$0xff]  }
  0x2a   :  { %v8468_v5 = vcombine.low %v10708_v14, %v514_v1  ;;  %v8469_v6 = vcombine.high %v10708_v14, %v514_v1  ;;  %v537_v12 = vrot.slane %v536_v2, 4  ;;  %v547_v14 = vshll.u32 %v10753_v9, 16  ;;  %v10143_v41 = vld [vmem:[%s13869_s1 + $0x8] sm:$0xff]   ;;  %v384_v54 = vld [vmem:[#allocation2 + $0xb0] sm:$0xf]  ;;  %v10787_v58 = vld [vmem:[#allocation2 + $0x60] sm:$0xff] }
  0x2b   :  { %v528_v22 = vsel %vm10692_vm12, %v523_v8, %v527_v55  ;;  %v560_v39 = vrot.slane %v558_v24, 4  ;;  %v563_v43 = vrot.slane %v561_v25, 5  ;;  %v569_v45 = vrot.slane %v567_v32, 5  ;;  %v387_v55 = vld [vmem:[#allocation2 + $0xb8] sm:$0x1]  ;;  %v99_v10 = vld [vmem:[%s13870_s0 + $0x50] sm:$0xff] }
  0x2c   :  { %8494 = vmatprep.mubr.msk.bf16.mxu0 %vm848_vm13, %v8469_v6  ;;  %v542_v28 = vsel %vm10692_vm12, %v537_v12, %v541_v60  ;;  %v549_v31 = vrot.slane %v547_v14, 5  ;;  %v224_v46 = vrot.slane %v220_v3, 4  ;;  %v370_v47 = vsel %vm10659_vm11, %v216_v63, %v369_v20  ;;  %v101_v14 = vld [vmem:[%s13870_s0 + $0x60] sm:$0xff]  ;;  %v10145_v20 = vld [vmem:[%s13869_s1 + $0x18] sm:$0xff]   ;;  %v102_v24 = vld [vmem:[%s13870_s0 + $0x68] sm:$0xff] }
  0x2d   :  { %906 = vmatmul.mubr.bf16.vlgmr.msra.gmra.mrb[0].mxu0 %v8468_v5  ;;  %v8471_v36 = vcombine.high %v528_v22, %v542_v28  ;;  %v8470_v37 = vcombine.low %v528_v22, %v542_v28  ;;  %v373_v48 = vsel %vm10644_vm10, %v223_v19, %v372_v21  ;;  %v236_v49 = vrot.slane %v234_v4, 7  ;;  %371 = vst [vmem:[#allocation2 + $0x68] sm:$0x1] %v370_v47  ;;  %v98_v4 = vld [vmem:[%s13870_s0 + $0x48] sm:$0xff] }
  0x2e   :  { %1127 = vmatpush1.bf16.msra.mxu0 %v10142_v7  ;;  %v550_v42 = vor.u32 %v549_v31, %v546_v29  ;;  %v237_v50 = vshll.u32 %v10737_v44, 16  ;;  %v564_v52 = vor.u32 %v563_v43, %v560_v39  ;;  %374 = vst [vmem:[#allocation2 + $0x70] sm:$0xf] %v373_v48  ;;  %v376_v53 = vsel %vm10659_vm11, %v224_v46, %v375_v26  ;;  %v390_v46 = vld [vmem:[#allocation2 + $0xc0] sm:$0xf] }
  0x2f   :  { %8495 = vmatprep.mubr.msk.bf16.mxu0 %vm848_vm13, %v8471_v36  ;;  %1128 = vmatprep.subr.bf16.mxu0 %v13881_v0  ;;  %v600_v56 = vshrl.u32 %v10769_v33, 16  ;;  %377 = vst [vmem:[#allocation2 + $0x78] sm:$0x1] %v376_v53  ;;  %v240_v44 = vrot.slane %v236_v49, 4  ;;  %v603_v60 = vshll.u32 %v10769_v33, 16  ;;  %v609_v61 = vshll.u32 %v476_v34, 16 }
  0x30   :  { %v551_v51 = vrot.slane %v550_v42, 4  ;;  %v239_v59 = vor.u32 %v237_v50, %v236_v49  ;;  %v565_v1 = vrot.slane %v564_v52, 4  ;;  %v572_v2 = vshrl.u32 %v10787_v58, 16  ;;  %v10146_v48 = vld [vmem:[%s13869_s1 + $0x20] sm:$0xff]  }
  0x31   :  { %v575_v3 = vshll.u32 %v10787_v58, 16  ;;  %v388_v6 = vsel %vm10659_vm11, %v240_v44, %v387_v55  ;;  %v602_v7 = vrot.slane %v600_v56, 4  ;;  %v605_v8 = vrot.slane %v603_v60, 5 }
  0x32   :  { %1129 = vmatpush1.bf16.msra.mxu0 %v10143_v41  ;;  %v10792_v63 = vsel %vm10692_vm12, %v551_v51, %v555_v38  ;;  %v385_v5 = vsel %vm10644_vm10, %v239_v59, %v384_v54  ;;  %v570_v12 = vsel %vm10692_vm12, %v565_v1, %v569_v45  ;;  %v574_v16 = vrot.slane %v572_v2, 4  ;;  %389 = vst [vmem:[#allocation2 + $0xb8] sm:$0x1] %v388_v6  ;;  %v393_v51 = vld [vmem:[#allocation2 + $0xc8] sm:$0x1] }
  0x33   :  { %1130 = vmatprep.subr.bf16.mxu0 %v13881_v0  ;;  %v577_v18 = vrot.slane %v575_v3, 5  ;;  %386 = vst [vmem:[#allocation2 + $0xb0] sm:$0xf] %v385_v5  ;;  %v8473_v19 = vcombine.high %v10792_v63, %v570_v12  ;;  %v606_v21 = vor.u32 %v605_v8, %v602_v7  ;;  %v10819_v22 = vrot.slane %v609_v61, 5  ;;  %v399_v59 = vld [vmem:[#allocation2 + $0xd8] sm:$0x1] }
  0x34   :  { %v9509_v23 = vpack.c.bf16 %v98_v4, %v98_v4  ;;  %v8472_v25 = vcombine.low %v10792_v63, %v570_v12  ;;  %v9510_v28 = vpack.c.bf16 %v99_v10, %v99_v10  ;;  %v10825_v29 = vpack.c.bf16 %v100_v11, %v100_v11  ;;  %v10831_v32 = vld [vmem:[#allocation2 + $0x68] sm:$0x11] }
  0x35   :  { %914 = vmatmul.mubr.bf16.gmra.mrb[4].mxu0 %v8470_v37  ;;  %v578_v26 = vor.u32 %v577_v18, %v574_v16  ;;  %v10829_v31 = vld [vmem:[#allocation2 + $0x70] sm:$0xff]  ;;  %v10833_v34 = vrot.slane %v606_v21, 4  ;;  %v10835_v38 = vpack.c.bf16 %v101_v14, %v101_v14  ;;  %v581_v42 = vshll.u32 %v10831_v32, 16  ;;  %v10147_v8 = vld [vmem:[%s13869_s1 + $0x28] sm:$0xff]  }
  0x36   :  { %1131 = vmatpush1.bf16.msra.mxu0 %v10144_v57  ;;  %8496 = vmatprep.mubr.msk.bf16.mxu0 %vm848_vm13, %v8473_v19  ;;  %v242_v36 = vshrl.u32 %v9509_v23, 16  ;;  %v245_v37 = vshll.u32 %v9509_v23, 16  ;;  %v10837_v39 = vld [vmem:[#allocation2 + $0x78] sm:$0x11]  ;;  %v586_v43 = vshrl.u32 %v10829_v31, 16  ;;  %v589_v45 = vshll.u32 %v10829_v31, 16 }
  0x37   :  { %1132 = vmatprep.subr.bf16.mxu0 %v13881_v0  ;;  %v579_v41 = vrot.slane %v578_v26, 4  ;;  %v595_v47 = vshll.u32 %v10837_v39, 16  ;;  %v250_v50 = vshrl.u32 %v9510_v28, 16  ;;  %v10846_v52 = vpack.c.bf16 %v102_v24, %v102_v24  ;;  %v396_v57 = vld [vmem:[#allocation2 + $0xd0] sm:$0xf] }
  0x38   :  { %v244_v49 = vrot.slane %v242_v36, 7  ;;  %v583_v53 = vrot.slane %v581_v42, 5  ;;  %v588_v54 = vrot.slane %v586_v43, 4  ;;  %v591_v55 = vrot.slane %v589_v45, 5  ;;  %v405_v42 = vld [vmem:[#allocation2 + $0xe8] sm:$0x1] }
  0x39   :  { %v253_v56 = vshll.u32 %v9510_v28, 16  ;;  %v597_v44 = vrot.slane %v595_v47, 5  ;;  %v10851_v61 = vld [vmem:[#allocation2 + $0xb8] sm:$0x11]  ;;  %v252_v2 = vrot.slane %v250_v50, 7  ;;  %v261_v36 = vshll.u32 %v10825_v29, 16 }
  0x3a   :  { %1133 = vmatpush1.bf16.msra.mxu0 %v10145_v20  ;;  %v10849_v60 = vld [vmem:[#allocation2 + $0xb0] sm:$0xff]  ;;  %v247_v63 = vor.u32 %v245_v37, %v244_v49  ;;  %v248_v1 = vrot.slane %v244_v49, 4  ;;  %v584_v3 = vsel %vm10692_vm12, %v579_v41, %v583_v53  ;;  %v592_v4 = vor.u32 %v591_v55, %v588_v54  ;;  %v402_v41 = vld [vmem:[#allocation2 + $0xe0] sm:$0xf]  ;;  %v411_v49 = vld [vmem:[#allocation2 + $0xf8] sm:$0x1] }
  0x3b   :  { %1134 = vmatprep.subr.bf16.mxu0 %v13881_v0  ;;  %v614_v5 = vshrl.u32 %v10849_v60, 16  ;;  %v617_v6 = vshll.u32 %v10849_v60, 16  ;;  %v623_v7 = vshll.u32 %v10851_v61, 16  ;;  %v255_v10 = vor.u32 %v253_v56, %v252_v2  ;;  %v103_v20 = vld [vmem:[%s13870_s0 + $0x70] sm:$0xff] }
  0x3c   :  { %v256_v11 = vrot.slane %v252_v2, 4  ;;  %v391_v12 = vsel %vm10644_vm10, %v247_v63, %v390_v46  ;;  %v593_v16 = vrot.slane %v592_v4, 4  ;;  %v394_v19 = vsel %vm10659_vm11, %v248_v1, %v393_v51 }
  0x3d   :  { %922 = vmatmul.mubr.bf16.gmra.mrb[8].mxu0 %v8472_v25  ;;  %v616_v18 = vrot.slane %v614_v5, 4  ;;  %v619_v14 = vrot.slane %v617_v6, 5  ;;  %392 = vst [vmem:[#allocation2 + $0xc0] sm:$0xf] %v391_v12  ;;  %v625_v21 = vrot.slane %v623_v7, 5  ;;  %v397_v23 = vsel %vm10644_vm10, %v255_v10, %v396_v57 }
  0x3e   :  { %1135 = vmatpush1.bf16.msra.mxu0 %v10146_v48  ;;  %395 = vst [vmem:[#allocation2 + $0xc8] sm:$0x1] %v394_v19  ;;  %v400_v24 = vsel %vm10659_vm11, %v256_v11, %v399_v59  ;;  %v258_v25 = vshrl.u32 %v10825_v29, 16  ;;  %v598_v26 = vsel %vm10692_vm12, %v593_v16, %v597_v44  ;;  %398 = vst [vmem:[#allocation2 + $0xd0] sm:$0xf] %v397_v23  ;;  %v266_v37 = vshrl.u32 %v10835_v38, 16 }
  0x3f   :  { %1136 = vmatprep.subr.bf16.mxu0 %v13881_v0  ;;  %v620_v28 = vor.u32 %v619_v14, %v616_v18  ;;  %401 = vst [vmem:[#allocation2 + $0xd8] sm:$0x1] %v400_v24  ;;  %v8475_v43 = vcombine.high %v584_v3, %v598_v26  ;;  %v8474_v45 = vcombine.low %v584_v3, %v598_v26  ;;  %v269_v47 = vshll.u32 %v10835_v38, 16  ;;  %v408_v48 = vld [vmem:[#allocation2 + $0xf0] sm:$0xf] }
  0x40   :  { %v260_v46 = vrot.slane %v258_v25, 7  ;;  %v10883_v50 = vsel %vm10692_vm12, %v10833_v34, %v10819_v22  ;;  %v10148_v29 = vld [vmem:[%s13869_s1 + $0x30] sm:$0xff]   ;;  %v268_v53 = vrot.slane %v266_v37, 7  ;;  %v274_v54 = vshrl.u32 %v10846_v52, 16  ;;  %v10149_v34 = vld [vmem:[%s13869_s1 + $0x38] sm:$0xff]   ;;  %v10150_v37 = vld [vmem:[%s13869_s1 + $0x40] sm:$0xff]  }
  0x41   :  { %v621_v51 = vrot.slane %v620_v28, 4  ;;  %8497 = vmatprep.mubr.msk.bf16.mxu0 %vm848_vm13, %v8475_v43  ;;  %v9514_v56 = vpack.c.bf16 %v103_v20, %v103_v20  ;;  %v277_v57 = vshll.u32 %v10846_v52, 16  ;;  %v414_v5 = vld [vmem:[#allocation2 + $0x100] sm:$0xf]  ;;  %v417_v12 = vld [vmem:[#allocation2 + $0x108] sm:$0x1] }
  0x42   :  { %1137 = vmatpush1.bf16.msra.mxu0 %v10147_v8  ;;  %v263_v38 = vor.u32 %v261_v36, %v260_v46  ;;  %v264_v55 = vrot.slane %v260_v46, 4  ;;  %v271_v59 = vor.u32 %v269_v47, %v268_v53  ;;  %v272_v44 = vrot.slane %v268_v53, 4 }
  0x43   :  { %1138 = vmatprep.subr.bf16.mxu0 %v13881_v0  ;;  %v626_v22 = vsel %vm10692_vm12, %v621_v51, %v625_v21  ;;  %v276_v63 = vrot.slane %v274_v54, 7  ;;  %v282_v21 = vshrl.u32 %v9514_v56, 16 }
  0x44   :  { %v8477_v1 = vcombine.high %v10883_v50, %v626_v22  ;;  %v8476_v2 = vcombine.low %v10883_v50, %v626_v22  ;;  %v10899_v3 = vld [vmem:[#allocation2 + $0xc0] sm:$0xff]  ;;  %v403_v52 = vsel %vm10644_vm10, %v263_v38, %v402_v41  ;;  %v406_v4 = vsel %vm10659_vm11, %v264_v55, %v405_v42  ;;  %v10151_v55 = vld [vmem:[%s13869_s1 + $0x48] sm:$0xff]  }
  0x45   :  { %930 = vmatmul.mubr.bf16.gmra.mrb[12].mxu0 %v8474_v45  ;;  %v10905_v6 = vld [vmem:[#allocation2 + $0xc8] sm:$0x11]  ;;  %v628_v7 = vshrl.u32 %v10899_v3, 16  ;;  %v631_v8 = vshll.u32 %v10899_v3, 16  ;;  %404 = vst [vmem:[#allocation2 + $0xe0] sm:$0xf] %v403_v52  ;;  %v409_v10 = vsel %vm10644_vm10, %v271_v59, %v408_v48  ;;  %v412_v11 = vsel %vm10659_vm11, %v272_v44, %v411_v49 }
  0x46   :  { %1139 = vmatpush1.bf16.msra.mxu0 %v10148_v29  ;;  %407 = vst [vmem:[#allocation2 + $0xe8] sm:$0x1] %v406_v4  ;;  %8498 = vmatprep.mubr.msk.bf16.mxu0 %vm848_vm13, %v8477_v1  ;;  %v10914_v16 = vld [vmem:[#allocation2 + $0xd0] sm:$0xff]  ;;  %v10916_v18 = vld [vmem:[#allocation2 + $0xd8] sm:$0x11]  ;;  %v637_v14 = vshll.u32 %v10905_v6, 16  ;;  %v279_v19 = vor.u32 %v277_v57, %v276_v63 }
  0x47   :  { %1140 = vmatprep.subr.bf16.mxu0 %v13881_v0  ;;  %410 = vst [vmem:[#allocation2 + $0xf0] sm:$0xf] %v409_v10  ;;  %413 = vst [vmem:[#allocation2 + $0xf8] sm:$0x1] %v412_v11  ;;  %v280_v20 = vrot.slane %v276_v63, 4  ;;  %v630_v23 = vrot.slane %v628_v7, 4 }
  0x48   :  { %v633_v24 = vrot.slane %v631_v8, 5  ;;  %v642_v25 = vshrl.u32 %v10914_v16, 16  ;;  %v645_v26 = vshll.u32 %v10914_v16, 16  ;;  %v639_v28 = vrot.slane %v637_v14, 5  ;;  %v420_v48 = vld [vmem:[#allocation2 + $0x110] sm:$0xf] }
  0x49   :  { %v651_v36 = vshll.u32 %v10916_v18, 16  ;;  %v284_v41 = vrot.slane %v282_v21, 7  ;;  %v285_v42 = vshll.u32 %v9514_v56, 16  ;;  %v415_v47 = vsel %vm10644_vm10, %v279_v19, %v414_v5  ;;  %v423_v49 = vld [vmem:[#allocation2 + $0x118] sm:$0x1] }
  0x4a   :  { %v634_v43 = vor.u32 %v633_v24, %v630_v23  ;;  %v644_v45 = vrot.slane %v642_v25, 4  ;;  %v647_v46 = vrot.slane %v645_v26, 5  ;;  %1141 = vmatpush1.bf16.msra.mxu0 %v10149_v34  ;;  %416 = vst [vmem:[#allocation2 + $0x100] sm:$0xf] %v415_v47  ;;  %v418_v29 = vsel %vm10659_vm11, %v280_v20, %v417_v12 }
  0x4b   :  { %1142 = vmatprep.subr.bf16.mxu0 %v13881_v0  ;;  %v287_v50 = vor.u32 %v285_v42, %v284_v41  ;;  %v288_v51 = vrot.slane %v284_v41, 4  ;;  %v653_v38 = vrot.slane %v651_v36, 5  ;;  %419 = vst [vmem:[#allocation2 + $0x108] sm:$0x1] %v418_v29 }
  0x4c   :  { %v635_v53 = vrot.slane %v634_v43, 4  ;;  %v648_v54 = vor.u32 %v647_v46, %v644_v45  ;;  %v10934_v56 = vld [vmem:[#allocation2 + $0xe0] sm:$0xff] }
  0x4d   :  { %938 = vmatmul.mubr.bf16.gmra.mrb[16].mxu0 %v8476_v2  ;;  %v10936_v57 = vld [vmem:[#allocation2 + $0xe8] sm:$0x11]  ;;  %v421_v22 = vsel %vm10644_vm10, %v287_v50, %v420_v48  ;;  %v424_v34 = vsel %vm10659_vm11, %v288_v51, %v423_v49  ;;  %v656_v2 = vshrl.u32 %v10934_v56, 16  ;;  %v659_v52 = vshll.u32 %v10934_v56, 16 }
  0x4e   :  { %v640_v59 = vsel %vm10692_vm12, %v635_v53, %v639_v28  ;;  %v649_v44 = vrot.slane %v648_v54, 4  ;;  %v10944_v63 = vld [vmem:[#allocation2 + $0xf0] sm:$0xff]  ;;  %v10946_v1 = vld [vmem:[#allocation2 + $0xf8] sm:$0x11]  ;;  %1143 = vmatpush1.bf16.msra.mxu0 %v10150_v37  ;;  %422 = vst [vmem:[#allocation2 + $0x110] sm:$0xf] %v421_v22 }
  0x4f   :  { %425 = vst [vmem:[#allocation2 + $0x118] sm:$0x1] %v424_v34  ;;  %v665_v4 = vshll.u32 %v10936_v57, 16  ;;  %v670_v5 = vshrl.u32 %v10944_v63, 16  ;;  %v673_v7 = vshll.u32 %v10944_v63, 16  ;;  %v679_v8 = vshll.u32 %v10946_v1, 16  ;;  %1144 = vmatprep.subr.bf16.mxu0 %v13881_v0 }
  0x50   :  { %v654_v10 = vsel %vm10692_vm12, %v649_v44, %v653_v38  ;;  %v658_v11 = vrot.slane %v656_v2, 4  ;;  %v661_v12 = vrot.slane %v659_v52, 5 }
  0x51   :  { %v8479_v14 = vcombine.high %v640_v59, %v654_v10  ;;  %v8478_v19 = vcombine.low %v640_v59, %v654_v10  ;;  %v672_v20 = vrot.slane %v670_v5, 4  ;;  %v667_v23 = vrot.slane %v665_v4, 5  ;;  %v10957_v25 = vld [vmem:[#allocation2 + $0x100] sm:$0xff] }
  0x52   :  { %v662_v21 = vor.u32 %v661_v12, %v658_v11  ;;  %v675_v24 = vrot.slane %v673_v7, 5  ;;  %1145 = vmatpush1.bf16.msra.mxu0 %v10151_v55  ;;  %v10960_v26 = vld [vmem:[#allocation2 + $0x108] sm:$0x11]  ;;  %v684_v28 = vshrl.u32 %v10957_v25, 16  ;;  %v687_v36 = vshll.u32 %v10957_v25, 16 }
  0x53   :  { %8499 = vmatprep.mubr.msk.bf16.mxu0 %vm848_vm13, %v8479_v14  ;;  %1499 = vmatprep.subr.bf16.mxu0 %v13881_v0  ;;  %v681_v42 = vrot.slane %v679_v8, 5  ;;  %v693_v43 = vshll.u32 %v10960_v26, 16  ;;  %v8503_v12 = vcombine.high %v10663_v30, %v10704_v13  ;;  %v8502_v14 = vcombine.low %v10663_v30, %v10704_v13  ;;  %v10156_v30 = vld [vmem:[%s13869_s1 + $0xb0] sm:$0xff]   ;;  %v96_v13 = vld [vmem:[%s13870_s0 + $0x38] sm:$0xff] }
  0x54   :  { %v663_v37 = vrot.slane %v662_v21, 4  ;;  %v676_v41 = vor.u32 %v675_v24, %v672_v20  ;;  %v686_v47 = vrot.slane %v684_v28, 4  ;;  %v689_v48 = vrot.slane %v687_v36, 5  ;;  %v10155_v21 = vld [vmem:[%s13869_s1 + $0xa8] sm:$0xff]  }
  0x55   :  { %946 = vmatmul.mubr.bf16.gmra.mrb[20].mxu0 %v8478_v19  ;;  %v10966_v45 = vld [vmem:[#allocation2 + $0x110] sm:$0xff]  ;;  %v695_v55 = vrot.slane %v693_v43, 5  ;;  %v10152_v19 = vld [vmem:[%s13869_s1 + $0xa0] sm:$0xff]   ;;  %v8505_v20 = vcombine.high %v10726_v35, %v10733_v40  ;;  %v9507_v24 = vpack.c.bf16 %v96_v13, %v96_v13  ;;  %v8507_v28 = vcombine.high %v10753_v9, %v10757_v15 }
  0x56   :  { %v10968_v46 = vld [vmem:[#allocation2 + $0x118] sm:$0x11]  ;;  %v668_v49 = vsel %vm10692_vm12, %v663_v37, %v667_v23  ;;  %v677_v50 = vrot.slane %v676_v41, 4  ;;  %v698_v51 = vshrl.u32 %v10966_v45, 16  ;;  %v690_v29 = vor.u32 %v689_v48, %v686_v47  ;;  %v378_v43 = vld [vmem:[#allocation2 + $0x80] sm:$0xf] }
  0x57   :  { %v701_v53 = vshll.u32 %v10966_v45, 16  ;;  %v707_v54 = vshll.u32 %v10968_v46, 16  ;;  %v8504_v23 = vcombine.low %v10726_v35, %v10733_v40  ;;  %v226_v36 = vshrl.u32 %v9507_v24, 16  ;;  %v10162_v40 = vld [vmem:[%s13869_s1 + $0xc0] sm:$0xff]  }
  0x58   :  { %v682_v38 = vsel %vm10692_vm12, %v677_v50, %v681_v42  ;;  %v700_v22 = vrot.slane %v698_v51, 4  ;;  %v691_v44 = vrot.slane %v690_v29, 4  ;;  %v229_v41 = vshll.u32 %v9507_v24, 16  ;;  %v10159_v42 = vld [vmem:[%s13869_s1 + $0xb8] sm:$0xff]   ;;  %v10165_v50 = vld [vmem:[%s13869_s1 + $0xc8] sm:$0xff]  }
  0x59   :  { %v8481_v34 = vcombine.high %v668_v49, %v682_v38  ;;  %v8480_v59 = vcombine.low %v668_v49, %v682_v38  ;;  %v703_v2 = vrot.slane %v701_v53, 5  ;;  %v709_v4 = vrot.slane %v707_v54, 5  ;;  %v10169_v29 = vld [vmem:[%s13869_s1 + $0xd8] sm:$0xff]   ;;  %v10175_v54 = vld [vmem:[%s13869_s1 + $0xe8] sm:$0xff]   ;;  %v1226_v24 = vld [vmem:[#allocation2 + $0x30] sm:$0xee] }
  0x5a   :  { %v696_v5 = vsel %vm10692_vm12, %v691_v44, %v695_v55  ;;  %v11009_v37 = vrot.slane %v226_v36, 7  ;;  %v8506_v47 = vcombine.low %v10753_v9, %v10757_v15  ;;  %v8509_v49 = vcombine.high %v10787_v58, %v10829_v31  ;;  %v10168_v15 = vld [vmem:[%s13869_s1 + $0xd0] sm:$0xff]  }
  0x5b   :  { %8500 = vmatprep.mubr.msk.bf16.mxu0 %vm848_vm13, %v8481_v34  ;;  %v704_v52 = vor.u32 %v703_v2, %v700_v22  ;;  %v8508_v9 = vcombine.low %v10787_v58, %v10829_v31  ;;  %v8511_v51 = vcombine.high %v10769_v33, %v10849_v60  ;;  %v10172_v58 = vld [vmem:[%s13869_s1 + $0xe0] sm:$0xff]   ;;  %v8510_v31 = vcombine.low %v10769_v33, %v10849_v60  ;;  %v104_v33 = vld [vmem:[%s13870_s0 + $0x78] sm:$0xff] }
  0x5c   :  { %v231_v35 = vor.u32 %v229_v41, %v11009_v37  ;;  %v8513_v53 = vcombine.high %v10899_v3, %v10914_v16  ;;  %v8512_v60 = vcombine.low %v10899_v3, %v10914_v16  ;;  %v9515_v38 = vpack.c.bf16 %v104_v33, %v104_v33  ;;  %v1223_v2 = vld [vmem:[#allocation2] sm:$0xee]  ;;  %v10407_v33 = vld [vmem:[#allocation2 + $0x58] sm:$0x11] }
  0x5d   :  { %954 = vmatmul.mubr.bf16.gmra.mrb[24].mxu0 %v8480_v59  ;;  %v705_v7 = vrot.slane %v704_v52, 4  ;;  %v8515_v55 = vcombine.high %v10934_v56, %v10944_v63  ;;  %v1224_v52 = vld [vmem:[#allocation2 + $0x10] sm:$0xee] }
  0x5e   :  { %v379_v48 = vsel %vm10644_vm10, %v231_v35, %v378_v43  ;;  %v290_v22 = vshrl.u32 %v9515_v38, 16  ;;  %v293_v59 = vshll.u32 %v9515_v38, 16  ;;  %v10405_v43 = vld [vmem:[#allocation2 + $0x38] sm:$0x11] }
  0x5f   :  { %v710_v8 = vsel %vm10692_vm12, %v705_v7, %v709_v4  ;;  %380 = vst [vmem:[#allocation2 + $0x80] sm:$0xf] %v379_v48  ;;  %v426_v4 = vld [vmem:[#allocation2 + $0x120] sm:$0xf]  ;;  %v10177_v38 = vld [vmem:[%s13869_s1 + $0xf8] sm:$0xff]  }
  0x60   :  { %v8483_v10 = vcombine.high %v696_v5, %v710_v8  ;;  %v8482_v11 = vcombine.low %v696_v5, %v710_v8  ;;  %v11066_v34 = vrot.slane %v290_v22, 7  ;;  %v8514_v5 = vcombine.low %v10934_v56, %v10944_v63 }
  0x61   :  { %v8517_v8 = vcombine.high %v10957_v25, %v10966_v45 }
  0x62   :  { %8501 = vmatprep.mubr.msk.bf16.mxu0 %vm848_vm13, %v8483_v10  ;;  %v295_v44 = vor.u32 %v293_v59, %v11066_v34  ;;  %v10402_v10 = vld [vmem:[#allocation2 + $0x8] sm:$0x11]  ;;  %v1229_v59 = vld [vmem:[#allocation2 + $0x60] sm:$0xee] }
  0x64   :  { %v427_v7 = vsel %vm10644_vm10, %v295_v44, %v426_v4  ;;  %v1230_v44 = vld [vmem:[#allocation2 + $0x70] sm:$0xee]  ;;  %v10178_v4 = vld [vmem:[%s13869_s1 + $0x100] sm:$0xff]  }
  0x65   :  { %962 = vmatmul.mubr.bf16.gmra.mrb[28].mxu0 %v8482_v11  ;;  %428 = vst [vmem:[#allocation2 + $0x120] sm:$0xf] %v427_v7  ;;  %v1276_v11 = vrot.slane %v10402_v10, 5  ;;  %v8542_v7 = vrot.slane %v1229_v59, 9  ;;  %v8543_v10 = vrot.slane %v1230_v44, 9  ;;  %v1328_v59 = vrot.slane %v10946_v1, 5 }
  0x66   :  { %8528 = vmatprep.mubr.msk.bf16.mxu0 %vm848_vm13, %v8503_v12  ;;  %v10403_v12 = vld [vmem:[#allocation2 + $0x18] sm:$0x11]  ;;  %v1238_v1 = vld [vmem:[#allocation2 + $0x110] sm:$0xee] }
  0x67   :  { %v10185_v44 = vld [vmem:[%s13869_s1 + $0x138] sm:$0xff]  }
  0x6d   :  { %1159 = vmatmul.mubr.bf16.vlgmr.msra.gmra.mrb[0].mxu0 %v8502_v14  ;;  %v1280_v14 = vrot.slane %v10403_v12, 5  ;;  %v381_v12 = vld [vmem:[#allocation2 + $0x88] sm:$0x1] }
  0x6e   :  { %1500 = vmatpush1.bf16.msra.mxu0 %v10152_v19  ;;  %8529 = vmatprep.mubr.msk.bf16.mxu0 %vm848_vm13, %v8505_v20  ;;  %v8536_v19 = vrot.slane %v1223_v2, 9  ;;  %v8537_v20 = vrot.slane %v1224_v52, 9  ;;  %v232_v2 = vrot.slane %v11009_v37, 4  ;;  %v10179_v37 = vld [vmem:[%s13869_s1 + $0x108] sm:$0xff]  }
  0x6f   :  { %1501 = vmatprep.subr.bf16.mxu0 %v13881_v0 }
  0x70   :  { %v1281_v13 = vsel %vm11076_vm0, %v8537_v20, %v1280_v14  ;;  %v382_v14 = vsel %vm10659_vm11, %v232_v2, %v381_v12  ;;  %v1232_v20 = vld [vmem:[#allocation2 + $0xb0] sm:$0xee]  ;;  %v1336_v12 = vrot.slane %v10968_v46, 5 }
  0x71   :  { %383 = vst [vmem:[#allocation2 + $0x88] sm:$0x1] %v382_v14  ;;  %v429_v14 = vld [vmem:[#allocation2 + $0x128] sm:$0x1]  ;;  %v11178_v46 = vld [vmem:[#allocation2 + $0x10] sm:$0xff] }
  0x72   :  { %1502 = vmatpush1.bf16.msra.mxu0 %v10155_v21  ;;  %v10317_v21 = vld [vmem:[%s13871_s4 + $0x138] sm:$0xff]  }
  0x73   :  { %1503 = vmatprep.subr.bf16.mxu0 %v13881_v0 }
  0x75   :  { %1167 = vmatmul.mubr.bf16.gmra.mrb[4].mxu0 %v8504_v23  ;;  %v1225_v23 = vld [vmem:[#allocation2 + $0x20] sm:$0xee] }
  0x76   :  { %1504 = vmatpush1.bf16.msra.mxu0 %v10156_v30  ;;  %8530 = vmatprep.mubr.msk.bf16.mxu0 %vm848_vm13, %v8507_v28  ;;  %v1277_v30 = vsel %vm11076_vm0, %v8536_v19, %v1276_v11  ;;  %v8516_v28 = vcombine.low %v10957_v25, %v10966_v45  ;;  %v8538_v41 = vrot.slane %v1225_v23, 9  ;;  %v1304_v11 = vrot.slane %v10837_v39, 5  ;;  %v1231_v19 = vld [vmem:[#allocation2 + $0xa0] sm:$0xee]  ;;  %v10180_v23 = vld [vmem:[%s13869_s1 + $0x110] sm:$0xff]  }
  0x77   :  { %1505 = vmatprep.subr.bf16.mxu0 %v13881_v0  ;;  %v8573_v36 = vcombine.high %v1277_v30, %v1281_v13 }
  0x78   :  { %v1305_v39 = vsel %vm11076_vm0, %v8543_v10, %v1304_v11  ;;  %v1332_v10 = vrot.slane %v10960_v26, 5  ;;  %v8551_v11 = vrot.slane %v1238_v1, 9  ;;  %v11261_v1 = vld [vmem:[#allocation2 + $0x18] sm:$0x11] }
  0x7a   :  { %1506 = vmatpush1.bf16.msra.mxu0 %v10159_v42  ;;  %v10404_v42 = vld [vmem:[#allocation2 + $0x28] sm:$0x11] }
  0x7b   :  { %1507 = vmatprep.subr.bf16.mxu0 %v13881_v0  ;;  %v1284_v35 = vrot.slane %v10404_v42, 5  ;;  %v1312_v42 = vrot.slane %v10851_v61, 5 }
  0x7d   :  { %1175 = vmatmul.mubr.bf16.gmra.mrb[8].mxu0 %v8506_v47  ;;  %v1288_v47 = vrot.slane %v10405_v43, 5  ;;  %v1285_v48 = vsel %vm11076_vm0, %v8538_v41, %v1284_v35  ;;  %v8545_v41 = vrot.slane %v1232_v20, 9  ;;  %v10181_v35 = vld [vmem:[%s13869_s1 + $0x118] sm:$0xff]  }
  0x7e   :  { %8531 = vmatprep.mubr.msk.bf16.mxu0 %vm848_vm13, %v8509_v49  ;;  %1508 = vmatpush1.bf16.msra.mxu0 %v10162_v40  ;;  %v8539_v40 = vrot.slane %v1226_v24, 9  ;;  %v8544_v24 = vrot.slane %v1231_v19, 9  ;;  %v11180_v19 = vld [vmem:[#allocation2 + $0x20] sm:$0xff] }
  0x7f   :  { %1509 = vmatprep.subr.bf16.mxu0 %v13881_v0  ;;  %v1313_v43 = vsel %vm11076_vm0, %v8545_v41, %v1312_v42  ;;  %v10191_v41 = vld [vmem:[%s13869_s1 + $0x148] sm:$0xff]   ;;  %v11201_v42 = vld [vmem:[#allocation2 + $0x50] sm:$0xff] }
  0x80   :  { %v1289_v49 = vsel %vm11076_vm0, %v8539_v40, %v1288_v47  ;;  %v1233_v47 = vld [vmem:[#allocation2 + $0xc0] sm:$0xee] }
  0x81   :  { %v8574_v52 = vcombine.low %v1285_v48, %v1289_v49 }
  0x82   :  { %1510 = vmatpush1.bf16.msra.mxu0 %v10165_v50  ;;  %v1227_v50 = vld [vmem:[#allocation2 + $0x40] sm:$0xee] }
  0x83   :  { %1511 = vmatprep.subr.bf16.mxu0 %v13881_v0 }
  0x85   :  { %1183 = vmatmul.mubr.bf16.gmra.mrb[12].mxu0 %v8508_v9  ;;  %v1228_v9 = vld [vmem:[#allocation2 + $0x50] sm:$0xee] }
  0x86   :  { %8532 = vmatprep.mubr.msk.bf16.mxu0 %vm848_vm13, %v8511_v51  ;;  %1512 = vmatpush1.bf16.msra.mxu0 %v10168_v15  ;;  %v8572_v15 = vcombine.low %v1277_v30, %v1281_v13  ;;  %v10176_v51 = vld [vmem:[%s13869_s1 + $0xf0] sm:$0xff]  }
  0x87   :  { %1513 = vmatprep.subr.bf16.mxu0 %v13881_v0 }
  0x8a   :  { %1514 = vmatpush1.bf16.msra.mxu0 %v10169_v29  ;;  %v8575_v29 = vcombine.high %v1285_v48, %v1289_v49  ;;  %v1234_v48 = vld [vmem:[#allocation2 + $0xd0] sm:$0xee] }
  0x8b   :  { %1515 = vmatprep.subr.bf16.mxu0 %v13881_v0 }
  0x8d   :  { %1191 = vmatmul.mubr.bf16.gmra.mrb[16].mxu0 %v8510_v31  ;;  %v10406_v31 = vld [vmem:[#allocation2 + $0x48] sm:$0x11] }
  0x8e   :  { %8533 = vmatprep.mubr.msk.bf16.mxu0 %vm848_vm13, %v8513_v53  ;;  %1516 = vmatpush1.bf16.msra.mxu0 %v10172_v58  ;;  %v8540_v58 = vrot.slane %v1227_v50, 9  ;;  %v1292_v53 = vrot.slane %v10406_v31, 5  ;;  %v10182_v50 = vld [vmem:[%s13869_s1 + $0x120] sm:$0xff]  }
  0x8f   :  { %1517 = vmatprep.subr.bf16.mxu0 %v13881_v0 }
  0x92   :  { %1518 = vmatpush1.bf16.msra.mxu0 %v10175_v54  ;;  %v8541_v54 = vrot.slane %v1228_v9, 9  ;;  %v8546_v9 = vrot.slane %v1233_v47, 9 }
  0x93   :  { %1805 = vmatprep.subr.bf16.mxu0 %v13881_v0 }
  0x95   :  { %1199 = vmatmul.mubr.bf16.gmra.mrb[20].mxu0 %v8512_v60  ;;  %v1296_v60 = vrot.slane %v10407_v33, 5 }
  0x96   :  { %8534 = vmatprep.mubr.msk.bf16.mxu0 %vm848_vm13, %v8515_v55  ;;  %v1293_v55 = vsel %vm11076_vm0, %v8540_v58, %v1292_v53  ;;  %v10183_v58 = vld [vmem:[%s13869_s1 + $0x128] sm:$0xff]  }
  0x97   :  { %v1297_v22 = vsel %vm11076_vm0, %v8541_v54, %v1296_v60  ;;  %v10184_v60 = vld [vmem:[%s13869_s1 + $0x130] sm:$0xff]  }
  0x98   :  { %v8576_v30 = vcombine.low %v1293_v55, %v1297_v22 }
  0x9d   :  { %1207 = vmatmul.mubr.bf16.gmra.mrb[24].mxu0 %v8514_v5  ;;  %v8577_v5 = vcombine.high %v1293_v55, %v1297_v22  ;;  %v1324_v55 = vrot.slane %v10936_v57, 5  ;;  %v1237_v57 = vld [vmem:[#allocation2 + $0x100] sm:$0xee] }
  0x9e   :  { %8535 = vmatprep.mubr.msk.bf16.mxu0 %vm848_vm13, %v8517_v8  ;;  %v1300_v8 = vrot.slane %v10831_v32, 5 }
  0xa0   :  { %v1301_v32 = vsel %vm11076_vm0, %v8542_v7, %v1300_v8  ;;  %v8550_v8 = vrot.slane %v1237_v57, 9  ;;  %v8636_v57 = vcombine.low %v10914_v16, %v10934_v56 }
  0xa1   :  { %v8579_v13 = vcombine.high %v1301_v32, %v1305_v39  ;;  %v8578_v49 = vcombine.low %v1301_v32, %v1305_v39  ;;  %v1337_v32 = vsel %vm11076_vm0, %v8551_v11, %v1336_v12 }
  0xa5   :  { %1215 = vmatmul.mubr.bf16.gmra.mrb[28].mxu0 %v8516_v28  ;;  %v10408_v28 = vld [vmem:[#allocation2 + $0xa8] sm:$0x11] }
  0xa6   :  { %8598 = vmatprep.mubr.msk.bf16.mxu0 %vm848_vm13, %v8573_v36  ;;  %v1308_v36 = vrot.slane %v10408_v28, 5  ;;  %v10188_v28 = vld [vmem:[%s13869_s1 + $0x140] sm:$0xff]  }
  0xa8   :  { %v1309_v40 = vsel %vm11076_vm0, %v8544_v24, %v1308_v36  ;;  %v8626_v24 = vcombine.low %v11178_v46, %v11180_v19 }
  0xa9   :  { %v8581_v61 = vcombine.high %v1309_v40, %v1313_v43  ;;  %v8580_v54 = vcombine.low %v1309_v40, %v1313_v43  ;;  %v10192_v40 = vld [vmem:[%s13869_s1 + $0x150] sm:$0xff]   ;;  %v10409_v43 = vld [vmem:[#allocation2 + $0x60] sm:$0xff] }
  0xaa   :  { %v8631_v47 = vcombine.high %v11201_v42, %v10409_v43 }
  0xad   :  { %1532 = vmatmul.mubr.bf16.vlgmr.msra.gmra.mrb[0].mxu0 %v8572_v15  ;;  %v1316_v15 = vrot.slane %v10905_v6, 5  ;;  %v1235_v6 = vld [vmem:[#allocation2 + $0xe0] sm:$0xee] }
  0xae   :  { %1806 = vmatpush1.bf16.msra.mxu0 %v10176_v51  ;;  %8599 = vmatprep.mubr.msk.bf16.mxu0 %vm848_vm13, %v8575_v29  ;;  %v8547_v51 = vrot.slane %v1234_v48, 9  ;;  %v1320_v29 = vrot.slane %v10916_v18, 5  ;;  %v1236_v18 = vld [vmem:[#allocation2 + $0xf0] sm:$0xee]  ;;  %v10195_v48 = vld [vmem:[%s13869_s1 + $0x158] sm:$0xff]  }
  0xaf   :  { %1807 = vmatprep.subr.bf16.mxu0 %v13881_v0  ;;  %v1317_v31 = vsel %vm11076_vm0, %v8546_v9, %v1316_v15  ;;  %v8549_v22 = vrot.slane %v1236_v18, 9  ;;  %v10198_v15 = vld [vmem:[%s13869_s1 + $0x160] sm:$0xff]  }
  0xb0   :  { %v1321_v53 = vsel %vm11076_vm0, %v8547_v51, %v1320_v29  ;;  %v10199_v51 = vld [vmem:[%s13869_s1 + $0x168] sm:$0xff]  }
  0xb1   :  { %v8583_v33 = vcombine.high %v1317_v31, %v1321_v53 }
  0xb2   :  { %1808 = vmatpush1.bf16.msra.mxu0 %v10177_v38  ;;  %v8548_v38 = vrot.slane %v1235_v6, 9  ;;  %v10201_v6 = vld [vmem:[%s13869_s1 + $0x178] sm:$0xff]  }
  0xb3   :  { %1809 = vmatprep.subr.bf16.mxu0 %v13881_v0 }
  0xb4   :  { %v1325_v2 = vsel %vm11076_vm0, %v8548_v38, %v1324_v55  ;;  %v1954_v38 = vshll.u32 %v11178_v46, 16  ;;  %v1965_v55 = vshrl.u32 %v11180_v19, 16 }
  0xb5   :  { %1540 = vmatmul.mubr.bf16.gmra.mrb[4].mxu0 %v8574_v52  ;;  %v1329_v52 = vsel %vm11076_vm0, %v8549_v22, %v1328_v59  ;;  %v1968_v22 = vshll.u32 %v11180_v19, 16 }
  0xb6   :  { %1810 = vmatpush1.bf16.msra.mxu0 %v10178_v4  ;;  %8600 = vmatprep.mubr.msk.bf16.mxu0 %vm848_vm13, %v8577_v5  ;;  %v296_v4 = vrot.slane %v11066_v34, 4  ;;  %v8582_v5 = vcombine.low %v1317_v31, %v1321_v53  ;;  %v8585_v7 = vcombine.high %v1325_v2, %v1329_v52  ;;  %v1333_v34 = vsel %vm11076_vm0, %v8550_v8, %v1332_v10  ;;  %v10200_v53 = vld [vmem:[%s13869_s1 + $0x170] sm:$0xff]  }
  0xb7   :  { %1811 = vmatprep.subr.bf16.mxu0 %v13881_v0  ;;  %v8584_v26 = vcombine.low %v1325_v2, %v1329_v52  ;;  %v8587_v39 = vcombine.high %v1333_v34, %v1337_v32  ;;  %v8586_v20 = vcombine.low %v1333_v34, %v1337_v32  ;;  %v1967_v2 = vrot.slane %v1965_v55, 4  ;;  %v11277_v34 = vld [vmem:[#allocation2 + $0x120] sm:$0xff] }
  0xb8   :  { %v1970_v52 = vrot.slane %v1968_v22, 5  ;;  %v1960_v8 = vshll.u32 %v11261_v1, 16 }
  0xba   :  { %1812 = vmatpush1.bf16.msra.mxu0 %v10179_v37  ;;  %v430_v37 = vsel %vm10659_vm11, %v296_v4, %v429_v14  ;;  %v11263_v4 = vld [vmem:[#allocation2 + $0x28] sm:$0x11]  ;;  %v1971_v10 = vor.u32 %v1970_v52, %v1967_v2 }
  0xbb   :  { %1813 = vmatprep.subr.bf16.mxu0 %v13881_v0  ;;  %431 = vst [vmem:[#allocation2 + $0x128] sm:$0x1] %v430_v37  ;;  %v1974_v11 = vshll.u32 %v11263_v4, 16  ;;  %v8638_v37 = vcombine.low %v10944_v63, %v10957_v25 }
  0xbd   :  { %1548 = vmatmul.mubr.bf16.gmra.mrb[8].mxu0 %v8576_v30  ;;  %v8627_v30 = vcombine.high %v11178_v46, %v11180_v19 }
  0xbe   :  { %8601 = vmatprep.mubr.msk.bf16.mxu0 %vm848_vm13, %v8579_v13  ;;  %1814 = vmatpush1.bf16.msra.mxu0 %v10180_v23  ;;  %v11185_v13 = vld [vmem:[#allocation2 + $0x30] sm:$0xff]  ;;  %v11187_v23 = vld [vmem:[#allocation2 + $0x40] sm:$0xff] }
  0xbf   :  { %1815 = vmatprep.subr.bf16.mxu0 %v13881_v0  ;;  %v8629_v36 = vcombine.high %v11185_v13, %v11187_v23  ;;  %v1979_v12 = vshrl.u32 %v11185_v13, 16  ;;  %v1996_v14 = vshll.u32 %v11187_v23, 16 }
  0xc1   :  { %v1981_v19 = vrot.slane %v1979_v12, 4 }
  0xc2   :  { %1816 = vmatpush1.bf16.msra.mxu0 %v10181_v35  ;;  %v8628_v35 = vcombine.low %v11185_v13, %v11187_v23 }
  0xc3   :  { %1817 = vmatprep.subr.bf16.mxu0 %v13881_v0 }
  0xc5   :  { %1556 = vmatmul.mubr.bf16.gmra.mrb[12].mxu0 %v8578_v49  ;;  %v11215_v49 = vld [vmem:[#allocation2 + $0x70] sm:$0xff] }
  0xc6   :  { %8602 = vmatprep.mubr.msk.bf16.mxu0 %vm848_vm13, %v8581_v61  ;;  %1818 = vmatpush1.bf16.msra.mxu0 %v10182_v50  ;;  %v11217_v61 = vld [vmem:[#allocation2 + $0x80] sm:$0xff]  ;;  %v8630_v50 = vcombine.low %v11201_v42, %v10409_v43  ;;  %v2038_v2 = vshll.u32 %v11215_v49, 16 }
  0xc7   :  { %1819 = vmatprep.subr.bf16.mxu0 %v13881_v0  ;;  %v8633_v9 = vcombine.high %v11215_v49, %v11217_v61  ;;  %v8632_v29 = vcombine.low %v11215_v49, %v11217_v61  ;;  %v2049_v52 = vshrl.u32 %v11217_v61, 16 }
  0xca   :  { %1820 = vmatpush1.bf16.msra.mxu0 %v10183_v58  ;;  %v10410_v58 = vld [vmem:[#allocation2 + $0xb0] sm:$0xff] }
  0xcb   :  { %1821 = vmatprep.subr.bf16.mxu0 %v13881_v0  ;;  %v8635_v31 = vcombine.high %v10410_v58, %v10899_v3  ;;  %v8634_v18 = vcombine.low %v10410_v58, %v10899_v3  ;;  %v10203_v3 = vld [vmem:[%s13869_s1 + $0x188] sm:$0xff]  }
  0xcd   :  { %1564 = vmatmul.mubr.bf16.gmra.mrb[16].mxu0 %v8580_v54  ;;  %v8637_v54 = vcombine.high %v10914_v16, %v10934_v56  ;;  %v1982_v16 = vshll.u32 %v11185_v13, 16  ;;  %v1993_v56 = vshrl.u32 %v11187_v23, 16  ;;  %v8641_v13 = vcombine.high %v10966_v45, %v11277_v34  ;;  %v11283_v23 = vld [vmem:[#allocation2 + $0x48] sm:$0x11] }
  0xce   :  { %8603 = vmatprep.mubr.msk.bf16.mxu0 %vm848_vm13, %v8583_v33  ;;  %1822 = vmatpush1.bf16.msra.mxu0 %v10184_v60  ;;  %v10202_v33 = vld [vmem:[%s13869_s1 + $0x180] sm:$0xff]   ;;  %v1951_v60 = vshrl.u32 %v11178_v46, 16  ;;  %v1976_v46 = vrot.slane %v1974_v11, 5  ;;  %v2002_v43 = vshll.u32 %v11283_v23, 16  ;;  %v10204_v11 = vld [vmem:[%s13869_s1 + $0x190] sm:$0xff]  }
  0xcf   :  { %1823 = vmatprep.subr.bf16.mxu0 %v13881_v0 }
  0xd0   :  { %v1953_v59 = vrot.slane %v1951_v60, 4  ;;  %v11300_v60 = vld [vmem:[#allocation2 + $0x58] sm:$0x11] }
  0xd1   :  { %v2016_v22 = vshll.u32 %v11300_v60, 16 }
  0xd2   :  { %1824 = vmatpush1.bf16.msra.mxu0 %v10185_v44  ;;  %v1956_v44 = vrot.slane %v1954_v38, 5  ;;  %v11302_v38 = vld [vmem:[#allocation2 + $0x68] sm:$0x11] }
  0xd3   :  { %2335 = vmatprep.subr.bf16.mxu0 %v13881_v0 }
  0xd5   :  { %1572 = vmatmul.mubr.bf16.gmra.mrb[20].mxu0 %v8582_v5  ;;  %v8639_v5 = vcombine.high %v10944_v63, %v10957_v25 }
  0xd6   :  { %8604 = vmatprep.mubr.msk.bf16.mxu0 %vm848_vm13, %v8585_v7  ;;  %v1957_v7 = vor.u32 %v1956_v44, %v1953_v59  ;;  %v2030_v59 = vshll.u32 %v11302_v38, 16  ;;  %v2035_v44 = vshrl.u32 %v11215_v49, 16 }
  0xd8   :  { %v1958_v32 = vrot.slane %v1957_v7, 4 }
  0xdd   :  { %1580 = vmatmul.mubr.bf16.gmra.mrb[24].mxu0 %v8584_v26  ;;  %v1962_v26 = vrot.slane %v1960_v8, 5  ;;  %v1934_v8 = vld [vmem:[#allocation2 + $0xb0] sm:$0xff] }
  0xde   :  { %8605 = vmatprep.mubr.msk.bf16.mxu0 %vm848_vm13, %v8587_v39  ;;  %v1972_v39 = vrot.slane %v1971_v10, 4  ;;  %v11315_v10 = vld [vmem:[#allocation2 + $0xc0] sm:$0xff] }
  0xdf   :  { %v1963_v63 = vsel %vm10692_vm12, %v1958_v32, %v1962_v26  ;;  %v2037_v32 = vrot.slane %v2035_v44, 4  ;;  %v2040_v26 = vrot.slane %v2038_v2, 5 }
  0xe0   :  { %v1977_v25 = vsel %vm10692_vm12, %v1972_v39, %v1976_v46  ;;  %v2051_v39 = vrot.slane %v2049_v52, 4  ;;  %v11324_v46 = vld [vmem:[#allocation2 + $0x88] sm:$0x11] }
  0xe5   :  { %1588 = vmatmul.mubr.bf16.gmra.mrb[28].mxu0 %v8586_v20  ;;  %v1984_v20 = vrot.slane %v1982_v16, 5  ;;  %v2018_v16 = vrot.slane %v2016_v22, 5 }
  0xe6   :  { %8652 = vmatprep.mubr.msk.bf16.mxu0 %vm848_vm13, %v8627_v30  ;;  %v1995_v30 = vrot.slane %v1993_v56, 4 }
  0xed   :  { %1838 = vmatmul.mubr.bf16.vlgmr.msra.gmra.mrb[0].mxu0 %v8626_v24  ;;  %v1998_v24 = vrot.slane %v1996_v14, 5  ;;  %v2032_v14 = vrot.slane %v2030_v59, 5 }
  0xee   :  { %2336 = vmatpush1.bf16.msra.mxu0 %v10188_v28  ;;  %8653 = vmatprep.mubr.msk.bf16.mxu0 %vm848_vm13, %v8629_v36  ;;  %v11281_v28 = vld [vmem:[#allocation2 + $0x38] sm:$0x11]  ;;  %v11285_v36 = vld [vmem:[#allocation2 + $0x60] sm:$0xff] }
  0xef   :  { %2337 = vmatprep.subr.bf16.mxu0 %v13881_v0 }
  0xf2   :  { %2338 = vmatpush1.bf16.msra.mxu0 %v10191_v41  ;;  %v1985_v41 = vor.u32 %v1984_v20, %v1981_v19  ;;  %v2063_v19 = vshrl.u32 %v1934_v8, 16  ;;  %v2066_v20 = vshll.u32 %v1934_v8, 16 }
  0xf3   :  { %2339 = vmatprep.subr.bf16.mxu0 %v13881_v0 }
  0xf5   :  { %1846 = vmatmul.mubr.bf16.gmra.mrb[4].mxu0 %v8628_v35  ;;  %v1988_v35 = vshll.u32 %v11281_v28, 16 }
  0xf6   :  { %2340 = vmatpush1.bf16.msra.mxu0 %v10192_v40  ;;  %8654 = vmatprep.mubr.msk.bf16.mxu0 %vm848_vm13, %v8631_v47  ;;  %v1999_v40 = vor.u32 %v1998_v24, %v1995_v30  ;;  %v2007_v47 = vshrl.u32 %v11201_v42, 16  ;;  %v2077_v30 = vshrl.u32 %v11315_v10, 16  ;;  %v2080_v24 = vshll.u32 %v11315_v10, 16 }
  0xf7   :  { %2341 = vmatprep.subr.bf16.mxu0 %v13881_v0  ;;  %v1990_v58 = vrot.slane %v1988_v35, 5 }
  0xfa   :  { %2342 = vmatpush1.bf16.msra.mxu0 %v10195_v48  ;;  %v2010_v48 = vshll.u32 %v11201_v42, 16 }
  0xfb   :  { %2343 = vmatprep.subr.bf16.mxu0 %v13881_v0 }
  0xfd   :  { %1854 = vmatmul.mubr.bf16.gmra.mrb[8].mxu0 %v8630_v50  ;;  %v2021_v50 = vshrl.u32 %v11285_v36, 16 }
  0xfe   :  { %8655 = vmatprep.mubr.msk.bf16.mxu0 %vm848_vm13, %v8633_v9  ;;  %2344 = vmatpush1.bf16.msra.mxu0 %v10198_v15  ;;  %v2024_v9 = vshll.u32 %v11285_v36, 16  ;;  %v8640_v15 = vcombine.low %v10966_v45, %v11277_v34 }
  0xff   :  { %2345 = vmatprep.subr.bf16.mxu0 %v13881_v0 }
 0x102   :  { %2346 = vmatpush1.bf16.msra.mxu0 %v10199_v51  ;;  %v8681_v51 = vcombine.high %v1963_v63, %v1977_v25 }
 0x103   :  { %2347 = vmatprep.subr.bf16.mxu0 %v13881_v0 }
 0x105   :  { %1862 = vmatmul.mubr.bf16.gmra.mrb[12].mxu0 %v8632_v29  ;;  %v1986_v29 = vrot.slane %v1985_v41, 4  ;;  %v2041_v41 = vor.u32 %v2040_v26, %v2037_v32 }
 0x106   :  { %8656 = vmatprep.mubr.msk.bf16.mxu0 %vm848_vm13, %v8635_v31  ;;  %2348 = vmatpush1.bf16.msra.mxu0 %v10200_v53  ;;  %v2000_v31 = vrot.slane %v1999_v40, 4  ;;  %v2004_v53 = vrot.slane %v2002_v43, 5  ;;  %v2058_v43 = vshll.u32 %v11324_v46, 16 }
 0x107   :  { %2349 = vmatprep.subr.bf16.mxu0 %v13881_v0  ;;  %v1991_v42 = vsel %vm10692_vm12, %v1986_v29, %v1990_v58  ;;  %v11342_v29 = vld [vmem:[#allocation2 + $0xc8] sm:$0x11]  ;;  %v10206_v58 = vld [vmem:[%s13869_s1 + $0x1a0] sm:$0xff]  }
 0x108   :  { %v2005_v45 = vsel %vm10692_vm12, %v2000_v31, %v2004_v53  ;;  %v11347_v53 = vld [vmem:[#allocation2 + $0xd0] sm:$0xff] }
 0x109   :  { %v8683_v7 = vcombine.high %v1991_v42, %v2005_v45  ;;  %v2091_v59 = vshrl.u32 %v11347_v53, 16  ;;  %v2094_v44 = vshll.u32 %v11347_v53, 16 }
 0x10a   :  { %2350 = vmatpush1.bf16.msra.mxu0 %v10201_v6  ;;  %v2009_v6 = vrot.slane %v2007_v47, 4  ;;  %v2065_v47 = vrot.slane %v2063_v19, 4 }
 0x10b   :  { %2351 = vmatprep.subr.bf16.mxu0 %v13881_v0  ;;  %v2093_v32 = vrot.slane %v2091_v59, 4  ;;  %v2096_v26 = vrot.slane %v2094_v44, 5 }
 0x10d   :  { %1870 = vmatmul.mubr.bf16.gmra.mrb[16].mxu0 %v8634_v18  ;;  %v2012_v18 = vrot.slane %v2010_v48, 5  ;;  %v2068_v48 = vrot.slane %v2066_v20, 5  ;;  %v10208_v20 = vld [vmem:[%s13869_s1 + $0x1b0] sm:$0xff]  }
 0x10e   :  { %8657 = vmatprep.mubr.msk.bf16.mxu0 %vm848_vm13, %v8637_v54  ;;  %2352 = vmatpush1.bf16.msra.mxu0 %v10202_v33  ;;  %v2023_v54 = vrot.slane %v2021_v50, 4  ;;  %v2026_v33 = vrot.slane %v2024_v9, 5  ;;  %v2079_v50 = vrot.slane %v2077_v30, 4  ;;  %v2082_v9 = vrot.slane %v2080_v24, 5  ;;  %v11372_v30 = vld [vmem:[#allocation2 + $0xd8] sm:$0x11] }
 0x10f   :  { %2353 = vmatprep.subr.bf16.mxu0 %v13881_v0  ;;  %v2013_v55 = vor.u32 %v2012_v18, %v2009_v6  ;;  %v11349_v6 = vld [vmem:[#allocation2 + $0xe0] sm:$0xff]  ;;  %v2042_v18 = vrot.slane %v2041_v41, 4  ;;  %v11374_v24 = vld [vmem:[#allocation2 + $0xe8] sm:$0x11] }
 0x110   :  { %v2083_v22 = vor.u32 %v2082_v9, %v2079_v50  ;;  %v2105_v2 = vshrl.u32 %v11349_v6, 16  ;;  %v2108_v52 = vshll.u32 %v11349_v6, 16 }
 0x111   :  { %v2014_v12 = vrot.slane %v2013_v55, 4 }
 0x112   :  { %2354 = vmatpush1.bf16.msra.mxu0 %v10203_v3  ;;  %v2027_v3 = vor.u32 %v2026_v33, %v2023_v54 }
 0x113   :  { %2721 = vmatprep.subr.bf16.mxu0 %v13881_v0 }
 0x114   :  { %v11320_v56 = vrot.slane %v2027_v3, 4  ;;  %v2086_v3 = vshll.u32 %v11342_v29, 16 }
 0x115   :  { %1878 = vmatmul.mubr.bf16.gmra.mrb[20].mxu0 %v8636_v57  ;;  %v2052_v57 = vshll.u32 %v11217_v61, 16 }
 0x116   :  { %8658 = vmatprep.mubr.msk.bf16.mxu0 %vm848_vm13, %v8639_v5  ;;  %v8680_v5 = vcombine.low %v1963_v63, %v1977_v25  ;;  %v2019_v63 = vsel %vm10692_vm12, %v2014_v12, %v2018_v16  ;;  %v2033_v25 = vsel %vm10692_vm12, %v11320_v56, %v2032_v14  ;;  %v11367_v16 = vrot.slane %v2083_v22, 4 }
 0x117   :  { %v2054_v61 = vrot.slane %v2052_v57, 5  ;;  %v8685_v31 = vcombine.high %v2019_v63, %v2033_v25  ;;  %v10207_v57 = vld [vmem:[%s13869_s1 + $0x1a8] sm:$0xff]   ;;  %v2088_v14 = vrot.slane %v2086_v3, 5 }
 0x119   :  { %v2055_v40 = vor.u32 %v2054_v61, %v2051_v39  ;;  %v2107_v39 = vrot.slane %v2105_v2, 4  ;;  %v2110_v61 = vrot.slane %v2108_v52, 5  ;;  %v2089_v41 = vsel %vm10692_vm12, %v11367_v16, %v2088_v14  ;;  %v11405_v2 = vld [vmem:[#allocation2 + $0xf8] sm:$0x11]  ;;  %v11407_v52 = vld [vmem:[#allocation2 + $0x108] sm:$0x11] }
 0x11b   :  { %v2056_v33 = vrot.slane %v2055_v40, 4  ;;  %v2100_v40 = vshll.u32 %v11372_v30, 16 }
 0x11d   :  { %1886 = vmatmul.mubr.bf16.gmra.mrb[24].mxu0 %v8638_v37  ;;  %v11322_v37 = vld [vmem:[#allocation2 + $0x78] sm:$0x11] }
 0x11e   :  { %8659 = vmatprep.mubr.msk.bf16.mxu0 %vm848_vm13, %v8641_v13  ;;  %v10205_v13 = vld [vmem:[%s13869_s1 + $0x198] sm:$0xff]   ;;  %v2044_v35 = vshll.u32 %v11322_v37, 16 }
 0x120   :  { %v2046_v54 = vrot.slane %v2044_v35, 5  ;;  %v2097_v35 = vor.u32 %v2096_v26, %v2093_v32  ;;  %v2142_v32 = vshll.u32 %v11407_v52, 16 }
 0x125   :  { %1894 = vmatmul.mubr.bf16.gmra.mrb[28].mxu0 %v8640_v15  ;;  %v8682_v15 = vcombine.low %v1991_v42, %v2005_v45  ;;  %v2060_v42 = vrot.slane %v2058_v43, 5  ;;  %v2069_v45 = vor.u32 %v2068_v48, %v2065_v47  ;;  %v2111_v43 = vor.u32 %v2110_v61, %v2107_v39  ;;  %v10209_v48 = vld [vmem:[%s13869_s1 + $0x1b8] sm:$0xff]  }
 0x126   :  { %8706 = vmatprep.mubr.msk.bf16.mxu0 %vm848_vm13, %v8681_v51  ;;  %v11340_v51 = vld [vmem:[#allocation2 + $0xb8] sm:$0x11]  ;;  %v2114_v47 = vshll.u32 %v11374_v24, 16  ;;  %v2161_v61 = vshrl.u32 %v11277_v34, 16 }
 0x127   :  { %v2072_v55 = vshll.u32 %v11340_v51, 16  ;;  %v2061_v8 = vsel %vm10692_vm12, %v2056_v33, %v2060_v42  ;;  %v2102_v33 = vrot.slane %v2100_v40, 5  ;;  %v11399_v42 = vrot.slane %v2111_v43, 4 }
 0x129   :  { %v2074_v12 = vrot.slane %v2072_v55, 5  ;;  %v10210_v55 = vld [vmem:[%s13869_s1 + $0x1c0] sm:$0xff]  }
 0x12d   :  { %2368 = vmatmul.mubr.bf16.vlgmr.msra.gmra.mrb[0].mxu0 %v8680_v5  ;;  %v8684_v5 = vcombine.low %v2019_v63, %v2033_v25  ;;  %v11379_v63 = vld [vmem:[#allocation2 + $0x100] sm:$0xff] }
 0x12e   :  { %2722 = vmatpush1.bf16.msra.mxu0 %v10204_v11  ;;  %8707 = vmatprep.mubr.msk.bf16.mxu0 %vm848_vm13, %v8683_v7  ;;  %v2047_v7 = vsel %vm10692_vm12, %v2042_v18, %v2046_v54  ;;  %v2070_v11 = vrot.slane %v2069_v45, 4  ;;  %v11397_v54 = vrot.slane %v2097_v35, 4  ;;  %v2116_v45 = vrot.slane %v2114_v47, 5 }
 0x12f   :  { %2723 = vmatprep.subr.bf16.mxu0 %v13881_v0  ;;  %v8687_v19 = vcombine.high %v2047_v7, %v2061_v8 }
 0x130   :  { %v2075_v25 = vsel %vm10692_vm12, %v2070_v11, %v2074_v12  ;;  %v2128_v12 = vshll.u32 %v11405_v2, 16 }
 0x131   :  { %v8689_v18 = vcombine.high %v2075_v25, %v2089_v41 }
 0x132   :  { %2724 = vmatpush1.bf16.msra.mxu0 %v10205_v13  ;;  %v11377_v13 = vld [vmem:[#allocation2 + $0xf0] sm:$0xff]  ;;  %v2130_v43 = vrot.slane %v2128_v12, 5 }
 0x133   :  { %2725 = vmatprep.subr.bf16.mxu0 %v13881_v0  ;;  %v2119_v50 = vshrl.u32 %v11377_v13, 16  ;;  %v2122_v9 = vshll.u32 %v11377_v13, 16 }
 0x135   :  { %2376 = vmatmul.mubr.bf16.gmra.mrb[4].mxu0 %v8682_v15  ;;  %v2133_v15 = vshrl.u32 %v11379_v63, 16  ;;  %v2121_v22 = vrot.slane %v2119_v50, 4  ;;  %v2124_v3 = vrot.slane %v2122_v9, 5  ;;  %v10212_v50 = vld [vmem:[%s13869_s1 + $0x1d0] sm:$0xff]  }
 0x136   :  { %2726 = vmatpush1.bf16.msra.mxu0 %v10206_v58  ;;  %8708 = vmatprep.mubr.msk.bf16.mxu0 %vm848_vm13, %v8685_v31  ;;  %v2136_v58 = vshll.u32 %v11379_v63, 16  ;;  %v8686_v31 = vcombine.low %v2047_v7, %v2061_v8  ;;  %v2117_v7 = vsel %vm10692_vm12, %v11399_v42, %v2116_v45  ;;  %v10211_v8 = vld [vmem:[%s13869_s1 + $0x1c8] sm:$0xff]   ;;  %v10213_v45 = vld [vmem:[%s13869_s1 + $0x1d8] sm:$0xff]  }
 0x137   :  { %2727 = vmatprep.subr.bf16.mxu0 %v13881_v0  ;;  %v2135_v59 = vrot.slane %v2133_v15, 4  ;;  %v2125_v11 = vor.u32 %v2124_v3, %v2121_v22 }
 0x138   :  { %v2138_v44 = vrot.slane %v2136_v58, 5  ;;  %v2163_v58 = vrot.slane %v2161_v61, 4 }
 0x139   :  { %v11428_v40 = vrot.slane %v2125_v11, 4 }
 0x13a   :  { %2728 = vmatpush1.bf16.msra.mxu0 %v10207_v57  ;;  %v11409_v57 = vld [vmem:[#allocation2 + $0x110] sm:$0xff]  ;;  %v2139_v14 = vor.u32 %v2138_v44, %v2135_v59 }
 0x13b   :  { %2729 = vmatprep.subr.bf16.mxu0 %v13881_v0  ;;  %v2147_v26 = vshrl.u32 %v11409_v57, 16  ;;  %v2150_v39 = vshll.u32 %v11409_v57, 16 }
 0x13c   :  { %v11430_v47 = vrot.slane %v2139_v14, 4 }
 0x13d   :  { %2384 = vmatmul.mubr.bf16.gmra.mrb[8].mxu0 %v8684_v5  ;;  %v2103_v5 = vsel %vm10692_vm12, %v11397_v54, %v2102_v33  ;;  %v2149_v9 = vrot.slane %v2147_v26, 4  ;;  %v2152_v15 = vrot.slane %v2150_v39, 5 }
 0x13e   :  { %8709 = vmatprep.mubr.msk.bf16.mxu0 %vm848_vm13, %v8687_v19  ;;  %2730 = vmatpush1.bf16.msra.mxu0 %v10208_v20  ;;  %v2164_v19 = vshll.u32 %v11277_v34, 16  ;;  %v8688_v20 = vcombine.low %v2075_v25, %v2089_v41  ;;  %v8691_v35 = vcombine.high %v2103_v5, %v2117_v7  ;;  %v11438_v25 = vld [vmem:[#allocation2 + $0x128] sm:$0x11]  ;;  %v2131_v41 = vsel %vm10692_vm12, %v11428_v40, %v2130_v43 }
 0x13f   :  { %2731 = vmatprep.subr.bf16.mxu0 %v13881_v0  ;;  %v2170_v59 = vshll.u32 %v11438_v25, 16  ;;  %v8690_v44 = vcombine.low %v2103_v5, %v2117_v7  ;;  %v2448_v5 = vld [vmem:[#allocation2 + $0x10] sm:$0xee]  ;;  %v2449_v7 = vld [vmem:[#allocation2 + $0x20] sm:$0xee] }
 0x140   :  { %v8715_v43 = vrot.slane %v2449_v7, 9  ;;  %v2455_v7 = vld [vmem:[#allocation2 + $0x80] sm:$0xee] }
 0x142   :  { %2732 = vmatpush1.bf16.msra.mxu0 %v10209_v48  ;;  %v2144_v48 = vrot.slane %v2142_v32, 5  ;;  %v2172_v32 = vrot.slane %v2170_v59, 5  ;;  %v2453_v59 = vld [vmem:[#allocation2 + $0x60] sm:$0xee] }
 0x143   :  { %2733 = vmatprep.subr.bf16.mxu0 %v13881_v0 }
 0x144   :  { %v2145_v33 = vsel %vm10692_vm12, %v11430_v47, %v2144_v48  ;;  %v2502_v48 = vrot.slane %v11263_v4, 5 }
 0x145   :  { %2392 = vmatmul.mubr.bf16.gmra.mrb[12].mxu0 %v8686_v31  ;;  %v2166_v31 = vrot.slane %v2164_v19, 5  ;;  %v8692_v61 = vcombine.low %v2131_v41, %v2145_v33 }
 0x146   :  { %8710 = vmatprep.mubr.msk.bf16.mxu0 %vm848_vm13, %v8689_v18  ;;  %2734 = vmatpush1.bf16.msra.mxu0 %v10210_v55  ;;  %v11436_v18 = vld [vmem:[#allocation2 + $0x118] sm:$0x11]  ;;  %v2153_v55 = vor.u32 %v2152_v15, %v2149_v9  ;;  %v2503_v9 = vsel %vm11076_vm0, %v8715_v43, %v2502_v48  ;;  %v2450_v15 = vld [vmem:[#allocation2 + $0x30] sm:$0xee]  ;;  %v8721_v43 = vrot.slane %v2455_v7, 9  ;;  %v2526_v48 = vrot.slane %v11324_v46, 5 }
 0x147   :  { %2735 = vmatprep.subr.bf16.mxu0 %v13881_v0  ;;  %v2156_v22 = vshll.u32 %v11436_v18, 16  ;;  %v2167_v3 = vor.u32 %v2166_v31, %v2163_v58  ;;  %v2451_v58 = vld [vmem:[#allocation2 + $0x40] sm:$0xee] }
 0x148   :  { %v11453_v11 = vrot.slane %v2153_v55, 4  ;;  %v2510_v55 = vrot.slane %v11283_v23, 5  ;;  %v2514_v23 = vrot.slane %v11300_v60, 5  ;;  %v2454_v60 = vld [vmem:[#allocation2 + $0x70] sm:$0xee]  ;;  %v10222_v7 = vld [vmem:[%s13869_s1 + $0x220] sm:$0xff]  }
 0x149   :  { %v2158_v12 = vrot.slane %v2156_v22, 5  ;;  %v2168_v14 = vrot.slane %v2167_v3, 4  ;;  %v2452_v3 = vld [vmem:[#allocation2 + $0x50] sm:$0xee] }
 0x14a   :  { %2736 = vmatpush1.bf16.msra.mxu0 %v10211_v8  ;;  %v8693_v8 = vcombine.high %v2131_v41, %v2145_v33  ;;  %v8716_v33 = vrot.slane %v2450_v15, 9  ;;  %v2527_v15 = vsel %vm11076_vm0, %v8721_v43, %v2526_v48 }
 0x14b   :  { %2737 = vmatprep.subr.bf16.mxu0 %v13881_v0  ;;  %v2159_v26 = vsel %vm10692_vm12, %v11453_v11, %v2158_v12  ;;  %v2173_v39 = vsel %vm10692_vm12, %v2168_v14, %v2172_v32  ;;  %v8718_v12 = vrot.slane %v2452_v3, 9  ;;  %v8719_v14 = vrot.slane %v2453_v59, 9  ;;  %v2459_v59 = vld [vmem:[#allocation2 + $0xe0] sm:$0xee] }
 0x14c   :  { %v8695_v19 = vcombine.high %v2159_v26, %v2173_v39  ;;  %v8694_v31 = vcombine.low %v2159_v26, %v2173_v39  ;;  %v2518_v32 = vrot.slane %v11302_v38, 5  ;;  %v10215_v26 = vld [vmem:[%s13869_s1 + $0x1e8] sm:$0xff]   ;;  %v10216_v38 = vld [vmem:[%s13869_s1 + $0x1f0] sm:$0xff]  }
 0x14d   :  { %2400 = vmatmul.mubr.bf16.gmra.mrb[16].mxu0 %v8688_v20  ;;  %v8714_v20 = vrot.slane %v2448_v5, 9  ;;  %v2515_v39 = vsel %vm11076_vm0, %v8718_v12, %v2514_v23  ;;  %v2538_v12 = vrot.slane %v11372_v30, 5  ;;  %v8725_v23 = vrot.slane %v2459_v59, 9  ;;  %v2460_v30 = vld [vmem:[#allocation2 + $0xf0] sm:$0xee] }
 0x14e   :  { %8711 = vmatprep.mubr.msk.bf16.mxu0 %vm848_vm13, %v8691_v35  ;;  %2738 = vmatpush1.bf16.msra.mxu0 %v10212_v50  ;;  %v2498_v35 = vrot.slane %v11261_v1, 5  ;;  %v8717_v1 = vrot.slane %v2451_v58, 9  ;;  %v2519_v5 = vsel %vm11076_vm0, %v8719_v14, %v2518_v32  ;;  %v2457_v58 = vld [vmem:[#allocation2 + $0xc0] sm:$0xee]  ;;  %v2542_v14 = vrot.slane %v11374_v24, 5  ;;  %v10221_v32 = vld [vmem:[%s13869_s1 + $0x218] sm:$0xff]  }
 0x14f   :  { %2739 = vmatprep.subr.bf16.mxu0 %v13881_v0  ;;  %v2461_v24 = vld [vmem:[#allocation2 + $0x100] sm:$0xee] }
 0x150   :  { %v2499_v50 = vsel %vm11076_vm0, %v8714_v20, %v2498_v35  ;;  %v2511_v22 = vsel %vm11076_vm0, %v8717_v1, %v2510_v55  ;;  %v8720_v20 = vrot.slane %v2454_v60, 9  ;;  %v2522_v35 = vrot.slane %v11322_v37, 5  ;;  %v2456_v37 = vld [vmem:[#allocation2 + $0xb0] sm:$0xee] }
 0x151   :  { %v8751_v41 = vcombine.high %v2499_v50, %v2503_v9  ;;  %v8723_v1 = vrot.slane %v2457_v58, 9  ;;  %v2534_v55 = vrot.slane %v11342_v29, 5 }
 0x152   :  { %2740 = vmatpush1.bf16.msra.mxu0 %v10213_v45  ;;  %v2506_v45 = vrot.slane %v11281_v28, 5 }
 0x153   :  { %3028 = vmatprep.subr.bf16.mxu0 %v13881_v0  ;;  %v2535_v3 = vsel %vm11076_vm0, %v8723_v1, %v2534_v55  ;;  %v11559_v1 = vld [vmem:[#allocation2 + $0x30] sm:$0xff] }
 0x154   :  { %v2507_v4 = vsel %vm11076_vm0, %v8716_v33, %v2506_v45  ;;  %v8722_v33 = vrot.slane %v2456_v37, 9  ;;  %v2530_v45 = vrot.slane %v11340_v51, 5  ;;  %v2458_v51 = vld [vmem:[#allocation2 + $0xd0] sm:$0xee]  ;;  %v2554_v37 = vrot.slane %v11436_v18, 5  ;;  %v2835_v18 = vld [vmem:[#allocation2 + $0x20] sm:$0xff] }
 0x155   :  { %2408 = vmatmul.mubr.bf16.gmra.mrb[20].mxu0 %v8690_v44  ;;  %v8750_v44 = vcombine.low %v2499_v50, %v2503_v9  ;;  %v8753_v28 = vcombine.high %v2507_v4, %v2511_v22  ;;  %v10217_v50 = vld [vmem:[%s13869_s1 + $0x1f8] sm:$0xff]   ;;  %v2523_v9 = vsel %vm11076_vm0, %v8720_v20, %v2522_v35  ;;  %v2550_v20 = vrot.slane %v11407_v52, 5  ;;  %v10223_v35 = vld [vmem:[%s13869_s1 + $0x228] sm:$0xff]   ;;  %v2463_v52 = vld [vmem:[#allocation2 + $0x120] sm:$0xee] }
 0x156   :  { %8712 = vmatprep.mubr.msk.bf16.mxu0 %vm848_vm13, %v8693_v8  ;;  %v10214_v8 = vld [vmem:[%s13869_s1 + $0x1e0] sm:$0xff]   ;;  %v8757_v46 = vcombine.high %v2523_v9, %v2527_v15  ;;  %v8729_v58 = vrot.slane %v2463_v52, 9  ;;  %v8805_v55 = vcombine.high %v2835_v18, %v11559_v1 }
 0x15d   :  { %2416 = vmatmul.mubr.bf16.gmra.mrb[24].mxu0 %v8692_v61  ;;  %v8752_v61 = vcombine.low %v2507_v4, %v2511_v22  ;;  %v10219_v4 = vld [vmem:[%s13869_s1 + $0x208] sm:$0xff]   ;;  %v2531_v22 = vsel %vm11076_vm0, %v8722_v33, %v2530_v45 }
 0x15e   :  { %8713 = vmatprep.mubr.msk.bf16.mxu0 %vm848_vm13, %v8695_v19  ;;  %v8755_v19 = vcombine.high %v2515_v39, %v2519_v5  ;;  %v8759_v29 = vcombine.high %v2531_v22, %v2535_v3 }
 0x165   :  { %2424 = vmatmul.mubr.bf16.gmra.mrb[28].mxu0 %v8694_v31  ;;  %v8754_v31 = vcombine.low %v2515_v39, %v2519_v5  ;;  %v2543_v39 = vsel %vm11076_vm0, %v8725_v23, %v2542_v14  ;;  %v8758_v5 = vcombine.low %v2531_v22, %v2535_v3  ;;  %v11565_v22 = vld [vmem:[#allocation2 + $0x50] sm:$0xff]  ;;  %v8804_v3 = vcombine.low %v2835_v18, %v11559_v1  ;;  %v11591_v23 = vld [vmem:[#allocation2 + $0x80] sm:$0xff] }
 0x166   :  { %8776 = vmatprep.mubr.msk.bf16.mxu0 %vm848_vm13, %v8751_v41  ;;  %v10218_v41 = vld [vmem:[%s13869_s1 + $0x200] sm:$0xff]   ;;  %v11593_v14 = vld [vmem:[#allocation2 + $0x90] sm:$0xff]  ;;  %v3219_v52 = vshll.u32 %v11565_v22, 16 }
 0x16d   :  { %2754 = vmatmul.mubr.bf16.vlgmr.msra.gmra.mrb[0].mxu0 %v8750_v44  ;;  %v8756_v44 = vcombine.low %v2523_v9, %v2527_v15 }
 0x16e   :  { %3029 = vmatpush1.bf16.msra.mxu0 %v10214_v8  ;;  %8777 = vmatprep.mubr.msk.bf16.mxu0 %vm848_vm13, %v8753_v28  ;;  %v10220_v8 = vld [vmem:[%s13869_s1 + $0x210] sm:$0xff]   ;;  %v8724_v28 = vrot.slane %v2458_v51, 9 }
 0x16f   :  { %3030 = vmatprep.subr.bf16.mxu0 %v13881_v0  ;;  %v10226_v51 = vld [vmem:[%s13869_s1 + $0x230] sm:$0xff]  }
 0x172   :  { %3031 = vmatpush1.bf16.msra.mxu0 %v10215_v26  ;;  %v2539_v26 = vsel %vm11076_vm0, %v8724_v28, %v2538_v12  ;;  %v8809_v28 = vcombine.high %v11285_v36, %v11215_v49  ;;  %v10233_v12 = vld [vmem:[%s13869_s1 + $0x248] sm:$0xff]  }
 0x173   :  { %3032 = vmatprep.subr.bf16.mxu0 %v13881_v0  ;;  %v8761_v60 = vcombine.high %v2539_v26, %v2543_v39 }
 0x175   :  { %2762 = vmatmul.mubr.bf16.gmra.mrb[4].mxu0 %v8752_v61  ;;  %v8726_v61 = vrot.slane %v2460_v30, 9  ;;  %v10239_v30 = vld [vmem:[%s13869_s1 + $0x258] sm:$0xff]  }
 0x176   :  { %3033 = vmatpush1.bf16.msra.mxu0 %v10216_v38  ;;  %8778 = vmatprep.mubr.msk.bf16.mxu0 %vm848_vm13, %v8755_v19  ;;  %v2546_v38 = vrot.slane %v11405_v2, 5  ;;  %v8727_v19 = vrot.slane %v2461_v24, 9  ;;  %v2462_v2 = vld [vmem:[#allocation2 + $0x110] sm:$0xee]  ;;  %v10242_v24 = vld [vmem:[%s13869_s1 + $0x260] sm:$0xff]  }
 0x177   :  { %3034 = vmatprep.subr.bf16.mxu0 %v13881_v0  ;;  %v8728_v15 = vrot.slane %v2462_v2, 9  ;;  %v3216_v2 = vshrl.u32 %v11565_v22, 16 }
 0x178   :  { %v2547_v43 = vsel %vm11076_vm0, %v8726_v61, %v2546_v38  ;;  %v2551_v48 = vsel %vm11076_vm0, %v8727_v19, %v2550_v20  ;;  %v3188_v61 = vshrl.u32 %v11559_v1, 16  ;;  %v3191_v38 = vshll.u32 %v11559_v1, 16 }
 0x179   :  { %v8763_v9 = vcombine.high %v2547_v43, %v2551_v48  ;;  %v8762_v33 = vcombine.low %v2547_v43, %v2551_v48  ;;  %v8812_v19 = vcombine.low %v11315_v10, %v11347_v53  ;;  %v8815_v20 = vcombine.high %v11349_v6, %v11377_v13 }
 0x17a   :  { %3035 = vmatpush1.bf16.msra.mxu0 %v10217_v50  ;;  %v8760_v50 = vcombine.low %v2539_v26, %v2543_v39  ;;  %v8811_v26 = vcombine.high %v11591_v23, %v11593_v14  ;;  %v10236_v39 = vld [vmem:[%s13869_s1 + $0x250] sm:$0xff]  }
 0x17b   :  { %3036 = vmatprep.subr.bf16.mxu0 %v13881_v0 }
 0x17d   :  { %2770 = vmatmul.mubr.bf16.gmra.mrb[8].mxu0 %v8754_v31  ;;  %v2558_v31 = vrot.slane %v11438_v25, 5 }
 0x17e   :  { %8779 = vmatprep.mubr.msk.bf16.mxu0 %vm848_vm13, %v8757_v46  ;;  %3037 = vmatpush1.bf16.msra.mxu0 %v10218_v41  ;;  %v2555_v46 = vsel %vm11076_vm0, %v8728_v15, %v2554_v37  ;;  %v3151_v15 = vld [vmem:[#allocation2 + $0x70] sm:$0xff]  ;;  %v11635_v37 = vld [vmem:[#allocation2 + $0x28] sm:$0x11] }
 0x17f   :  { %3038 = vmatprep.subr.bf16.mxu0 %v13881_v0  ;;  %v2559_v41 = vsel %vm11076_vm0, %v8729_v58, %v2558_v31  ;;  %v10249_v58 = vld [vmem:[%s13869_s1 + $0x278] sm:$0xff]   ;;  %v3244_v1 = vshrl.u32 %v3151_v15, 16 }
 0x180   :  { %v8765_v45 = vcombine.high %v2555_v46, %v2559_v41  ;;  %v8764_v25 = vcombine.low %v2555_v46, %v2559_v41  ;;  %v11641_v31 = vld [vmem:[#allocation2 + $0x38] sm:$0x11] }
 0x182   :  { %3039 = vmatpush1.bf16.msra.mxu0 %v10219_v4  ;;  %v11563_v4 = vld [vmem:[#allocation2 + $0x40] sm:$0xff] }
 0x183   :  { %3040 = vmatprep.subr.bf16.mxu0 %v13881_v0  ;;  %v8807_v59 = vcombine.high %v11563_v4, %v11565_v22  ;;  %v3202_v43 = vshrl.u32 %v11563_v4, 16  ;;  %v3205_v48 = vshll.u32 %v11563_v4, 16 }
 0x185   :  { %2778 = vmatmul.mubr.bf16.gmra.mrb[12].mxu0 %v8756_v44  ;;  %v10229_v44 = vld [vmem:[%s13869_s1 + $0x238] sm:$0xff]   ;;  %v3204_v46 = vrot.slane %v3202_v43, 4  ;;  %v3207_v41 = vrot.slane %v3205_v48, 5  ;;  %v3275_v43 = vshll.u32 %v11593_v14, 16 }
 0x186   :  { %8780 = vmatprep.mubr.msk.bf16.mxu0 %vm848_vm13, %v8759_v29  ;;  %3041 = vmatpush1.bf16.msra.mxu0 %v10220_v8  ;;  %v8806_v29 = vcombine.low %v11563_v4, %v11565_v22  ;;  %v10230_v8 = vld [vmem:[%s13869_s1 + $0x240] sm:$0xff]   ;;  %v3183_v4 = vshll.u32 %v11635_v37, 16 }
 0x187   :  { %3042 = vmatprep.subr.bf16.mxu0 %v13881_v0 }
 0x18a   :  { %3043 = vmatpush1.bf16.msra.mxu0 %v10221_v32  ;;  %v8808_v32 = vcombine.low %v11285_v36, %v11215_v49  ;;  %v8810_v49 = vcombine.low %v11591_v23, %v11593_v14  ;;  %v8813_v36 = vcombine.high %v11315_v10, %v11347_v53  ;;  %v3190_v53 = vrot.slane %v3188_v61, 4 }
 0x18b   :  { %3044 = vmatprep.subr.bf16.mxu0 %v13881_v0  ;;  %v3261_v61 = vshll.u32 %v11591_v23, 16 }
 0x18d   :  { %2786 = vmatmul.mubr.bf16.gmra.mrb[16].mxu0 %v8758_v5  ;;  %v10243_v5 = vld [vmem:[%s13869_s1 + $0x268] sm:$0xff]  }
 0x18e   :  { %8781 = vmatprep.mubr.msk.bf16.mxu0 %vm848_vm13, %v8761_v60  ;;  %3045 = vmatpush1.bf16.msra.mxu0 %v10222_v7  ;;  %v3174_v60 = vshrl.u32 %v2835_v18, 16  ;;  %v3177_v7 = vshll.u32 %v2835_v18, 16  ;;  %v3221_v18 = vrot.slane %v3219_v52, 5  ;;  %v11683_v52 = vld [vmem:[#allocation2 + $0x98] sm:$0x11] }
 0x18f   :  { %3046 = vmatprep.subr.bf16.mxu0 %v13881_v0 }
 0x190   :  { %v3179_v10 = vrot.slane %v3177_v7, 5  ;;  %v3258_v7 = vshrl.u32 %v11591_v23, 16  ;;  %v11681_v23 = vld [vmem:[#allocation2 + $0x88] sm:$0x11] }
 0x192   :  { %3047 = vmatpush1.bf16.msra.mxu0 %v10223_v35  ;;  %v10246_v35 = vld [vmem:[%s13869_s1 + $0x270] sm:$0xff]  }
 0x193   :  { %3558 = vmatprep.subr.bf16.mxu0 %v13881_v0 }
 0x195   :  { %2794 = vmatmul.mubr.bf16.gmra.mrb[20].mxu0 %v8760_v50  ;;  %v3176_v50 = vrot.slane %v3174_v60, 4  ;;  %v11664_v60 = vld [vmem:[#allocation2 + $0x78] sm:$0x11] }
 0x196   :  { %8782 = vmatprep.mubr.msk.bf16.mxu0 %vm848_vm13, %v8763_v9  ;;  %v3193_v9 = vrot.slane %v3191_v38, 5  ;;  %v3169_v38 = vld [vmem:[#allocation2 + $0x120] sm:$0xff] }
 0x198   :  { %v3194_v22 = vor.u32 %v3193_v9, %v3190_v53  ;;  %v3370_v53 = vshrl.u32 %v3169_v38, 16  ;;  %v3373_v9 = vshll.u32 %v3169_v38, 16 }
 0x19d   :  { %2802 = vmatmul.mubr.bf16.gmra.mrb[24].mxu0 %v8762_v33  ;;  %v11644_v33 = vld [vmem:[#allocation2 + $0x48] sm:$0x11] }
 0x19e   :  { %8783 = vmatprep.mubr.msk.bf16.mxu0 %vm848_vm13, %v8765_v45  ;;  %v3218_v45 = vrot.slane %v3216_v2, 4 }
 0x1a5   :  { %2810 = vmatmul.mubr.bf16.gmra.mrb[28].mxu0 %v8764_v25  ;;  %v3247_v25 = vshll.u32 %v3151_v15, 16  ;;  %v3260_v15 = vrot.slane %v3258_v7, 4 }
 0x1a6   :  { %8830 = vmatprep.mubr.msk.bf16.mxu0 %vm848_vm13, %v8805_v55  ;;  %v3180_v55 = vor.u32 %v3179_v10, %v3176_v50  ;;  %v3253_v10 = vshll.u32 %v11664_v60, 16 }
 0x1ad   :  { %3061 = vmatmul.mubr.bf16.vlgmr.msra.gmra.mrb[0].mxu0 %v8804_v3  ;;  %v11647_v3 = vld [vmem:[#allocation2 + $0x58] sm:$0x11] }
 0x1ae   :  { %3559 = vmatpush1.bf16.msra.mxu0 %v10226_v51  ;;  %8831 = vmatprep.mubr.msk.bf16.mxu0 %vm848_vm13, %v8807_v59  ;;  %v8814_v51 = vcombine.low %v11349_v6, %v11377_v13  ;;  %v3197_v59 = vshll.u32 %v11641_v31, 16  ;;  %v3181_v6 = vrot.slane %v3180_v55, 4  ;;  %v3185_v13 = vrot.slane %v3183_v4, 5  ;;  %v11694_v55 = vld [vmem:[#allocation2 + $0xd8] sm:$0x11] }
 0x1af   :  { %3560 = vmatprep.subr.bf16.mxu0 %v13881_v0  ;;  %v11696_v4 = vld [vmem:[#allocation2 + $0xe8] sm:$0x11]  ;;  %v3309_v38 = vshll.u32 %v11694_v55, 16 }
 0x1b2   :  { %3561 = vmatpush1.bf16.msra.mxu0 %v10229_v44  ;;  %v11652_v44 = vld [vmem:[#allocation2 + $0x68] sm:$0x11] }
 0x1b3   :  { %3562 = vmatprep.subr.bf16.mxu0 %v13881_v0 }
 0x1b5   :  { %3069 = vmatmul.mubr.bf16.gmra.mrb[4].mxu0 %v8806_v29  ;;  %v8817_v29 = vcombine.high %v11379_v63, %v11409_v57 }
 0x1b6   :  { %3563 = vmatpush1.bf16.msra.mxu0 %v10230_v8  ;;  %8832 = vmatprep.mubr.msk.bf16.mxu0 %vm848_vm13, %v8809_v28  ;;  %v3208_v8 = vor.u32 %v3207_v41, %v3204_v46  ;;  %v3211_v28 = vshll.u32 %v11644_v33, 16  ;;  %v3267_v41 = vshll.u32 %v11681_v23, 16 }
 0x1b7   :  { %3564 = vmatprep.subr.bf16.mxu0 %v13881_v0 }
 0x1ba   :  { %3565 = vmatpush1.bf16.msra.mxu0 %v10233_v12  ;;  %v3222_v12 = vor.u32 %v3221_v18, %v3218_v45  ;;  %v3277_v18 = vrot.slane %v3275_v43, 5 }
 0x1bb   :  { %3566 = vmatprep.subr.bf16.mxu0 %v13881_v0 }
 0x1bd   :  { %3077 = vmatmul.mubr.bf16.gmra.mrb[8].mxu0 %v8808_v32  ;;  %v3225_v32 = vshll.u32 %v11647_v3, 16 }
 0x1be   :  { %8833 = vmatprep.mubr.msk.bf16.mxu0 %vm848_vm13, %v8811_v26  ;;  %3567 = vmatpush1.bf16.msra.mxu0 %v10236_v39  ;;  %v3246_v26 = vrot.slane %v3244_v1, 4  ;;  %v3249_v39 = vrot.slane %v3247_v25, 5  ;;  %v3281_v1 = vshll.u32 %v11683_v52, 16  ;;  %v11692_v25 = vld [vmem:[#allocation2 + $0xc8] sm:$0x11] }
 0x1bf   :  { %3568 = vmatprep.subr.bf16.mxu0 %v13881_v0  ;;  %v11679_v48 = vrot.slane %v3225_v32, 5 }
 0x1c0   :  { %v3250_v2 = vor.u32 %v3249_v39, %v3246_v26  ;;  %v11710_v39 = vld [vmem:[#allocation2 + $0x128] sm:$0x11] }
 0x1c2   :  { %3569 = vmatpush1.bf16.msra.mxu0 %v10239_v30  ;;  %v11659_v30 = vld [vmem:[#allocation2 + $0x130] sm:$0xff] }
 0x1c3   :  { %3570 = vmatprep.subr.bf16.mxu0 %v13881_v0  ;;  %v3387_v46 = vshll.u32 %v11659_v30, 16 }
 0x1c5   :  { %3085 = vmatmul.mubr.bf16.gmra.mrb[12].mxu0 %v8810_v49  ;;  %v3195_v49 = vrot.slane %v3194_v22, 4  ;;  %v11698_v22 = vld [vmem:[#allocation2 + $0xf8] sm:$0x11] }
 0x1c6   :  { %8834 = vmatprep.mubr.msk.bf16.mxu0 %vm848_vm13, %v8813_v36  ;;  %3571 = vmatpush1.bf16.msra.mxu0 %v10242_v24  ;;  %v3239_v36 = vshll.u32 %v11652_v44, 16  ;;  %v8816_v24 = vcombine.low %v11379_v63, %v11409_v57  ;;  %v8819_v63 = vcombine.high %v11277_v34, %v11659_v30  ;;  %v11677_v57 = vrot.slane %v3222_v12, 4 }
 0x1c7   :  { %3572 = vmatprep.subr.bf16.mxu0 %v13881_v0  ;;  %v3375_v12 = vrot.slane %v3373_v9, 5  ;;  %v3283_v9 = vrot.slane %v3281_v1, 5 }
 0x1c8   :  { %v11685_v50 = vrot.slane %v3239_v36, 5  ;;  %v11712_v36 = vld [vmem:[#allocation2 + $0x138] sm:$0x11] }
 0x1ca   :  { %3573 = vmatpush1.bf16.msra.mxu0 %v10243_v5  ;;  %v3199_v5 = vrot.slane %v3197_v59, 5  ;;  %v3186_v59 = vsel %vm10692_vm12, %v3181_v6, %v3185_v13  ;;  %v3255_v6 = vrot.slane %v3253_v10, 5  ;;  %v3269_v10 = vrot.slane %v3267_v41, 5 }
 0x1cb   :  { %3574 = vmatprep.subr.bf16.mxu0 %v13881_v0 }
 0x1cc   :  { %v3200_v32 = vsel %vm10692_vm12, %v3195_v49, %v3199_v5  ;;  %v3337_v49 = vshll.u32 %v11698_v22, 16 }
 0x1cd   :  { %3093 = vmatmul.mubr.bf16.gmra.mrb[16].mxu0 %v8812_v19  ;;  %v11669_v19 = vrot.slane %v3208_v8, 4  ;;  %v11706_v8 = vld [vmem:[#allocation2 + $0x118] sm:$0x11] }
 0x1ce   :  { %8835 = vmatprep.mubr.msk.bf16.mxu0 %vm848_vm13, %v8815_v20  ;;  %3575 = vmatpush1.bf16.msra.mxu0 %v10246_v35  ;;  %v11671_v20 = vrot.slane %v3211_v28, 5  ;;  %v3272_v35 = vshrl.u32 %v11593_v14, 16  ;;  %v3263_v14 = vrot.slane %v3261_v61, 5  ;;  %v3372_v28 = vrot.slane %v3370_v53, 4 }
 0x1cf   :  { %3576 = vmatprep.subr.bf16.mxu0 %v13881_v0  ;;  %v3295_v61 = vshll.u32 %v11692_v25, 16  ;;  %v3379_v53 = vshll.u32 %v11710_v39, 16  ;;  %v11729_v17 = vrot.slane %v3337_v49, 5  ;;  %v3228_v49 = vsel %vm10692_vm12, %v11677_v57, %v11679_v48  ;;  %v10252_v57 = vld [vmem:[%s13869_s1 + $0x290] sm:$0xff]  }
 0x1d0   :  { %v3274_v45 = vrot.slane %v3272_v35, 4  ;;  %v3264_v26 = vor.u32 %v3263_v14, %v3260_v15  ;;  %v3365_v35 = vshll.u32 %v11706_v8, 16  ;;  %v3376_v43 = vor.u32 %v3375_v12, %v3372_v28 }
 0x1d1   :  { %v8859_v14 = vcombine.high %v3186_v59, %v3200_v32  ;;  %v11737_v41 = vrot.slane %v3379_v53, 5 }
 0x1d2   :  { %3577 = vmatpush1.bf16.msra.mxu0 %v10249_v58  ;;  %v3384_v58 = vshrl.u32 %v11659_v30, 16  ;;  %v3278_v13 = vor.u32 %v3277_v18, %v3274_v45  ;;  %v11723_v45 = vld [vmem:[#allocation2 + $0x20] sm:$0xee]  ;;  %v11725_v18 = vld [vmem:[#allocation2 + $0x30] sm:$0xee]  ;;  %v11733_v12 = vrot.slane %v3365_v35, 5  ;;  %v8858_v35 = vcombine.low %v3186_v59, %v3200_v32 }
 0x1d3   :  { %3944 = vmatprep.subr.bf16.mxu0 %v13881_v0  ;;  %v3311_v0 = vrot.slane %v3309_v38, 5  ;;  %v3725_v38 = vrot.slane %v11641_v31, 5  ;;  %v10253_v32 = vld [vmem:[%s13869_s1 + $0x298] sm:$0xff]  }
 0x1d4   :  { %v3386_v7 = vrot.slane %v3384_v58, 4  ;;  %v3279_v58 = vrot.slane %v3278_v13, 4  ;;  %v3721_v13 = vrot.slane %v11635_v37, 5  ;;  %v3733_v37 = vrot.slane %v11647_v3, 5 }
 0x1d5   :  { %3101 = vmatmul.mubr.bf16.gmra.mrb[20].mxu0 %v8814_v51  ;;  %v8818_v51 = vcombine.low %v11277_v34, %v11659_v30  ;;  %v3389_v34 = vrot.slane %v3387_v46, 5  ;;  %v3251_v30 = vrot.slane %v3250_v2, 4  ;;  %v3265_v2 = vrot.slane %v3264_v26, 4 }
 0x1d6   :  { %8836 = vmatprep.mubr.msk.bf16.mxu0 %vm848_vm13, %v8817_v29  ;;  %v11704_v29 = vld [vmem:[#allocation2 + $0x108] sm:$0x11]  ;;  %v3297_v46 = vrot.slane %v3295_v61, 5  ;;  %v11735_v26 = vrot.slane %v3376_v43, 4  ;;  %v8893_v61 = vrot.slane %v11725_v18, 9  ;;  %v14000_v43 = vmov 0  }
 0x1d7   :  { %v3351_v5 = vshll.u32 %v11704_v29, 16  ;;  %v3390_v15 = vor.u32 %v3389_v34, %v3386_v7  ;;  %v8892_v34 = vrot.slane %v11723_v45, 9  ;;  %v3675_v18 = vld [vmem:[#allocation2 + $0x60] sm:$0xee] }
 0x1d9   :  { %v11731_v28 = vrot.slane %v3351_v5, 5  ;;  %v11741_v7 = vrot.slane %v3390_v15, 4  ;;  %v10250_v5 = vld [vmem:[%s13869_s1 + $0x280] sm:$0xff]  }
 0x1dd   :  { %3109 = vmatmul.mubr.bf16.gmra.mrb[24].mxu0 %v8816_v24  ;;  %v3323_v24 = vshll.u32 %v11696_v4, 16 }
 0x1de   :  { %8837 = vmatprep.mubr.msk.bf16.mxu0 %vm848_vm13, %v8819_v63  ;;  %v3393_v63 = vshll.u32 %v11712_v36, 16 }
 0x1df   :  { %v11727_v27 = vrot.slane %v3323_v24, 5  ;;  %v10260_v24 = vld [vmem:[%s13871_s4 + $0x50] sm:$0xff]  }
 0x1e0   :  { %v11739_v1 = vrot.slane %v3393_v63, 5  ;;  %4877 = vmatpush1.bf16.msra.mxu1 %v10260_v24  ;;  %v10251_v63 = vld [vmem:[%s13869_s1 + $0x288] sm:$0xff]  }
 0x1e1   :  { %4878 = vmatprep.subr.bf16.mxu1 %v14000_v43 }
 0x1e5   :  { %3117 = vmatmul.mubr.bf16.gmra.mrb[28].mxu0 %v8818_v51  ;;  %v3214_v51 = vsel %vm10692_vm12, %v11669_v19, %v11671_v20  ;;  %v3242_v19 = vsel %vm10692_vm12, %v11320_v56, %v11685_v50  ;;  %v3256_v20 = vsel %vm10692_vm12, %v3251_v30, %v3255_v6  ;;  %v3270_v56 = vsel %vm10692_vm12, %v3265_v2, %v3269_v10  ;;  %v10254_v30 = vld [vmem:[%s13869_s1 + $0x2a0] sm:$0xff]  }
 0x1e6   :  { %8884 = vmatprep.mubr.msk.bf16.mxu0 %vm848_vm13, %v8859_v14  ;;  %v8861_v53 = vcombine.high %v3214_v51, %v3228_v49  ;;  %v8860_v48 = vcombine.low %v3214_v51, %v3228_v49  ;;  %v8863_v59 = vcombine.high %v3242_v19, %v3256_v20  ;;  %v3284_v50 = vsel %vm10692_vm12, %v3279_v58, %v3283_v9  ;;  %v10255_v14 = vld [vmem:[%s13869_s1 + $0x2a8] sm:$0xff]   ;;  %v10256_v9 = vld [vmem:[%s13869_s1 + $0x2b0] sm:$0xff]   ;;  %v10257_v51 = vld [vmem:[%s13869_s1 + $0x2b8] sm:$0xff]  }
 0x1e7   :  { %v8862_v6 = vcombine.low %v3242_v19, %v3256_v20  ;;  %v8865_v15 = vcombine.high %v3270_v56, %v3284_v50  ;;  %v3298_v2 = vsel %vm10692_vm12, %v11367_v16, %v3297_v46  ;;  %v3312_v10 = vsel %vm10692_vm12, %v11397_v54, %v3311_v0  ;;  %v10258_v54 = vld [vmem:[%s13869_s1 + $0x2c0] sm:$0xff]  }
 0x1e8   :  { %v8864_v58 = vcombine.low %v3270_v56, %v3284_v50  ;;  %v8867_v24 = vcombine.high %v3298_v2, %v3312_v10  ;;  %v3326_v0 = vsel %vm10692_vm12, %v11399_v42, %v11727_v27  ;;  %v3340_v16 = vsel %vm10692_vm12, %v11428_v40, %v11729_v17  ;;  %v10259_v27 = vld [vmem:[%s13869_s1 + $0x2c8] sm:$0xff]   ;;  %v3678_v56 = vld [vmem:[#allocation2 + $0x90] sm:$0xee] }
 0x1e9   :  { %v8866_v46 = vcombine.low %v3298_v2, %v3312_v10  ;;  %v8869_v49 = vcombine.high %v3326_v0, %v3340_v16  ;;  %v3354_v17 = vsel %vm10692_vm12, %v11430_v47, %v11731_v28  ;;  %v3368_v42 = vsel %vm10692_vm12, %v11453_v11, %v11733_v12  ;;  %v3673_v12 = vld [vmem:[#allocation2 + $0x40] sm:$0xee] }
 0x1ea   :  { %v8868_v40 = vcombine.low %v3326_v0, %v3340_v16  ;;  %v3396_v47 = vsel %vm10692_vm12, %v11741_v7, %v11739_v1  ;;  %v8870_v28 = vcombine.low %v3354_v17, %v3368_v42  ;;  %v8894_v7 = vrot.slane %v3673_v12, 9  ;;  %v3679_v10 = vld [vmem:[#allocation2 + $0xc0] sm:$0xee] }
 0x1eb   :  { %v3729_v19 = vrot.slane %v11644_v33, 5  ;;  %v3753_v0 = vrot.slane %v11692_v25, 5  ;;  %v3757_v16 = vrot.slane %v11694_v55, 5 }
 0x1ed   :  { %3591 = vmatmul.mubr.bf16.vlgmr.msra.gmra.mrb[0].mxu0 %v8858_v35  ;;  %v3382_v35 = vsel %vm10692_vm12, %v11735_v26, %v11737_v41  ;;  %v3726_v26 = vsel %vm11076_vm0, %v8893_v61, %v3725_v38  ;;  %v3730_v45 = vsel %vm11076_vm0, %v8894_v7, %v3729_v19  ;;  %v8896_v38 = vrot.slane %v3675_v18, 9  ;;  %v3686_v7 = vld [vmem:[#allocation2 + $0x130] sm:$0xee] }
 0x1ee   :  { %3945 = vmatpush1.bf16.msra.mxu0 %v10250_v5  ;;  %8885 = vmatprep.mubr.msk.bf16.mxu0 %vm848_vm13, %v8861_v53  ;;  %v8871_v5 = vcombine.high %v3354_v17, %v3368_v42  ;;  %v8873_v11 = vcombine.high %v3382_v35, %v3396_v47  ;;  %v3674_v53 = vld [vmem:[#allocation2 + $0x50] sm:$0xee]  ;;  %v8872_v41 = vcombine.low %v3382_v35, %v3396_v47  ;;  %v3683_v47 = vld [vmem:[#allocation2 + $0x100] sm:$0xee] }
 0x1ef   :  { %3946 = vmatprep.subr.bf16.mxu0 %v14000_v43  ;;  %v8895_v20 = vrot.slane %v3674_v53, 9  ;;  %v8904_v53 = vrot.slane %v3683_v47, 9 }
 0x1f1   :  { %v3734_v31 = vsel %vm11076_vm0, %v8895_v20, %v3733_v37 }
 0x1f2   :  { %3947 = vmatpush1.bf16.msra.mxu0 %v10251_v63  ;;  %v3722_v63 = vsel %vm11076_vm0, %v8892_v34, %v3721_v13  ;;  %v3676_v34 = vld [vmem:[#allocation2 + $0x70] sm:$0xee]  ;;  %v8931_v61 = vcombine.high %v3730_v45, %v3734_v31  ;;  %v8930_v50 = vcombine.low %v3730_v45, %v3734_v31  ;;  %v3777_v45 = vrot.slane %v11710_v39, 5  ;;  %v10261_v39 = vld [vmem:[%s13871_s4 + $0x58] sm:$0xff]  }
 0x1f3   :  { %3948 = vmatprep.subr.bf16.mxu0 %v14000_v43  ;;  %v8929_v1 = vcombine.high %v3722_v63, %v3726_v26  ;;  %v8928_v13 = vcombine.low %v3722_v63, %v3726_v26  ;;  %v8897_v33 = vrot.slane %v3676_v34, 9  ;;  %v3769_v63 = vrot.slane %v11704_v29, 5  ;;  %4879 = vmatpush1.bf16.msra.mxu1 %v10261_v39 }
 0x1f4   :  { %v3773_v26 = vrot.slane %v11706_v8, 5  ;;  %v8907_v29 = vrot.slane %v3686_v7, 9  ;;  %v3781_v31 = vrot.slane %v11712_v36, 5  ;;  %4880 = vmatprep.subr.bf16.mxu1 %v14000_v43  ;;  %v10262_v36 = vld [vmem:[%s13871_s4 + $0x60] sm:$0xff]  }
 0x1f5   :  { %3599 = vmatmul.mubr.bf16.gmra.mrb[4].mxu0 %v8860_v48  ;;  %v3741_v48 = vrot.slane %v11664_v60, 5 }
 0x1f6   :  { %3949 = vmatpush1.bf16.msra.mxu0 %v10252_v57  ;;  %8886 = vmatprep.mubr.msk.bf16.mxu0 %vm848_vm13, %v8863_v59  ;;  %v3737_v57 = vrot.slane %v11652_v44, 5  ;;  %v8899_v44 = vrot.slane %v3678_v56, 9  ;;  %v3782_v18 = vsel %vm11076_vm0, %v8907_v29, %v3781_v31  ;;  %v11947_v56 = vld [vmem:[%s13872_s2] ss:$0 sm:$0xff] }
 0x1f7   :  { %3950 = vmatprep.subr.bf16.mxu0 %v14000_v43  ;;  %v3742_v59 = vsel %vm11076_vm0, %v8897_v33, %v3741_v48  ;;  %4881 = vmatpush1.bf16.msra.mxu1 %v10262_v36  ;;  %v10265_v33 = vld [vmem:[%s13871_s4 + $0x78] sm:$0xff]   ;;  %v10266_v48 = vld [vmem:[%s13871_s4 + $0x80] sm:$0xff]  }
 0x1f8   :  { %v3738_v3 = vsel %vm11076_vm0, %v8896_v38, %v3737_v57  ;;  %4882 = vmatprep.subr.bf16.mxu1 %v14000_v43  ;;  %v10263_v38 = vld [vmem:[%s13871_s4 + $0x68] sm:$0xff]   ;;  %v10264_v57 = vld [vmem:[%s13871_s4 + $0x70] sm:$0xff]  }
 0x1fa   :  { %3951 = vmatpush1.bf16.msra.mxu0 %v10253_v32  ;;  %v3677_v32 = vld [vmem:[#allocation2 + $0x80] sm:$0xee] }
 0x1fb   :  { %3952 = vmatprep.subr.bf16.mxu0 %v14000_v43  ;;  %4883 = vmatpush1.bf16.msra.mxu1 %v10263_v38 }
 0x1fc   :  { %4884 = vmatprep.subr.bf16.mxu1 %v14000_v43 }
 0x1fd   :  { %3607 = vmatmul.mubr.bf16.gmra.mrb[8].mxu0 %v8862_v6  ;;  %v8898_v6 = vrot.slane %v3677_v32, 9  ;;  %v10269_v32 = vld [vmem:[%s13871_s4 + $0x98] sm:$0xff]  }
 0x1fe   :  { %8887 = vmatprep.mubr.msk.bf16.mxu0 %vm848_vm13, %v8865_v15  ;;  %3953 = vmatpush1.bf16.msra.mxu0 %v10254_v30  ;;  %v8933_v30 = vcombine.high %v3738_v3, %v3742_v59  ;;  %v3745_v15 = vrot.slane %v11681_v23, 5 }
 0x1ff   :  { %3954 = vmatprep.subr.bf16.mxu0 %v14000_v43  ;;  %4885 = vmatpush1.bf16.msra.mxu1 %v10264_v57 }
 0x200   :  { %v3746_v60 = vsel %vm11076_vm0, %v8898_v6, %v3745_v15  ;;  %4886 = vmatprep.subr.bf16.mxu1 %v14000_v43 }
 0x202   :  { %3955 = vmatpush1.bf16.msra.mxu0 %v10255_v14  ;;  %v3749_v14 = vrot.slane %v11683_v52, 5 }
 0x203   :  { %3956 = vmatprep.subr.bf16.mxu0 %v14000_v43  ;;  %4887 = vmatpush1.bf16.msra.mxu1 %v10265_v33 }
 0x204   :  { %v3750_v2 = vsel %vm11076_vm0, %v8899_v44, %v3749_v14  ;;  %4888 = vmatprep.subr.bf16.mxu1 %v14000_v43  ;;  %v4439_v44 = vld [vmem:[#allocation2] sm:$0xff] }
 0x205   :  { %3615 = vmatmul.mubr.bf16.gmra.mrb[12].mxu0 %v8864_v58  ;;  %v8932_v58 = vcombine.low %v3738_v3, %v3742_v59  ;;  %v10267_v3 = vld [vmem:[%s13871_s4 + $0x88] sm:$0xff]   ;;  %v10268_v59 = vld [vmem:[%s13871_s4 + $0x90] sm:$0xff]  }
 0x206   :  { %8888 = vmatprep.mubr.msk.bf16.mxu0 %vm848_vm13, %v8867_v24  ;;  %3957 = vmatpush1.bf16.msra.mxu0 %v10256_v9  ;;  %v3680_v9 = vld [vmem:[#allocation2 + $0xd0] sm:$0xee]  ;;  %v8935_v24 = vcombine.high %v3746_v60, %v3750_v2 }
 0x207   :  { %3958 = vmatprep.subr.bf16.mxu0 %v14000_v43  ;;  %v8901_v23 = vrot.slane %v3680_v9, 9  ;;  %4889 = vmatpush1.bf16.msra.mxu1 %v10266_v48  ;;  %v4492_v9 = vshrl.u32 %v4439_v44, 16 }
 0x208   :  { %4890 = vmatprep.subr.bf16.mxu1 %v14000_v43 }
 0x20a   :  { %3959 = vmatpush1.bf16.msra.mxu0 %v10257_v51  ;;  %v8900_v51 = vrot.slane %v3679_v10, 9 }
 0x20b   :  { %3960 = vmatprep.subr.bf16.mxu0 %v14000_v43  ;;  %4891 = vmatpush1.bf16.msra.mxu1 %v10267_v3 }
 0x20c   :  { %v3754_v52 = vsel %vm11076_vm0, %v8900_v51, %v3753_v0  ;;  %4892 = vmatprep.subr.bf16.mxu1 %v14000_v43 }
 0x20d   :  { %3623 = vmatmul.mubr.bf16.gmra.mrb[16].mxu0 %v8866_v46  ;;  %v3681_v46 = vld [vmem:[#allocation2 + $0xe0] sm:$0xee] }
 0x20e   :  { %8889 = vmatprep.mubr.msk.bf16.mxu0 %vm848_vm13, %v8869_v49  ;;  %3961 = vmatpush1.bf16.msra.mxu0 %v10258_v54  ;;  %v3758_v54 = vsel %vm11076_vm0, %v8901_v23, %v3757_v16  ;;  %v3682_v49 = vld [vmem:[#allocation2 + $0xf0] sm:$0xee]  ;;  %v8902_v42 = vrot.slane %v3681_v46, 9  ;;  %v4447_v16 = vld [vmem:[#allocation2 + $0xa0] sm:$0xff] }
 0x20f   :  { %3962 = vmatprep.subr.bf16.mxu0 %v14000_v43  ;;  %v8937_v17 = vcombine.high %v3754_v52, %v3758_v54  ;;  %v8903_v25 = vrot.slane %v3682_v49, 9  ;;  %4893 = vmatpush1.bf16.msra.mxu1 %v10268_v59  ;;  %v11969_v59 = vld [vmem:[#allocation2 + $0xa8] sm:$0x11] }
 0x210   :  { %4894 = vmatprep.subr.bf16.mxu1 %v14000_v43 }
 0x212   :  { %3963 = vmatpush1.bf16.msra.mxu0 %v10259_v27  ;;  %v8934_v27 = vcombine.low %v3746_v60, %v3750_v2 }
 0x213   :  { %4895 = vmatpush1.bf16.msra.mxu1 %v10269_v32 }
 0x214   :  { %5129 = vmatprep.subr.bf16.mxu1 %v14000_v43 }
 0x215   :  { %3631 = vmatmul.mubr.bf16.gmra.mrb[20].mxu0 %v8868_v40  ;;  %v3761_v40 = vrot.slane %v11696_v4, 5 }
 0x216   :  { %8890 = vmatprep.mubr.msk.bf16.mxu0 %vm848_vm13, %v8871_v5  ;;  %v3765_v5 = vrot.slane %v11698_v22, 5  ;;  %v3770_v22 = vsel %vm11076_vm0, %v8904_v53, %v3769_v63  ;;  %v4343_v53 = vld [vmem:[#allocation2 + $0x10] sm:$0xf]  ;;  %v4346_v63 = vld [vmem:[#allocation2 + $0x18] sm:$0x1] }
 0x217   :  { %v3762_v55 = vsel %vm11076_vm0, %v8902_v42, %v3761_v40 }
 0x218   :  { %v3766_v35 = vsel %vm11076_vm0, %v8903_v25, %v3765_v5  ;;  %v4604_v25 = vshrl.u32 %v4447_v16, 16  ;;  %v4607_v5 = vshll.u32 %v4447_v16, 16 }
 0x219   :  { %v8939_v12 = vcombine.high %v3762_v55, %v3766_v35  ;;  %v8938_v19 = vcombine.low %v3762_v55, %v3766_v35 }
 0x21a   :  { %v4606_v31 = vrot.slane %v4604_v25, 4 }
 0x21d   :  { %3639 = vmatmul.mubr.bf16.gmra.mrb[24].mxu0 %v8870_v28  ;;  %v3684_v28 = vld [vmem:[#allocation2 + $0x110] sm:$0xee] }
 0x21e   :  { %8891 = vmatprep.mubr.msk.bf16.mxu0 %vm848_vm13, %v8873_v11  ;;  %v8936_v11 = vcombine.low %v3754_v52, %v3758_v54  ;;  %v8905_v4 = vrot.slane %v3684_v28, 9  ;;  %v4494_v54 = vrot.slane %v4492_v9, 4 }
 0x225   :  { %3647 = vmatmul.mubr.bf16.gmra.mrb[28].mxu0 %v8872_v41  ;;  %v3774_v41 = vsel %vm11076_vm0, %v8905_v4, %v3773_v26 }
 0x226   :  { %8954 = vmatprep.mubr.msk.bf16.mxu0 %vm848_vm13, %v8929_v1  ;;  %v3685_v1 = vld [vmem:[#allocation2 + $0x120] sm:$0xee]  ;;  %v8941_v20 = vcombine.high %v3770_v22, %v3774_v41  ;;  %v8940_v34 = vcombine.low %v3770_v22, %v3774_v41 }
 0x227   :  { %v8906_v37 = vrot.slane %v3685_v1, 9 }
 0x229   :  { %v3778_v8 = vsel %vm11076_vm0, %v8906_v37, %v3777_v45  ;;  %v4349_v37 = vld [vmem:[#allocation2 + $0x20] sm:$0xf]  ;;  %v4352_v45 = vld [vmem:[#allocation2 + $0x28] sm:$0x1] }
 0x22d   :  { %3977 = vmatmul.mubr.bf16.vlgmr.msra.gmra.mrb[0].mxu0 %v8928_v13  ;;  %v8943_v13 = vcombine.high %v3778_v8, %v3782_v18 }
 0x22e   :  { %8955 = vmatprep.mubr.msk.bf16.mxu0 %vm848_vm13, %v8931_v61  ;;  %v8942_v61 = vcombine.low %v3778_v8, %v3782_v18  ;;  %v4609_v8 = vrot.slane %v4607_v5, 5 }
 0x235   :  { %3985 = vmatmul.mubr.bf16.gmra.mrb[4].mxu0 %v8930_v50 }
 0x236   :  { %8956 = vmatprep.mubr.msk.bf16.mxu0 %vm848_vm13, %v8933_v30  ;;  %v11952_v30 = vld [vmem:[%s13873_s3] ss:$0 sm:$0xff] }
 0x23d   :  { %3993 = vmatmul.mubr.bf16.gmra.mrb[8].mxu0 %v8932_v58  ;;  %v4495_v58 = vshll.u32 %v4439_v44, 16  ;;  %v4613_v44 = vshll.u32 %v11969_v59, 16 }
 0x23e   :  { %8957 = vmatprep.mubr.msk.bf16.mxu0 %vm848_vm13, %v8935_v24 }
 0x23f   :  { %v4497_v46 = vrot.slane %v4495_v58, 5 }
 0x241   :  { %v4498_v22 = vor.u32 %v4497_v46, %v4494_v54  ;;  %v4355_v54 = vld [vmem:[#allocation2 + $0x30] sm:$0xf]  ;;  %v4358_v46 = vld [vmem:[#allocation2 + $0x38] sm:$0x1] }
 0x243   :  { %v4499_v48 = vrot.slane %v4498_v22, 4 }
 0x245   :  { %4001 = vmatmul.mubr.bf16.gmra.mrb[12].mxu0 %v8934_v27 }
 0x246   :  { %8958 = vmatprep.mubr.msk.bf16.mxu0 %vm848_vm13, %v8937_v17 }
 0x24d   :  { %4009 = vmatmul.mubr.bf16.gmra.mrb[16].mxu0 %v8936_v11 }
 0x24e   :  { %8959 = vmatprep.mubr.msk.bf16.mxu0 %vm848_vm13, %v8939_v12  ;;  %v11960_v12 = vld [vmem:[#allocation2 + $0x8] sm:$0x11] }
 0x24f   :  { %v4501_v41 = vshll.u32 %v11960_v12, 16  ;;  %v5276_v16 = vrot.slane %v11960_v12, 5 }
 0x251   :  { %v4503_v3 = vrot.slane %v4501_v41, 5 }
 0x255   :  { %4017 = vmatmul.mubr.bf16.gmra.mrb[20].mxu0 %v8938_v19 }
 0x256   :  { %8960 = vmatprep.mubr.msk.bf16.mxu0 %vm848_vm13, %v8941_v20 }
 0x25d   :  { %4025 = vmatmul.mubr.bf16.gmra.mrb[24].mxu0 %v8940_v34 }
 0x25e   :  { %8961 = vmatprep.mubr.msk.bf16.mxu0 %vm848_vm13, %v8943_v13 }
 0x265   :  { %4033 = vmatmul.mubr.bf16.gmra.mrb[28].mxu0 %v8942_v61 }
 0x300   :  { %v3978_v50 = vpop.f32.mrb[0].mxu0 }
 0x301   :  { %v4064_v6 = vmul.f32 %v11947_v56, %v3978_v50  ;;  %v3980_v15 = vpop.f32.mrb[1].mxu0 }
 0x302   :  { %v3981_v14 = vpop.f32.mrb[2].mxu0 }
 0x303   :  { %v4087_v60 = vadd.f32 %v11952_v30, %v4064_v6  ;;  %v4065_v2 = vmul.f32 %v11947_v56, %v3981_v14  ;;  %v3983_v10 = vpop.f32.mrb[3].mxu0 }
 0x305   :  { %v4103_v24 = vmax.f32 %v4087_v60, 0.0  ;;  %v4088_v51 = vadd.f32 %v11952_v30, %v4065_v2 }
 0x307   :  { %v9516_v0 = vpack.c.bf16 %v4103_v24, %v4103_v24  ;;  %v4104_v23 = vmax.f32 %v4088_v51, 0.0  ;;  %v4610_v24 = vor.u32 %v4609_v8, %v4606_v31 }
 0x308   :  { %v3986_v52 = vpop.f32.mrb[4].mxu0 }
 0x309   :  { %v4184_v49 = vshrl.u32 %v9516_v0, 16  ;;  %v9517_v27 = vpack.c.bf16 %v4104_v23, %v4104_v23  ;;  %v4066_v17 = vmul.f32 %v11947_v56, %v3986_v52  ;;  %v3988_v42 = vpop.f32.mrb[5].mxu0  ;;  %v4187_v35 = vshll.u32 %v9516_v0, 16  ;;  %v5226_v52 = vld [vmem:[#allocation2] sm:$0xee] }
 0x30a   :  { %v3989_v40 = vpop.f32.mrb[6].mxu0  ;;  %v4615_v42 = vrot.slane %v4613_v44, 5 }
 0x30b   :  { %v4186_v55 = vrot.slane %v4184_v49, 7  ;;  %v4192_v47 = vshrl.u32 %v9517_v27, 16  ;;  %v4089_v28 = vadd.f32 %v11952_v30, %v4066_v17  ;;  %v3991_v11 = vpop.f32.mrb[7].mxu0  ;;  %v4195_v4 = vshll.u32 %v9517_v27, 16 }
 0x30c   :  { %v4067_v26 = vmul.f32 %v11947_v56, %v3989_v40  ;;  %v11983_v17 = vsel %vm10692_vm12, %v4499_v48, %v4503_v3 }
 0x30d   :  { %v4189_v1 = vor.u32 %v4187_v35, %v4186_v55  ;;  %v4190_v7 = vrot.slane %v4186_v55, 4  ;;  %v4194_v19 = vrot.slane %v4192_v47, 7  ;;  %v4105_v20 = vmax.f32 %v4089_v28, 0.0  ;;  %v4361_v35 = vld [vmem:[#allocation2 + $0x40] sm:$0xf] }
 0x30e   :  { %v4090_v29 = vadd.f32 %v11952_v30, %v4067_v26  ;;  %v4364_v47 = vld [vmem:[#allocation2 + $0x48] sm:$0x1] }
 0x30f   :  { %v4344_v34 = vsel %vm10644_vm10, %v4189_v1, %v4343_v53  ;;  %v4347_v61 = vsel %vm10659_vm11, %v4190_v7, %v4346_v63  ;;  %v4197_v39 = vor.u32 %v4195_v4, %v4194_v19  ;;  %v4198_v36 = vrot.slane %v4194_v19, 4 }
 0x310   :  { %4345 = vst [vmem:[#allocation2 + $0x10] sm:$0xf] %v4344_v34  ;;  %4348 = vst [vmem:[#allocation2 + $0x18] sm:$0x1] %v4347_v61  ;;  %v9518_v38 = vpack.c.bf16 %v4105_v20, %v4105_v20  ;;  %v4106_v57 = vmax.f32 %v4090_v29, 0.0  ;;  %v3994_v33 = vpop.f32.mrb[8].mxu0 }
 0x311   :  { %v4350_v32 = vsel %vm10644_vm10, %v4197_v39, %v4349_v37  ;;  %v4353_v50 = vsel %vm10659_vm11, %v4198_v36, %v4352_v45  ;;  %v4068_v6 = vmul.f32 %v11947_v56, %v3994_v33  ;;  %v3996_v15 = vpop.f32.mrb[9].mxu0  ;;  %v4611_v53 = vrot.slane %v4610_v24, 4 }
 0x312   :  { %4351 = vst [vmem:[#allocation2 + $0x20] sm:$0xf] %v4350_v32  ;;  %4354 = vst [vmem:[#allocation2 + $0x28] sm:$0x1] %v4353_v50  ;;  %v4200_v14 = vshrl.u32 %v9518_v38, 16  ;;  %v9519_v60 = vpack.c.bf16 %v4106_v57, %v4106_v57  ;;  %v3997_v2 = vpop.f32.mrb[10].mxu0 }
 0x313   :  { %v4091_v10 = vadd.f32 %v11952_v30, %v4068_v6  ;;  %v4069_v9 = vmul.f32 %v11947_v56, %v3997_v2  ;;  %v3999_v58 = vpop.f32.mrb[11].mxu0  ;;  %v4203_v0 = vshll.u32 %v9518_v38, 16  ;;  %v9068_v63 = vrot.slane %v5226_v52, 9  ;;  %v4367_v38 = vld [vmem:[#allocation2 + $0x50] sm:$0xf] }
 0x314   :  { %v4202_v51 = vrot.slane %v4200_v14, 7  ;;  %v4208_v23 = vshrl.u32 %v9519_v60, 16  ;;  %v4211_v55 = vshll.u32 %v9519_v60, 16  ;;  %v4370_v32 = vld [vmem:[#allocation2 + $0x58] sm:$0x1] }
 0x315   :  { %v4107_v49 = vmax.f32 %v4091_v10, 0.0  ;;  %v4092_v27 = vadd.f32 %v11952_v30, %v4069_v9  ;;  %v4373_v9 = vld [vmem:[#allocation2 + $0x60] sm:$0xf]  ;;  %v4376_v58 = vld [vmem:[#allocation2 + $0x68] sm:$0x1]  ;;  %v12012_v52 = vsel %vm11076_vm0, %v9068_v63, %v5276_v16 }
 0x316   :  { %v4205_v40 = vor.u32 %v4203_v0, %v4202_v51  ;;  %v4206_v25 = vrot.slane %v4202_v51, 4  ;;  %v4210_v5 = vrot.slane %v4208_v23, 7  ;;  %v12008_v23 = vsel %vm10692_vm12, %v4611_v53, %v4615_v42 }
 0x317   :  { %v9520_v28 = vpack.c.bf16 %v4107_v49, %v4107_v49  ;;  %v4108_v11 = vmax.f32 %v4092_v27, 0.0  ;;  %v11985_v12 = vld [vmem:[#allocation2 + $0x10] sm:$0xff]  ;;  %v11992_v29 = vld [vmem:[#allocation2 + $0x18] sm:$0x11] }
 0x318   :  { %v4356_v4 = vsel %vm10644_vm10, %v4205_v40, %v4355_v54  ;;  %v4359_v26 = vsel %vm10659_vm11, %v4206_v25, %v4358_v46  ;;  %v4213_v22 = vor.u32 %v4211_v55, %v4210_v5  ;;  %v4214_v41 = vrot.slane %v4210_v5, 4  ;;  %v4002_v1 = vpop.f32.mrb[12].mxu0 }
 0x319   :  { %4357 = vst [vmem:[#allocation2 + $0x30] sm:$0xf] %v4356_v4  ;;  %4360 = vst [vmem:[#allocation2 + $0x38] sm:$0x1] %v4359_v26  ;;  %v4216_v7 = vshrl.u32 %v9520_v28, 16  ;;  %v4219_v19 = vshll.u32 %v9520_v28, 16  ;;  %v9521_v20 = vpack.c.bf16 %v4108_v11, %v4108_v11  ;;  %v4070_v37 = vmul.f32 %v11947_v56, %v4002_v1 }
 0x31a   :  { %v4004_v45 = vpop.f32.mrb[13].mxu0  ;;  %v4362_v31 = vsel %vm10644_vm10, %v4213_v22, %v4361_v35  ;;  %v4365_v8 = vsel %vm10659_vm11, %v4214_v41, %v4364_v47  ;;  %v4506_v61 = vshrl.u32 %v11985_v12, 16  ;;  %v4509_v39 = vshll.u32 %v11985_v12, 16  ;;  %v12004_v0 = vld [vmem:[#allocation2 + $0x20] sm:$0xff]  ;;  %v12026_v41 = vld [vmem:[#allocation2 + $0x28] sm:$0x11] }
 0x31b   :  { %v4005_v34 = vpop.f32.mrb[14].mxu0  ;;  %4363 = vst [vmem:[#allocation2 + $0x40] sm:$0xf] %v4362_v31  ;;  %4366 = vst [vmem:[#allocation2 + $0x48] sm:$0x1] %v4365_v8  ;;  %v4218_v36 = vrot.slane %v4216_v7, 7  ;;  %v4093_v48 = vadd.f32 %v11952_v30, %v4070_v37 }
 0x31c   :  { %v4224_v57 = vshrl.u32 %v9521_v20, 16  ;;  %v4227_v33 = vshll.u32 %v9521_v20, 16  ;;  %v4007_v3 = vpop.f32.mrb[15].mxu0  ;;  %v4071_v50 = vmul.f32 %v11947_v56, %v4005_v34  ;;  %v4508_v6 = vrot.slane %v4506_v61, 4  ;;  %v10270_v45 = vld [vmem:[%s13871_s4] sm:$0xff]  }
 0x31d   :  { %v4511_v15 = vrot.slane %v4509_v39, 5  ;;  %v4515_v44 = vshll.u32 %v11992_v29, 16  ;;  %v4221_v14 = vor.u32 %v4219_v19, %v4218_v36  ;;  %v4222_v60 = vrot.slane %v4218_v36, 4  ;;  %v4379_v34 = vld [vmem:[#allocation2 + $0x70] sm:$0xf] }
 0x31e   :  { %v4226_v2 = vrot.slane %v4224_v57, 7  ;;  %v4109_v10 = vmax.f32 %v4093_v48, 0.0  ;;  %v4094_v24 = vadd.f32 %v11952_v30, %v4071_v50  ;;  %v4520_v11 = vshrl.u32 %v12004_v0, 16 }
 0x31f   :  { %v4512_v51 = vor.u32 %v4511_v15, %v4508_v6  ;;  %v4368_v54 = vsel %vm10644_vm10, %v4221_v14, %v4367_v38  ;;  %v4371_v46 = vsel %vm10659_vm11, %v4222_v60, %v4370_v32  ;;  %v4517_v42 = vrot.slane %v4515_v44, 5  ;;  %v4382_v38 = vld [vmem:[#allocation2 + $0x78] sm:$0x1]  ;;  %v4385_v6 = vld [vmem:[#allocation2 + $0x80] sm:$0xf] }
 0x320   :  { %v4229_v49 = vor.u32 %v4227_v33, %v4226_v2  ;;  %v4230_v27 = vrot.slane %v4226_v2, 4  ;;  %4369 = vst [vmem:[#allocation2 + $0x50] sm:$0xf] %v4368_v54  ;;  %4372 = vst [vmem:[#allocation2 + $0x58] sm:$0x1] %v4371_v46  ;;  %v9522_v40 = vpack.c.bf16 %v4109_v10, %v4109_v10  ;;  %v4110_v25 = vmax.f32 %v4094_v24, 0.0 }
 0x321   :  { %v4010_v5 = vpop.f32.mrb[16].mxu0  ;;  %v4513_v55 = vrot.slane %v4512_v51, 4  ;;  %v12035_v31 = vld [vmem:[#allocation2 + $0x30] sm:$0xff]  ;;  %v4522_v36 = vrot.slane %v4520_v11, 4  ;;  %v4523_v48 = vshll.u32 %v12004_v0, 16 }
 0x322   :  { %v4374_v35 = vsel %vm10644_vm10, %v4229_v49, %v4373_v9  ;;  %v4377_v16 = vsel %vm10659_vm11, %v4230_v27, %v4376_v58  ;;  %v4072_v47 = vmul.f32 %v11947_v56, %v4010_v5  ;;  %v4012_v28 = vpop.f32.mrb[17].mxu0  ;;  %v4232_v53 = vshrl.u32 %v9522_v40, 16  ;;  %v4388_v44 = vld [vmem:[#allocation2 + $0x88] sm:$0x1] }
 0x323   :  { %4375 = vst [vmem:[#allocation2 + $0x60] sm:$0xf] %v4374_v35  ;;  %4378 = vst [vmem:[#allocation2 + $0x68] sm:$0x1] %v4377_v16  ;;  %v4235_v63 = vshll.u32 %v9522_v40, 16  ;;  %v9523_v4 = vpack.c.bf16 %v4110_v25, %v4110_v25  ;;  %v4013_v26 = vpop.f32.mrb[18].mxu0  ;;  %v4518_v22 = vsel %vm10692_vm12, %v4513_v55, %v4517_v42 }
 0x324   :  { %v4095_v1 = vadd.f32 %v11952_v30, %v4072_v47  ;;  %v4073_v7 = vmul.f32 %v11947_v56, %v4013_v26  ;;  %v4015_v19 = vpop.f32.mrb[19].mxu0  ;;  %v9000_v20 = vcombine.low %v11983_v17, %v4518_v22  ;;  %v9001_v37 = vcombine.high %v11983_v17, %v4518_v22  ;;  %v10271_v9 = vld [vmem:[%s13871_s4 + $0x8] sm:$0xff]   ;;  %v12051_v55 = vld [vmem:[#allocation2 + $0x38] sm:$0x11]  ;;  %v4391_v16 = vld [vmem:[#allocation2 + $0xb0] sm:$0xf] }
 0x325   :  { %v4234_v8 = vrot.slane %v4232_v53, 7  ;;  %v4240_v61 = vshrl.u32 %v9523_v4, 16  ;;  %v4243_v39 = vshll.u32 %v9523_v4, 16  ;;  %v4529_v17 = vshll.u32 %v12026_v41, 16 }
 0x326   :  { %v4111_v57 = vmax.f32 %v4095_v1, 0.0  ;;  %v4096_v33 = vadd.f32 %v11952_v30, %v4073_v7  ;;  %9026 = vmatprep.mubr.msk.bf16.mxu1 %vm848_vm13, %v9001_v37  ;;  %v4534_v15 = vshrl.u32 %v12035_v31, 16  ;;  %v4525_v2 = vrot.slane %v4523_v48, 5  ;;  %v10272_v1 = vld [vmem:[%s13871_s4 + $0x10] sm:$0xff]   ;;  %v4394_v7 = vld [vmem:[#allocation2 + $0xb8] sm:$0x1] }
 0x327   :  { %v4237_v3 = vor.u32 %v4235_v63, %v4234_v8  ;;  %v4238_v32 = vrot.slane %v4234_v8, 4  ;;  %v4242_v50 = vrot.slane %v4240_v61, 7  ;;  %4909 = vmatmul.mubr.bf16.vlgmr.msra.gmra.mrb[0].mxu1 %v9000_v20  ;;  %v4531_v10 = vrot.slane %v4529_v17, 5 }
 0x328   :  { %v9524_v14 = vpack.c.bf16 %v4111_v57, %v4111_v57  ;;  %v4112_v60 = vmax.f32 %v4096_v33, 0.0  ;;  %5130 = vmatpush1.bf16.msra.mxu1 %v10270_v45  ;;  %v4018_v46 = vpop.f32.mrb[20].mxu0  ;;  %v4526_v28 = vor.u32 %v4525_v2, %v4522_v36  ;;  %v4536_v11 = vrot.slane %v4534_v15, 4  ;;  %v12065_v36 = vld [vmem:[#allocation2 + $0x40] sm:$0xff]  ;;  %v4400_v57 = vld [vmem:[#allocation2 + $0xc8] sm:$0x1] }
 0x329   :  { %v4380_v58 = vsel %vm10644_vm10, %v4237_v3, %v4379_v34  ;;  %v4383_v24 = vsel %vm10659_vm11, %v4238_v32, %v4382_v38  ;;  %v4245_v51 = vor.u32 %v4243_v39, %v4242_v50  ;;  %v4246_v54 = vrot.slane %v4242_v50, 4  ;;  %5131 = vmatprep.subr.bf16.mxu1 %v14000_v43  ;;  %v4020_v5 = vpop.f32.mrb[21].mxu0  ;;  %v4397_v38 = vld [vmem:[#allocation2 + $0xc0] sm:$0xf] }
 0x32a   :  { %4381 = vst [vmem:[#allocation2 + $0x70] sm:$0xf] %v4380_v58  ;;  %4384 = vst [vmem:[#allocation2 + $0x78] sm:$0x1] %v4383_v24  ;;  %v4248_v49 = vshrl.u32 %v9524_v14, 16  ;;  %v4251_v27 = vshll.u32 %v9524_v14, 16  ;;  %v9525_v40 = vpack.c.bf16 %v4112_v60, %v4112_v60  ;;  %v4074_v25 = vmul.f32 %v11947_v56, %v4018_v46 }
 0x32b   :  { %v4386_v42 = vsel %vm10644_vm10, %v4245_v51, %v4385_v6  ;;  %v4389_v35 = vsel %vm10659_vm11, %v4246_v54, %v4388_v44  ;;  %v4021_v47 = vpop.f32.mrb[22].mxu0  ;;  %v4527_v20 = vrot.slane %v4526_v28, 4  ;;  %v4537_v37 = vshll.u32 %v12035_v31, 16  ;;  %v10273_v44 = vld [vmem:[%s13871_s4 + $0x18] sm:$0xff]  }
 0x32c   :  { %4387 = vst [vmem:[#allocation2 + $0x80] sm:$0xf] %v4386_v42  ;;  %4390 = vst [vmem:[#allocation2 + $0x88] sm:$0x1] %v4389_v35  ;;  %v4250_v53 = vrot.slane %v4248_v49, 7  ;;  %v4256_v63 = vshrl.u32 %v9525_v40, 16  ;;  %v4097_v26 = vadd.f32 %v11952_v30, %v4074_v25  ;;  %5132 = vmatpush1.bf16.msra.mxu1 %v10271_v9  ;;  %v4075_v19 = vmul.f32 %v11947_v56, %v4021_v47 }
 0x32d   :  { %v4259_v4 = vshll.u32 %v9525_v40, 16  ;;  %v4023_v22 = vpop.f32.mrb[23].mxu0  ;;  %v4543_v45 = vshll.u32 %v12051_v55, 16  ;;  %5133 = vmatprep.subr.bf16.mxu1 %v14000_v43  ;;  %v12070_v48 = vsel %vm10692_vm12, %v4527_v20, %v4531_v10  ;;  %v4539_v17 = vrot.slane %v4537_v37, 5 }
 0x32e   :  { %v4253_v8 = vor.u32 %v4251_v27, %v4250_v53  ;;  %v4254_v34 = vrot.slane %v4250_v53, 4  ;;  %v4258_v61 = vrot.slane %v4256_v63, 7  ;;  %v4113_v39 = vmax.f32 %v4097_v26, 0.0  ;;  %v12094_v22 = vld [vmem:[#allocation2 + $0x50] sm:$0xff] }
 0x32f   :  { %v4098_v33 = vadd.f32 %v11952_v30, %v4075_v19  ;;  %v4545_v3 = vrot.slane %v4543_v45, 5  ;;  %v4540_v2 = vor.u32 %v4539_v17, %v4536_v11  ;;  %v4548_v9 = vshrl.u32 %v12065_v36, 16  ;;  %v10274_v11 = vld [vmem:[%s13871_s4 + $0x20] sm:$0xff]   ;;  %v4406_v19 = vld [vmem:[#allocation2 + $0xd8] sm:$0x1] }
 0x330   :  { %v4392_v32 = vsel %vm10644_vm10, %v4253_v8, %v4391_v16  ;;  %v4395_v50 = vsel %vm10659_vm11, %v4254_v34, %v4394_v7  ;;  %v4261_v6 = vor.u32 %v4259_v4, %v4258_v61  ;;  %v4262_v15 = vrot.slane %v4258_v61, 4  ;;  %5134 = vmatpush1.bf16.msra.mxu1 %v10272_v1  ;;  %v4026_v10 = vpop.f32.mrb[24].mxu0  ;;  %v12096_v1 = vld [vmem:[#allocation2 + $0x48] sm:$0x11]  ;;  %v4403_v7 = vld [vmem:[#allocation2 + $0xd0] sm:$0xf] }
 0x331   :  { %4393 = vst [vmem:[#allocation2 + $0xb0] sm:$0xf] %v4392_v32  ;;  %4396 = vst [vmem:[#allocation2 + $0xb8] sm:$0x1] %v4395_v50  ;;  %v9526_v14 = vpack.c.bf16 %v4113_v39, %v4113_v39  ;;  %v4114_v60 = vmax.f32 %v4098_v33, 0.0  ;;  %5135 = vmatprep.subr.bf16.mxu1 %v14000_v43  ;;  %v4076_v51 = vmul.f32 %v11947_v56, %v4026_v10  ;;  %v4028_v54 = vpop.f32.mrb[25].mxu0 }
 0x332   :  { %v4398_v58 = vsel %vm10644_vm10, %v4261_v6, %v4397_v38  ;;  %v4401_v24 = vsel %vm10659_vm11, %v4262_v15, %v4400_v57  ;;  %v4551_v46 = vshll.u32 %v12065_v36, 16  ;;  %v4541_v25 = vrot.slane %v4540_v2, 4  ;;  %v4029_v5 = vpop.f32.mrb[26].mxu0  ;;  %v4409_v38 = vld [vmem:[#allocation2 + $0xe0] sm:$0xf] }
 0x333   :  { %4399 = vst [vmem:[#allocation2 + $0xc0] sm:$0xf] %v4398_v58  ;;  %4402 = vst [vmem:[#allocation2 + $0xc8] sm:$0x1] %v4401_v24  ;;  %v4264_v49 = vshrl.u32 %v9526_v14, 16  ;;  %v4267_v27 = vshll.u32 %v9526_v14, 16  ;;  %v9527_v40 = vpack.c.bf16 %v4114_v60, %v4114_v60  ;;  %v4099_v42 = vadd.f32 %v11952_v30, %v4076_v51 }
 0x334   :  { %v4077_v35 = vmul.f32 %v11947_v56, %v4029_v5  ;;  %v4031_v16 = vpop.f32.mrb[27].mxu0  ;;  %v4550_v47 = vrot.slane %v4548_v9, 4  ;;  %v4553_v28 = vrot.slane %v4551_v46, 5  ;;  %5136 = vmatpush1.bf16.msra.mxu1 %v10273_v44  ;;  %v4546_v26 = vsel %vm10692_vm12, %v4541_v25, %v4545_v3  ;;  %v4412_v33 = vld [vmem:[#allocation2 + $0xe8] sm:$0x1]  ;;  %v10276_v25 = vld [vmem:[%s13871_s4 + $0x30] sm:$0xff]  }
 0x335   :  { %v4266_v53 = vrot.slane %v4264_v49, 7  ;;  %v4272_v63 = vshrl.u32 %v9527_v40, 16  ;;  %v4275_v4 = vshll.u32 %v9527_v40, 16  ;;  %5137 = vmatprep.subr.bf16.mxu1 %v14000_v43  ;;  %v9003_v20 = vcombine.high %v12070_v48, %v4546_v26  ;;  %v12113_v58 = vld [vmem:[#allocation2 + $0x58] sm:$0x11] }
 0x336   :  { %v9002_v37 = vcombine.low %v12070_v48, %v4546_v26  ;;  %v4115_v45 = vmax.f32 %v4099_v42, 0.0  ;;  %v4100_v8 = vadd.f32 %v11952_v30, %v4077_v35  ;;  %v4554_v57 = vor.u32 %v4553_v28, %v4550_v47  ;;  %v10275_v48 = vld [vmem:[%s13871_s4 + $0x28] sm:$0xff]   ;;  %v12123_v28 = vld [vmem:[#allocation2 + $0x60] sm:$0xff] }
 0x337   :  { %v4269_v34 = vor.u32 %v4267_v27, %v4266_v53  ;;  %v4270_v61 = vrot.slane %v4266_v53, 4  ;;  %v4274_v39 = vrot.slane %v4272_v63, 7  ;;  %9027 = vmatprep.mubr.msk.bf16.mxu1 %vm848_vm13, %v9003_v20  ;;  %v4557_v32 = vshll.u32 %v12096_v1, 16  ;;  %v4418_v53 = vld [vmem:[#allocation2 + $0xf8] sm:$0x1] }
 0x338   :  { %v9528_v17 = vpack.c.bf16 %v4115_v45, %v4115_v45  ;;  %v4116_v3 = vmax.f32 %v4100_v8, 0.0  ;;  %v4562_v50 = vshrl.u32 %v12094_v22, 16  ;;  %5138 = vmatpush1.bf16.msra.mxu1 %v10274_v11  ;;  %v4034_v60 = vpop.f32.mrb[28].mxu0  ;;  %v4555_v24 = vrot.slane %v4554_v57, 4  ;;  %v4415_v11 = vld [vmem:[#allocation2 + $0xf0] sm:$0xf] }
 0x339   :  { %v4404_v6 = vsel %vm10644_vm10, %v4269_v34, %v4403_v7  ;;  %v4407_v15 = vsel %vm10659_vm11, %v4270_v61, %v4406_v19  ;;  %v4277_v44 = vor.u32 %v4275_v4, %v4274_v39  ;;  %v4278_v14 = vrot.slane %v4274_v39, 4  ;;  %4917 = vmatmul.mubr.bf16.gmra.mrb[4].mxu1 %v9002_v37  ;;  %5139 = vmatprep.subr.bf16.mxu1 %v14000_v43  ;;  %v4036_v51 = vpop.f32.mrb[29].mxu0  ;;  %v4421_v45 = vld [vmem:[#allocation2 + $0x100] sm:$0xf]  ;;  %v4424_v34 = vld [vmem:[#allocation2 + $0x108] sm:$0x1] }
 0x33a   :  { %4405 = vst [vmem:[#allocation2 + $0xd0] sm:$0xf] %v4404_v6  ;;  %4408 = vst [vmem:[#allocation2 + $0xd8] sm:$0x1] %v4407_v15  ;;  %v4280_v2 = vshrl.u32 %v9528_v17, 16  ;;  %v4283_v10 = vshll.u32 %v9528_v17, 16  ;;  %v9529_v9 = vpack.c.bf16 %v4116_v3, %v4116_v3  ;;  %v4078_v26 = vmul.f32 %v11947_v56, %v4034_v60 }
 0x33b   :  { %v4410_v54 = vsel %vm10644_vm10, %v4277_v44, %v4409_v38  ;;  %v4413_v46 = vsel %vm10659_vm11, %v4278_v14, %v4412_v33  ;;  %v4559_v49 = vrot.slane %v4557_v32, 5  ;;  %v4564_v27 = vrot.slane %v4562_v50, 4  ;;  %v4037_v40 = vpop.f32.mrb[30].mxu0  ;;  %v12135_v57 = vld [vmem:[#allocation2 + $0x68] sm:$0x11]  ;;  %v12142_v50 = vld [vmem:[#allocation2 + $0x70] sm:$0xff] }
 0x33c   :  { %4411 = vst [vmem:[#allocation2 + $0xe0] sm:$0xf] %v4410_v54  ;;  %4414 = vst [vmem:[#allocation2 + $0xe8] sm:$0x1] %v4413_v46  ;;  %v4282_v5 = vrot.slane %v4280_v2, 7  ;;  %v4288_v42 = vshrl.u32 %v9529_v9, 16  ;;  %5140 = vmatpush1.bf16.msra.mxu1 %v10275_v48  ;;  %v4079_v7 = vmul.f32 %v11947_v56, %v4037_v40  ;;  %v4101_v39 = vadd.f32 %v11952_v30, %v4078_v26 }
 0x33d   :  { %v4291_v35 = vshll.u32 %v9529_v9, 16  ;;  %v4565_v16 = vshll.u32 %v12094_v22, 16  ;;  %v4039_v47 = vpop.f32.mrb[31].mxu0  ;;  %v12127_v63 = vsel %vm10692_vm12, %v4555_v24, %v4559_v49  ;;  %v4571_v4 = vshll.u32 %v12113_v58, 16  ;;  %5141 = vmatprep.subr.bf16.mxu1 %v14000_v43  ;;  %v10277_v48 = vld [vmem:[%s13871_s4 + $0x38] sm:$0xff]  }
 0x33e   :  { %v4285_v19 = vor.u32 %v4283_v10, %v4282_v5  ;;  %v4286_v20 = vrot.slane %v4282_v5, 4  ;;  %v4290_v37 = vrot.slane %v4288_v42, 7  ;;  %v4102_v38 = vadd.f32 %v11952_v30, %v4079_v7  ;;  %v12147_v44 = vld [vmem:[#allocation2 + $0x78] sm:$0x11]  ;;  %v10278_v5 = vld [vmem:[%s13871_s4 + $0x40] sm:$0xff]  }
 0x33f   :  { %v4567_v8 = vrot.slane %v4565_v16, 5  ;;  %v4573_v61 = vrot.slane %v4571_v4, 5  ;;  %v4576_v33 = vshrl.u32 %v12123_v28, 16  ;;  %v4117_v6 = vmax.f32 %v4101_v39, 0.0  ;;  %v4427_v26 = vld [vmem:[#allocation2 + $0x110] sm:$0xf] }
 0x340   :  { %v4416_v56 = vsel %vm10644_vm10, %v4285_v19, %v4415_v11  ;;  %v4419_v17 = vsel %vm10659_vm11, %v4286_v20, %v4418_v53  ;;  %v4293_v3 = vor.u32 %v4291_v35, %v4290_v37  ;;  %v4294_v32 = vrot.slane %v4290_v37, 4  ;;  %5142 = vmatpush1.bf16.msra.mxu1 %v10276_v25  ;;  %v12164_v11 = vld [vmem:[#allocation2 + $0xb0] sm:$0xff]  ;;  %v4430_v7 = vld [vmem:[#allocation2 + $0x118] sm:$0x1]  ;;  %v4433_v20 = vld [vmem:[#allocation2 + $0x120] sm:$0xf] }
 0x341   :  { %4417 = vst [vmem:[#allocation2 + $0xf0] sm:$0xf] %v4416_v56  ;;  %4420 = vst [vmem:[#allocation2 + $0xf8] sm:$0x1] %v4419_v17  ;;  %v4568_v30 = vor.u32 %v4567_v8, %v4564_v27  ;;  %v4118_v15 = vmax.f32 %v4102_v38, 0.0  ;;  %v4578_v14 = vrot.slane %v4576_v33, 4  ;;  %5143 = vmatprep.subr.bf16.mxu1 %v14000_v43  ;;  %v9530_v51 = vpack.c.bf16 %v4117_v6, %v4117_v6 }
 0x342   :  { %v4422_v60 = vsel %vm10644_vm10, %v4293_v3, %v4421_v45  ;;  %v4425_v2 = vsel %vm10659_vm11, %v4294_v32, %v4424_v34  ;;  %v4579_v10 = vshll.u32 %v12123_v28, 16  ;;  %v4585_v9 = vshll.u32 %v12135_v57, 16  ;;  %v4436_v34 = vld [vmem:[#allocation2 + $0x128] sm:$0x1]  ;;  %v12175_v6 = vld [vmem:[#allocation2 + $0xb8] sm:$0x11] }
 0x343   :  { %4423 = vst [vmem:[#allocation2 + $0x100] sm:$0xf] %v4422_v60  ;;  %4426 = vst [vmem:[#allocation2 + $0x108] sm:$0x1] %v4425_v2  ;;  %v4569_v24 = vrot.slane %v4568_v30, 4  ;;  %v9531_v54 = vpack.c.bf16 %v4118_v15, %v4118_v15  ;;  %v4590_v46 = vshrl.u32 %v12142_v50, 16 }
 0x344   :  { %v4581_v49 = vrot.slane %v4579_v10, 5  ;;  %v4587_v27 = vrot.slane %v4585_v9, 5  ;;  %v4593_v40 = vshll.u32 %v12142_v50, 16  ;;  %v4599_v25 = vshll.u32 %v12147_v44, 16  ;;  %5144 = vmatpush1.bf16.msra.mxu1 %v10277_v48  ;;  %v12177_v15 = vld [vmem:[#allocation2 + $0xc0] sm:$0xff]  ;;  %v12182_v9 = vld [vmem:[#allocation2 + $0xd0] sm:$0xff] }
 0x345   :  { %v4574_v42 = vsel %vm10692_vm12, %v4569_v24, %v4573_v61  ;;  %v4296_v35 = vshrl.u32 %v9530_v51, 16  ;;  %v4299_v16 = vshll.u32 %v9530_v51, 16  ;;  %v4304_v47 = vshrl.u32 %v9531_v54, 16  ;;  %5145 = vmatprep.subr.bf16.mxu1 %v14000_v43  ;;  %14003 = vst [vmem:[#allocation3_spill] sm:$0xff] %v12182_v9  ;;  %v12184_v24 = vld [vmem:[#allocation2 + $0xc8] sm:$0x11] }
 0x346   :  { %v9005_v53 = vcombine.high %v12127_v63, %v4574_v42  ;;  %v9004_v4 = vcombine.low %v12127_v63, %v4574_v42  ;;  %v4307_v19 = vshll.u32 %v9531_v54, 16  ;;  %v4582_v37 = vor.u32 %v4581_v49, %v4578_v14  ;;  %v10280_v63 = vld [vmem:[%s13871_s4 + $0x48] sm:$0xff]   ;;  %v5234_v42 = vld [vmem:[#allocation2 + $0xa0] sm:$0xee] }
 0x347   :  { %v4298_v45 = vrot.slane %v4296_v35, 7  ;;  %v4306_v8 = vrot.slane %v4304_v47, 7  ;;  %v4592_v61 = vrot.slane %v4590_v46, 4  ;;  %v4595_v39 = vrot.slane %v4593_v40, 5  ;;  %v12196_v35 = vld [vmem:[#allocation2 + $0xd8] sm:$0x11] }
 0x348   :  { %9028 = vmatprep.mubr.msk.bf16.mxu1 %vm848_vm13, %v9005_v53  ;;  %v4583_v38 = vrot.slane %v4582_v37, 4  ;;  %v4601_v33 = vrot.slane %v4599_v25, 5  ;;  %v4618_v56 = vshrl.u32 %v12164_v11, 16  ;;  %v4621_v17 = vshll.u32 %v12164_v11, 16  ;;  %5146 = vmatpush1.bf16.msra.mxu1 %v10278_v5 }
 0x349   :  { %4925 = vmatmul.mubr.bf16.gmra.mrb[8].mxu1 %v9004_v4  ;;  %v4301_v3 = vor.u32 %v4299_v16, %v4298_v45  ;;  %v4302_v32 = vrot.slane %v4298_v45, 4  ;;  %v4309_v48 = vor.u32 %v4307_v19, %v4306_v8  ;;  %v4310_v30 = vrot.slane %v4306_v8, 4  ;;  %5147 = vmatprep.subr.bf16.mxu1 %v14000_v43  ;;  %v12205_v19 = vld [vmem:[#allocation2 + $0xe0] sm:$0xff] }
 0x34a   :  { %v4588_v14 = vsel %vm10692_vm12, %v4583_v38, %v4587_v27  ;;  %v4596_v60 = vor.u32 %v4595_v39, %v4592_v61  ;;  %v4620_v2 = vrot.slane %v4618_v56, 4  ;;  %v4623_v10 = vrot.slane %v4621_v17, 5  ;;  %v12210_v56 = vld [vmem:[#allocation2 + $0xf0] sm:$0xff] }
 0x34b   :  { %v4428_v51 = vsel %vm10644_vm10, %v4301_v3, %v4427_v26  ;;  %v4431_v54 = vsel %vm10659_vm11, %v4302_v32, %v4430_v7  ;;  %v4434_v46 = vsel %vm10644_vm10, %v4309_v48, %v4433_v20  ;;  %v4437_v49 = vsel %vm10659_vm11, %v4310_v30, %v4436_v34 }
 0x34c   :  { %4429 = vst [vmem:[#allocation2 + $0x110] sm:$0xf] %v4428_v51  ;;  %4432 = vst [vmem:[#allocation2 + $0x118] sm:$0x1] %v4431_v54  ;;  %v4597_v27 = vrot.slane %v4596_v60, 4  ;;  %v4624_v40 = vor.u32 %v4623_v10, %v4620_v2  ;;  %v4627_v25 = vshll.u32 %v12175_v6, 16  ;;  %5148 = vmatpush1.bf16.msra.mxu1 %v10280_v63 }
 0x34d   :  { %4435 = vst [vmem:[#allocation2 + $0x120] sm:$0xf] %v4434_v46  ;;  %4438 = vst [vmem:[#allocation2 + $0x128] sm:$0x1] %v4437_v49  ;;  %v4632_v5 = vshrl.u32 %v12177_v15, 16  ;;  %v4635_v18 = vshll.u32 %v12177_v15, 16  ;;  %5499 = vmatprep.subr.bf16.mxu1 %v14000_v43 }
 0x34e   :  { %v4641_v16 = vshll.u32 %v12184_v24, 16  ;;  %v4646_v13 = vshrl.u32 %v12182_v9, 16  ;;  %v4649_v47 = vshll.u32 %v12182_v9, 16  ;;  %v4602_v53 = vsel %vm10692_vm12, %v4597_v27, %v4601_v33  ;;  %v12214_v63 = vld [vmem:[#allocation2 + $0xe8] sm:$0x11]  ;;  %v12222_v10 = vld [vmem:[#allocation2 + $0x100] sm:$0xff] }
 0x34f   :  { %v4625_v4 = vrot.slane %v4624_v40, 4  ;;  %v4629_v26 = vrot.slane %v4627_v25, 5  ;;  %v4634_v7 = vrot.slane %v4632_v5, 4  ;;  %v9007_v20 = vcombine.high %v4588_v14, %v4602_v53  ;;  %v12219_v60 = vld [vmem:[#allocation2 + $0xf8] sm:$0x11] }
 0x350   :  { %v9006_v37 = vcombine.low %v4588_v14, %v4602_v53  ;;  %v4637_v45 = vrot.slane %v4635_v18, 5  ;;  %v9076_v8 = vrot.slane %v5234_v42, 9  ;;  %v4648_v61 = vrot.slane %v4646_v13, 4  ;;  %v12228_v25 = vld [vmem:[#allocation2 + $0x108] sm:$0x11] }
 0x351   :  { %v4630_v34 = vsel %vm10692_vm12, %v4625_v4, %v4629_v26  ;;  %v4651_v39 = vrot.slane %v4649_v47, 5  ;;  %v4655_v38 = vshll.u32 %v12196_v35, 16  ;;  %9029 = vmatprep.mubr.msk.bf16.mxu1 %vm848_vm13, %v9007_v20  ;;  %v4660_v3 = vshrl.u32 %v12205_v19, 16 }
 0x352   :  { %v9009_v33 = vcombine.high %v12008_v23, %v4630_v34  ;;  %v4638_v17 = vor.u32 %v4637_v45, %v4634_v7  ;;  %v5308_v32 = vrot.slane %v11969_v59, 5  ;;  %4933 = vmatmul.mubr.bf16.gmra.mrb[12].mxu1 %v9006_v37  ;;  %v9008_v48 = vcombine.low %v12008_v23, %v4630_v34 }
 0x353   :  { %v4643_v30 = vrot.slane %v4641_v16, 5  ;;  %v4652_v14 = vor.u32 %v4651_v39, %v4648_v61  ;;  %v4663_v2 = vshll.u32 %v12205_v19, 16  ;;  %v4662_v54 = vrot.slane %v4660_v3, 4  ;;  %v12231_v16 = vld [vmem:[#allocation2 + $0x110] sm:$0xff]  ;;  %v12239_v37 = vld [vmem:[#allocation2 + $0x118] sm:$0x11] }
 0x354   :  { %9030 = vmatprep.mubr.msk.bf16.mxu1 %vm848_vm13, %v9009_v33  ;;  %v4639_v51 = vrot.slane %v4638_v17, 4  ;;  %v4674_v46 = vshrl.u32 %v12210_v56, 16  ;;  %v4677_v49 = vshll.u32 %v12210_v56, 16  ;;  %v4657_v27 = vrot.slane %v4655_v38, 5 }
 0x355   :  { %v4653_v59 = vrot.slane %v4652_v14, 4  ;;  %v4665_v40 = vrot.slane %v4663_v2, 5  ;;  %v4669_v23 = vshll.u32 %v12214_v63, 16  ;;  %v4683_v18 = vshll.u32 %v12219_v60, 16 }
 0x356   :  { %v4676_v5 = vrot.slane %v4674_v46, 4  ;;  %v4679_v42 = vrot.slane %v4677_v49, 5  ;;  %v4688_v13 = vshrl.u32 %v12222_v10, 16  ;;  %v4644_v47 = vsel %vm10692_vm12, %v4639_v51, %v4643_v30 }
 0x357   :  { %v4658_v53 = vsel %vm10692_vm12, %v4653_v59, %v4657_v27  ;;  %v4666_v4 = vor.u32 %v4665_v40, %v4662_v54  ;;  %v4691_v26 = vshll.u32 %v12222_v10, 16  ;;  %v12243_v34 = vsel %vm11076_vm0, %v9076_v8, %v5308_v32 }
 0x358   :  { %v9011_v7 = vcombine.high %v4644_v47, %v4658_v53  ;;  %v4680_v20 = vor.u32 %v4679_v42, %v4676_v5  ;;  %v4690_v45 = vrot.slane %v4688_v13, 4  ;;  %v4697_v38 = vshll.u32 %v12228_v25, 16  ;;  %v5227_v13 = vld [vmem:[#allocation2 + $0x10] sm:$0xee] }
 0x359   :  { %v4667_v61 = vrot.slane %v4666_v4, 4  ;;  %v4693_v39 = vrot.slane %v4691_v26, 5  ;;  %v4702_v33 = vshrl.u32 %v12231_v16, 16  ;;  %v5280_v17 = vrot.slane %v11992_v29, 5 }
 0x35a   :  { %v4681_v3 = vrot.slane %v4680_v20, 4  ;;  %v4685_v30 = vrot.slane %v4683_v18, 5  ;;  %v4705_v14 = vshll.u32 %v12231_v16, 16  ;;  %4941 = vmatmul.mubr.bf16.gmra.mrb[16].mxu1 %v9008_v48  ;;  %v4671_v2 = vrot.slane %v4669_v23, 5  ;;  %v5229_v20 = vld [vmem:[#allocation2 + $0x30] sm:$0xee] }
 0x35b   :  { %v4694_v51 = vor.u32 %v4693_v39, %v4690_v45  ;;  %v4704_v54 = vrot.slane %v4702_v33, 4  ;;  %v4711_v46 = vshll.u32 %v12239_v37, 16  ;;  %9031 = vmatprep.mubr.msk.bf16.mxu1 %vm848_vm13, %v9011_v7  ;;  %v9010_v8 = vcombine.low %v4644_v47, %v4658_v53  ;;  %v5228_v7 = vld [vmem:[#allocation2 + $0x20] sm:$0xee]  ;;  %v12546_v33 = vld [vmem:[#allocation2 + $0x88] sm:$0x11] }
 0x35c   :  { %v12253_v32 = vsel %vm10692_vm12, %v4681_v3, %v4685_v30  ;;  %v4707_v49 = vrot.slane %v4705_v14, 5  ;;  %v9037_v29 = vcombine.high %v12004_v0, %v12035_v31  ;;  %v12259_v59 = vsel %vm10692_vm12, %v4667_v61, %v4671_v2  ;;  %v5230_v2 = vld [vmem:[#allocation2 + $0x40] sm:$0xee]  ;;  %14018 = vst [vmem:[#allocation18_spill] sm:$0xff] %v12546_v33 }
 0x35d   :  { %v4695_v48 = vrot.slane %v4694_v51, 4  ;;  %v4699_v27 = vrot.slane %v4697_v38, 5  ;;  %v9036_v40 = vcombine.low %v12004_v0, %v12035_v31  ;;  %v9039_v5 = vcombine.high %v12065_v36, %v12094_v22  ;;  %v10296_v0 = vld [vmem:[%s13871_s4 + $0xc8] sm:$0xff]   ;;  %v12460_v31 = vld [vmem:[#allocation2 + $0x40] sm:$0xff] }
 0x35e   :  { %v4708_v23 = vor.u32 %v4707_v49, %v4704_v54  ;;  %v9038_v42 = vcombine.low %v12065_v36, %v12094_v22  ;;  %v9041_v18 = vcombine.high %v12123_v28, %v12142_v50  ;;  %v9013_v47 = vcombine.high %v12259_v59, %v12253_v32  ;;  %14004 = vst [vmem:[#allocation4_spill] sm:$0xff] %v12460_v31 }
 0x35f   :  { %v12273_v53 = vsel %vm10692_vm12, %v4695_v48, %v4699_v27  ;;  %v4713_v4 = vrot.slane %v4711_v46, 5  ;;  %v9040_v26 = vcombine.low %v12123_v28, %v12142_v50  ;;  %v9045_v61 = vcombine.high %v12177_v15, %v12182_v9  ;;  %v5231_v48 = vld [vmem:[#allocation2 + $0x50] sm:$0xee] }
 0x360   :  { %v4709_v45 = vrot.slane %v4708_v23, 4  ;;  %v9069_v14 = vrot.slane %v5227_v13, 9  ;;  %v9070_v54 = vrot.slane %v5228_v7, 9  ;;  %v5284_v46 = vrot.slane %v12026_v41, 5  ;;  %v5233_v7 = vld [vmem:[#allocation2 + $0x70] sm:$0xee] }
 0x361   :  { %v9071_v49 = vrot.slane %v5229_v20, 9  ;;  %v9012_v27 = vcombine.low %v12259_v59, %v12253_v32  ;;  %v5288_v30 = vrot.slane %v12051_v55, 5  ;;  %v9072_v59 = vrot.slane %v5230_v2, 9  ;;  %v5239_v41 = vld [vmem:[#allocation2 + $0xf0] sm:$0xee] }
 0x362   :  { %v12291_v51 = vsel %vm10692_vm12, %v4709_v45, %v4713_v4  ;;  %4949 = vmatmul.mubr.bf16.gmra.mrb[20].mxu1 %v9010_v8  ;;  %v12300_v13 = vsel %vm11076_vm0, %v9069_v14, %v5280_v17  ;;  %v5232_v4 = vld [vmem:[#allocation2 + $0x60] sm:$0xee]  ;;  %v12310_v32 = vsel %vm11076_vm0, %v9070_v54, %v5284_v46  ;;  %v5292_v55 = vrot.slane %v12096_v1, 5  ;;  %v5235_v45 = vld [vmem:[#allocation2 + $0xb0] sm:$0xee] }
 0x363   :  { %v9015_v23 = vcombine.high %v12273_v53, %v12291_v51  ;;  %9032 = vmatprep.mubr.msk.bf16.mxu1 %vm848_vm13, %v9013_v47  ;;  %v12314_v17 = vsel %vm11076_vm0, %v9071_v49, %v5288_v30  ;;  %v9073_v20 = vrot.slane %v5231_v48, 9  ;;  %v5296_v47 = vrot.slane %v12113_v58, 5  ;;  %v5236_v46 = vld [vmem:[#allocation2 + $0xc0] sm:$0xee]  ;;  %v5237_v48 = vld [vmem:[#allocation2 + $0xd0] sm:$0xee] }
 0x364   :  { %v9074_v54 = vrot.slane %v5232_v4, 9  ;;  %v5300_v2 = vrot.slane %v12135_v57, 5  ;;  %v12325_v30 = vsel %vm11076_vm0, %v9072_v59, %v5292_v55  ;;  %v9075_v58 = vrot.slane %v5233_v7, 9  ;;  %v5238_v55 = vld [vmem:[#allocation2 + $0xe0] sm:$0xee] }
 0x365   :  { %v12329_v1 = vsel %vm11076_vm0, %v9073_v20, %v5296_v47  ;;  %v5304_v49 = vrot.slane %v12147_v44, 5  ;;  %v9077_v59 = vrot.slane %v5235_v45, 9  ;;  %v5312_v7 = vrot.slane %v12175_v6, 5  ;;  %v12532_v4 = vld [vmem:[#allocation2 + $0xc0] sm:$0xff] }
 0x366   :  { %v12338_v57 = vsel %vm11076_vm0, %v9074_v54, %v5300_v2  ;;  %v9078_v44 = vrot.slane %v5236_v46, 9  ;;  %v5316_v47 = vrot.slane %v12184_v24, 5  ;;  %v9079_v54 = vrot.slane %v5237_v48, 9  ;;  %14014 = vst [vmem:[#allocation14_spill] sm:$0xff] %v12532_v4  ;;  %v6453_v8 = vld [vmem:[#allocation2 + $0x60] sm:$0xee] }
 0x367   :  { %v12342_v20 = vsel %vm11076_vm0, %v9075_v58, %v5304_v49  ;;  %v5320_v45 = vrot.slane %v12196_v35, 5  ;;  %v12353_v2 = vsel %vm11076_vm0, %v9077_v59, %v5312_v7  ;;  %v9080_v24 = vrot.slane %v5238_v55, 9  ;;  %v5240_v58 = vld [vmem:[#allocation2 + $0x100] sm:$0xee]  ;;  %v5241_v49 = vld [vmem:[#allocation2 + $0x110] sm:$0xee] }
 0x368   :  { %v12357_v6 = vsel %vm11076_vm0, %v9078_v44, %v5316_v47  ;;  %v5324_v46 = vrot.slane %v12214_v63, 5  ;;  %v9081_v59 = vrot.slane %v5239_v41, 9  ;;  %v5328_v7 = vrot.slane %v12219_v60, 5  ;;  %v6451_v55 = vld [vmem:[#allocation2 + $0x40] sm:$0xee] }
 0x369   :  { %v5332_v44 = vrot.slane %v12228_v25, 5  ;;  %v9083_v47 = vrot.slane %v5241_v49, 9  ;;  %v5336_v48 = vrot.slane %v12239_v37, 5  ;;  %v9014_v35 = vcombine.low %v12273_v53, %v12291_v51 }
 0x36a   :  { %4957 = vmatmul.mubr.bf16.gmra.mrb[24].mxu1 %v9012_v27  ;;  %v12367_v27 = vsel %vm11076_vm0, %v9079_v54, %v5320_v45  ;;  %v12380_v41 = vsel %vm11076_vm0, %v9080_v24, %v5324_v46  ;;  %v12384_v54 = vsel %vm11076_vm0, %v9081_v59, %v5328_v7  ;;  %v10411_v46 = vld [vmem:[#allocation2] sm:$0xff]  ;;  %v5996_v36 = vshll.u32 %v12460_v31, 16  ;;  %v12497_v24 = vld [vmem:[#allocation2 + $0x38] sm:$0x11] }
 0x36b   :  { %9033 = vmatprep.mubr.msk.bf16.mxu1 %vm848_vm13, %v9015_v23  ;;  %v9082_v23 = vrot.slane %v5240_v58, 9  ;;  %v12396_v53 = vsel %vm11076_vm0, %v9083_v47, %v5336_v48  ;;  %v9035_v58 = vcombine.high %v10411_v46, %v11985_v12  ;;  %v10412_v47 = vld [vmem:[#allocation2 + $0x10] sm:$0xff]  ;;  %14010 = vst [vmem:[#allocation10_spill] sm:$0xff] %v12497_v24  ;;  %v9249_v3 = vrot.slane %v6451_v55, 9 }
 0x36c   :  { %v9034_v48 = vcombine.low %v10411_v46, %v10412_v47  ;;  %v10287_v12 = vld [vmem:[%s13871_s4 + $0xb0] sm:$0xff]   ;;  %v10293_v46 = vld [vmem:[%s13871_s4 + $0xc0] sm:$0xff]   ;;  %v9251_v38 = vrot.slane %v6453_v8, 9 }
 0x36d   :  { %v12392_v37 = vsel %vm11076_vm0, %v9082_v23, %v5332_v44  ;;  %v10413_v47 = vld [vmem:[#allocation2 + $0xa0] sm:$0xff]  ;;  %v10300_v23 = vld [vmem:[%s13871_s4 + $0xd8] sm:$0xff]   ;;  %v6458_v8 = vld [vmem:[#allocation2 + $0xd0] sm:$0xee] }
 0x36e   :  { %v9042_v63 = vcombine.low %v10413_v47, %v12164_v11 }
 0x372   :  { %4965 = vmatmul.mubr.bf16.gmra.mrb[28].mxu1 %v9014_v35  ;;  %v10283_v35 = vld [vmem:[%s13871_s4 + $0xa0] sm:$0xff]  }
 0x373   :  { %9060 = vmatprep.mubr.msk.bf16.mxu1 %vm848_vm13, %v9035_v58  ;;  %v10285_v58 = vld [vmem:[%s13871_s4 + $0xa8] sm:$0xff]  }
 0x37a   :  { %5162 = vmatmul.mubr.bf16.vlgmr.msra.gmra.mrb[0].mxu1 %v9034_v48 }
 0x37b   :  { %9061 = vmatprep.mubr.msk.bf16.mxu1 %vm848_vm13, %v9037_v29  ;;  %5500 = vmatpush1.bf16.msra.mxu1 %v10283_v35  ;;  %v10290_v29 = vld [vmem:[%s13871_s4 + $0xb8] sm:$0xff]   ;;  %v12475_v35 = vld [vmem:[#allocation2 + $0x70] sm:$0xff] }
 0x37c   :  { %5501 = vmatprep.subr.bf16.mxu1 %v14000_v43  ;;  %14007 = vst [vmem:[#allocation7_spill] sm:$0xff] %v12475_v35  ;;  %v6035_v49 = vshrl.u32 %v12475_v35, 16  ;;  %v6038_v50 = vshll.u32 %v12475_v35, 16  ;;  %v12722_v35 = vld [vmem:[#allocation2 + $0x48] sm:$0x11] }
 0x37e   :  { %v12503_v25 = vrot.slane %v6035_v49, 4  ;;  %v12505_v60 = vrot.slane %v6038_v50, 5  ;;  %v12516_v49 = vld [vmem:[#allocation2 + $0x68] sm:$0x11] }
 0x37f   :  { %5502 = vmatpush1.bf16.msra.mxu1 %v10285_v58  ;;  %v9043_v58 = vcombine.high %v10413_v47, %v12164_v11  ;;  %14013 = vst [vmem:[#allocation13_spill] sm:$0xff] %v12516_v49  ;;  %v6452_v47 = vld [vmem:[#allocation2 + $0x50] sm:$0xee] }
 0x380   :  { %5503 = vmatprep.subr.bf16.mxu1 %v14000_v43 }
 0x382   :  { %5170 = vmatmul.mubr.bf16.gmra.mrb[4].mxu1 %v9036_v40  ;;  %v12462_v40 = vld [vmem:[#allocation2 + $0x50] sm:$0xff] }
 0x383   :  { %9062 = vmatprep.mubr.msk.bf16.mxu1 %vm848_vm13, %v9039_v5  ;;  %5504 = vmatpush1.bf16.msra.mxu1 %v10287_v12  ;;  %14005 = vst [vmem:[#allocation5_spill] sm:$0xff] %v12462_v40  ;;  %v5993_v5 = vshrl.u32 %v12460_v31, 16  ;;  %v6010_v48 = vshll.u32 %v12462_v40, 16  ;;  %v12473_v12 = vld [vmem:[#allocation2 + $0x60] sm:$0xff] }
 0x384   :  { %5505 = vmatprep.subr.bf16.mxu1 %v14000_v43  ;;  %14006 = vst [vmem:[#allocation6_spill] sm:$0xff] %v12473_v12  ;;  %v6021_v7 = vshrl.u32 %v12473_v12, 16  ;;  %v6024_v59 = vshll.u32 %v12473_v12, 16 }
 0x385   :  { %v6012_v44 = vrot.slane %v6010_v48, 5 }
 0x386   :  { %v12499_v45 = vrot.slane %v6021_v7, 4  ;;  %v12501_v51 = vrot.slane %v6024_v59, 5 }
 0x387   :  { %5506 = vmatpush1.bf16.msra.mxu1 %v10290_v29  ;;  %v5995_v29 = vrot.slane %v5993_v5, 4  ;;  %v6448_v5 = vld [vmem:[#allocation2 + $0x10] sm:$0xee] }
 0x388   :  { %5507 = vmatprep.subr.bf16.mxu1 %v14000_v43 }
 0x38a   :  { %5178 = vmatmul.mubr.bf16.gmra.mrb[8].mxu1 %v9038_v42  ;;  %v6007_v42 = vshrl.u32 %v12462_v40, 16 }
 0x38b   :  { %9063 = vmatprep.mubr.msk.bf16.mxu1 %vm848_vm13, %v9041_v18  ;;  %5508 = vmatpush1.bf16.msra.mxu1 %v10293_v46  ;;  %v10298_v18 = vld [vmem:[%s13871_s4 + $0xd0] sm:$0xff]   ;;  %v5998_v46 = vrot.slane %v5996_v36, 5  ;;  %v12492_v36 = vld [vmem:[#allocation2 + $0x28] sm:$0x11] }
 0x38c   :  { %5509 = vmatprep.subr.bf16.mxu1 %v14000_v43  ;;  %14009 = vst [vmem:[#allocation9_spill] sm:$0xff] %v12492_v36  ;;  %v6502_v50 = vrot.slane %v12492_v36, 5 }
 0x38f   :  { %5510 = vmatpush1.bf16.msra.mxu1 %v10296_v0  ;;  %v6009_v0 = vrot.slane %v6007_v42, 4  ;;  %v5999_v42 = vor.u32 %v5998_v46, %v5995_v29  ;;  %v6450_v46 = vld [vmem:[#allocation2 + $0x30] sm:$0xee] }
 0x390   :  { %5511 = vmatprep.subr.bf16.mxu1 %v14000_v43  ;;  %v9248_v14 = vrot.slane %v6450_v46, 9  ;;  %v12548_v46 = vld [vmem:[#allocation2 + $0xd0] sm:$0xff] }
 0x391   :  { %v6013_v48 = vor.u32 %v6012_v44, %v6009_v0  ;;  %v12509_v44 = vld [vmem:[#allocation2 + $0x48] sm:$0x11]  ;;  %v12512_v0 = vld [vmem:[#allocation2 + $0x58] sm:$0x11]  ;;  %v12514_v59 = vrot.slane %v5999_v42, 4  ;;  %14019 = vst [vmem:[#allocation19_spill] sm:$0xff] %v12548_v46 }
 0x392   :  { %5186 = vmatmul.mubr.bf16.gmra.mrb[12].mxu1 %v9040_v26  ;;  %v12490_v26 = vld [vmem:[#allocation2 + $0x18] sm:$0x11]  ;;  %14011 = vst [vmem:[#allocation11_spill] sm:$0xff] %v12509_v44  ;;  %14012 = vst [vmem:[#allocation12_spill] sm:$0xff] %v12512_v0  ;;  %v6454_v42 = vld [vmem:[#allocation2 + $0x70] sm:$0xee] }
 0x393   :  { %9064 = vmatprep.mubr.msk.bf16.mxu1 %vm848_vm13, %v9043_v58  ;;  %5512 = vmatpush1.bf16.msra.mxu1 %v10298_v18  ;;  %14008 = vst [vmem:[#allocation8_spill] sm:$0xff] %v12490_v26  ;;  %v6449_v18 = vld [vmem:[#allocation2 + $0x20] sm:$0xee]  ;;  %v6498_v29 = vrot.slane %v12490_v26, 5  ;;  %v6514_v36 = vrot.slane %v12512_v0, 5  ;;  %v14052_v31 = vshll.u32 %v12548_v46, 16 }
 0x394   :  { %5513 = vmatprep.subr.bf16.mxu1 %v14000_v43  ;;  %v10303_v58 = vld [vmem:[%s13871_s4 + $0xe0] sm:$0xff]   ;;  %v9247_v7 = vrot.slane %v6449_v18, 9  ;;  %v12526_v18 = vrot.slane %v6013_v48, 4 }
 0x395   :  { %v6455_v26 = vld [vmem:[#allocation2 + $0x80] sm:$0xee] }
 0x396   :  { %v12543_v48 = vsel %vm11076_vm0, %v9247_v7, %v6502_v50  ;;  %v12555_v7 = vld [vmem:[#allocation2 + $0xb8] sm:$0x11]  ;;  %v12557_v50 = vld [vmem:[#allocation2 + $0xc8] sm:$0x11]  ;;  %v6459_v0 = vld [vmem:[#allocation2 + $0xe0] sm:$0xee] }
 0x397   :  { %5514 = vmatpush1.bf16.msra.mxu1 %v10300_v23  ;;  %v9246_v23 = vrot.slane %v6448_v5, 9  ;;  %v10305_v5 = vld [vmem:[%s13871_s4 + $0xe8] sm:$0xff]   ;;  %14017 = vst [vmem:[#allocation17_spill] sm:$0xff] %v12543_v48  ;;  %14020 = vst [vmem:[#allocation20_spill] sm:$0xff] %v12555_v7  ;;  %v9252_v48 = vrot.slane %v6454_v42, 9 }
 0x398   :  { %5515 = vmatprep.subr.bf16.mxu1 %v14000_v43  ;;  %v12600_v42 = vld [vmem:[#allocation2 + $0x108] sm:$0x11] }
 0x399   :  { %14029 = vst [vmem:[#allocation28_spill] sm:$0xff] %v12600_v42 }
 0x39a   :  { %5194 = vmatmul.mubr.bf16.gmra.mrb[16].mxu1 %v9042_v63  ;;  %v6506_v63 = vrot.slane %v12497_v24, 5 }
 0x39b   :  { %9065 = vmatprep.mubr.msk.bf16.mxu1 %vm848_vm13, %v9045_v61  ;;  %5516 = vmatpush1.bf16.msra.mxu1 %v10303_v58  ;;  %v12535_v61 = vld [vmem:[#allocation2 + $0x78] sm:$0x11]  ;;  %v12539_v58 = vsel %vm11076_vm0, %v9246_v23, %v6498_v29  ;;  %v6510_v23 = vrot.slane %v12509_v44, 5  ;;  %v9250_v29 = vrot.slane %v6452_v47, 9  ;;  %v6518_v47 = vrot.slane %v12516_v49, 5 }
 0x39c   :  { %5517 = vmatprep.subr.bf16.mxu1 %v14000_v43  ;;  %14015 = vst [vmem:[#allocation15_spill] sm:$0xff] %v12535_v61  ;;  %14016 = vst [vmem:[#allocation16_spill] sm:$0xff] %v12539_v58  ;;  %v12562_v24 = vsel %vm11076_vm0, %v9248_v14, %v6506_v63  ;;  %v6522_v58 = vrot.slane %v12535_v61, 5  ;;  %v6456_v44 = vld [vmem:[#allocation2 + $0xb0] sm:$0xee]  ;;  %v6534_v49 = vrot.slane %v12557_v50, 5 }
 0x39d   :  { %14021 = vst [vmem:[#allocation21_spill] sm:$0xff] %v12562_v24  ;;  %v12567_v39 = vsel %vm11076_vm0, %v9249_v3, %v6510_v23  ;;  %v12573_v14 = vld [vmem:[#allocation2 + $0xd8] sm:$0x11]  ;;  %v12580_v23 = vld [vmem:[#allocation2 + $0xe8] sm:$0x11]  ;;  %v12585_v61 = vsel %vm11076_vm0, %v9250_v29, %v6514_v36  ;;  %v12589_v55 = vsel %vm11076_vm0, %v9251_v38, %v6518_v47  ;;  %v14027_v3 = vcombine.low %v12177_v15, %v12182_v9 }
 0x39e   :  { %14022 = vst [vmem:[#allocation22_spill] sm:$0xff] %v12567_v39  ;;  %14023 = vst [vmem:[#allocation23_spill] sm:$0xff] %v12573_v14  ;;  %v12593_v63 = vsel %vm11076_vm0, %v9252_v48, %v6522_v58  ;;  %v12598_v39 = vld [vmem:[#allocation2 + $0xf8] sm:$0x11]  ;;  %v9253_v29 = vrot.slane %v6455_v26, 9  ;;  %v6526_v58 = vrot.slane %v12546_v33, 5  ;;  %v14030_v48 = vcombine.high %v12205_v19, %v12210_v56 }
 0x39f   :  { %5518 = vmatpush1.bf16.msra.mxu1 %v10305_v5  ;;  %v6457_v5 = vld [vmem:[#allocation2 + $0xc0] sm:$0xee]  ;;  %14024 = vst [vmem:[#allocation24_spill] sm:$0xff] %v12585_v61  ;;  %14025 = vst [vmem:[#allocation25_spill] sm:$0xff] %v12589_v55  ;;  %v9254_v47 = vrot.slane %v6456_v44, 9  ;;  %v9256_v38 = vrot.slane %v6458_v8, 9 }
 0x3a0   :  { %5805 = vmatprep.subr.bf16.mxu1 %v14000_v43  ;;  %14026 = vst [vmem:[#allocation26_spill] sm:$0xff] %v12593_v63  ;;  %14028 = vst [vmem:[#allocation27_spill] sm:$0xff] %v12598_v39  ;;  %v9255_v24 = vrot.slane %v6457_v5, 9  ;;  %v6460_v9 = vld [vmem:[#allocation2 + $0xf0] sm:$0xee]  ;;  %v12615_v36 = vsel %vm11076_vm0, %v9253_v29, %v6526_v58  ;;  %v6538_v26 = vrot.slane %v12573_v14, 5 }
 0x3a1   :  { %14031 = vst [vmem:[#allocation29_spill] sm:$0xff] %v12615_v36  ;;  %v9257_v55 = vrot.slane %v6459_v0, 9  ;;  %v6461_v61 = vld [vmem:[#allocation2 + $0x100] sm:$0xee]  ;;  %v12618_v33 = vld [vmem:[#allocation2 + $0x118] sm:$0x11] }
 0x3a2   :  { %5202 = vmatmul.mubr.bf16.gmra.mrb[20].mxu1 %v14027_v3  ;;  %v6530_v3 = vrot.slane %v12555_v7, 5  ;;  %14032 = vst [vmem:[#allocation30_spill] sm:$0xff] %v12618_v33  ;;  %v12630_v29 = vsel %vm11076_vm0, %v9255_v24, %v6534_v49  ;;  %v6462_v8 = vld [vmem:[#allocation2 + $0x110] sm:$0xee]  ;;  %v6463_v58 = vld [vmem:[#allocation2 + $0x120] sm:$0xee]  ;;  %v12640_v5 = vsel %vm11076_vm0, %v9256_v38, %v6538_v26 }
 0x3a3   :  { %9066 = vmatprep.mubr.msk.bf16.mxu1 %vm848_vm13, %v14030_v48  ;;  %14034 = vst [vmem:[#allocation32_spill] sm:$0xff] %v12630_v29  ;;  %v12632_v0 = vld [vmem:[#allocation2 + $0xe0] sm:$0xff]  ;;  %14036 = vst [vmem:[#allocation34_spill] sm:$0xff] %v12640_v5  ;;  %v9258_v24 = vrot.slane %v6460_v9, 9  ;;  %v6546_v49 = vrot.slane %v12598_v39, 5  ;;  %v9259_v36 = vrot.slane %v6461_v61, 9 }
 0x3a4   :  { %v12626_v48 = vsel %vm11076_vm0, %v9254_v47, %v6530_v3  ;;  %14035 = vst [vmem:[#allocation33_spill] sm:$0xff] %v12632_v0  ;;  %v6542_v47 = vrot.slane %v12580_v23, 5  ;;  %v12643_v3 = vld [vmem:[#allocation2 + $0x128] sm:$0x11]  ;;  %v6550_v63 = vrot.slane %v12600_v42, 5  ;;  %v12647_v7 = vld [vmem:[#allocation2 + $0x30] sm:$0xff] }
 0x3a5   :  { %14033 = vst [vmem:[#allocation31_spill] sm:$0xff] %v12626_v48  ;;  %14037 = vst [vmem:[#allocation35_spill] sm:$0xff] %v12643_v3  ;;  %v9260_v44 = vrot.slane %v6462_v8, 9  ;;  %v6554_v38 = vrot.slane %v12618_v33, 5  ;;  %v9261_v26 = vrot.slane %v6463_v58, 9  ;;  %v12660_v61 = vsel %vm11076_vm0, %v9258_v24, %v6546_v49  ;;  %v12669_v8 = vld [vmem:[#allocation2 + $0x20] sm:$0xff] }
 0x3a6   :  { %v12651_v14 = vsel %vm11076_vm0, %v9257_v55, %v6542_v47  ;;  %14039 = vst [vmem:[#allocation37_spill] sm:$0xff] %v12660_v61  ;;  %v12664_v48 = vsel %vm11076_vm0, %v9259_v36, %v6550_v63  ;;  %v14041_v55 = vcombine.low %v12205_v19, %v12210_v56  ;;  %v6105_v58 = vshrl.u32 %v12632_v0, 16  ;;  %v12681_v36 = vld [vmem:[#allocation2 + $0xf0] sm:$0xff]  ;;  %v12706_v9 = vld [vmem:[#allocation2 + $0x100] sm:$0xff]  ;;  %v12724_v29 = vld [vmem:[#allocation2 + $0x58] sm:$0x11] }
 0x3a7   :  { %14038 = vst [vmem:[#allocation36_spill] sm:$0xff] %v12651_v14  ;;  %14040 = vst [vmem:[#allocation38_spill] sm:$0xff] %v12664_v48  ;;  %v6558_v24 = vrot.slane %v12643_v3, 5  ;;  %v14042_v63 = vcombine.high %v12222_v10, %v12231_v16  ;;  %v12683_v49 = vld [vmem:[#allocation2 + $0x110] sm:$0xff]  ;;  %v12695_v48 = vsel %vm11076_vm0, %v9260_v44, %v6554_v38  ;;  %v6108_v61 = vshll.u32 %v12632_v0, 16 }
 0x3a8   :  { %14043 = vst [vmem:[#allocation39_spill] sm:$0xff] %v12681_v36  ;;  %14044 = vst [vmem:[#allocation40_spill] sm:$0xff] %v12683_v49  ;;  %v14048_v44 = vor.u32 %v12501_v51, %v12499_v45  ;;  %v6122_v51 = vshll.u32 %v12681_v36, 16  ;;  %v12743_v45 = vld [vmem:[#allocation2 + $0x68] sm:$0x11]  ;;  %v6150_v5 = vshll.u32 %v12683_v49, 16 }
 0x3a9   :  { %14045 = vst [vmem:[#allocation41_spill] sm:$0xff] %v12695_v48  ;;  %14047 = vst [vmem:[#allocation43_spill] sm:$0xff] %v12706_v9  ;;  %v6119_v48 = vshrl.u32 %v12681_v36, 16  ;;  %v12747_v14 = vld [vmem:[#allocation2 + $0x78] sm:$0x11]  ;;  %v6133_v36 = vshrl.u32 %v12706_v9, 16 }
 0x3aa   :  { %5210 = vmatmul.mubr.bf16.gmra.mrb[24].mxu1 %v14041_v55  ;;  %v12729_v38 = vrot.slane %v14048_v44, 4  ;;  %v14051_v55 = vshrl.u32 %v12548_v46, 16  ;;  %v6107_v44 = vrot.slane %v6105_v58, 4  ;;  %v6136_v58 = vshll.u32 %v12706_v9, 16 }
 0x3ab   :  { %9067 = vmatprep.mubr.msk.bf16.mxu1 %vm848_vm13, %v14042_v63  ;;  %v12699_v63 = vsel %vm11076_vm0, %v9261_v26, %v6558_v24  ;;  %v14049_v26 = vshrl.u32 %v12532_v4, 16  ;;  %v14050_v24 = vshll.u32 %v12532_v4, 16  ;;  %v7210_v4 = vshll.u32 %v12722_v35, 16 }
 0x3ac   :  { %14046 = vst [vmem:[#allocation42_spill] sm:$0xff] %v12699_v63  ;;  %v6093_v0 = vrot.slane %v14051_v55, 4  ;;  %v6096_v63 = vrot.slane %v14052_v31, 5  ;;  %v14053_v55 = vcombine.low %v12222_v10, %v12231_v16  ;;  %v14054_v31 = vor.u32 %v12505_v60, %v12503_v25 }
 0x3ad   :  { %v6079_v12 = vrot.slane %v14049_v26, 4  ;;  %v6082_v40 = vrot.slane %v14050_v24, 5  ;;  %v6110_v26 = vrot.slane %v6108_v61, 5  ;;  %v7224_v24 = vshll.u32 %v12724_v29, 16 }
 0x3ae   :  { %v12755_v47 = vrot.slane %v14054_v31, 4  ;;  %v6147_v61 = vshrl.u32 %v12683_v49, 16  ;;  %v14055_v46 = vcombine.high %v12012_v52, %v12300_v13  ;;  %v7212_v16 = vrot.slane %v7210_v4, 5  ;;  %v7674_v49 = vld [vmem:[#allocation2 + $0x60] sm:$0xee] }
 0x3af   :  { %v7238_v33 = vshll.u32 %v12743_v45, 16  ;;  %v6083_v60 = vor.u32 %v6082_v40, %v6079_v12  ;;  %v6121_v25 = vrot.slane %v6119_v48, 4  ;;  %v6124_v31 = vrot.slane %v6122_v51, 5  ;;  %v10306_v48 = vld [vmem:[%s13871_s4 + $0xf0] sm:$0xff]   ;;  %v12798_v12 = vld [vmem:[#allocation2 + $0xe8] sm:$0x11] }
 0x3b0   :  { %v7252_v3 = vshll.u32 %v12747_v14, 16  ;;  %v6097_v39 = vor.u32 %v6096_v63, %v6093_v0  ;;  %v6111_v9 = vor.u32 %v6110_v26, %v6107_v44  ;;  %v12770_v42 = vsel %vm10692_vm12, %v12514_v59, %v7212_v16  ;;  %v12784_v16 = vld [vmem:[#allocation2 + $0xc8] sm:$0x11] }
 0x3b1   :  { %14056 = vst [vmem:[#allocation44_spill] sm:$0xff] %v12770_v42  ;;  %v6135_v4 = vrot.slane %v6133_v36, 4  ;;  %v6149_v0 = vrot.slane %v6147_v61, 4  ;;  %v6152_v63 = vrot.slane %v6150_v5, 5  ;;  %v7240_v51 = vrot.slane %v7238_v33, 5 }
 0x3b2   :  { %5218 = vmatmul.mubr.bf16.gmra.mrb[28].mxu1 %v14053_v55  ;;  %v7226_v55 = vrot.slane %v7224_v24, 5  ;;  %v6138_v24 = vrot.slane %v6136_v58, 5  ;;  %v7254_v44 = vrot.slane %v7252_v3, 5  ;;  %v6125_v26 = vor.u32 %v6124_v31, %v6121_v25  ;;  %v12800_v5 = vld [vmem:[#allocation2 + $0xf8] sm:$0x11] }
 0x3b3   :  { %9130 = vmatprep.mubr.msk.bf16.mxu1 %vm848_vm13, %v14055_v46  ;;  %v12789_v36 = vsel %vm10692_vm12, %v12729_v38, %v7240_v51  ;;  %v14060_v33 = vcombine.low %v12012_v52, %v12300_v13  ;;  %v12805_v3 = vrot.slane %v6083_v60, 4  ;;  %v12807_v61 = vrot.slane %v6097_v39, 4  ;;  %v12813_v51 = vld [vmem:[#allocation2 + $0x108] sm:$0x11]  ;;  %v10307_v52 = vld [vmem:[%s13871_s4 + $0xf8] sm:$0xff]  }
 0x3b4   :  { %v12775_v46 = vsel %vm10692_vm12, %v12526_v18, %v7226_v55  ;;  %14058 = vst [vmem:[#allocation46_spill] sm:$0xff] %v12789_v36  ;;  %v12794_v58 = vsel %vm10692_vm12, %v12755_v47, %v7254_v44  ;;  %v12796_v55 = vld [vmem:[#allocation2 + $0xd8] sm:$0x11]  ;;  %v14061_v44 = vcombine.high %v12310_v32, %v12314_v17  ;;  %v12822_v39 = vrot.slane %v6111_v9, 4 }
 0x3b5   :  { %14057 = vst [vmem:[#allocation45_spill] sm:$0xff] %v12775_v46  ;;  %14059 = vst [vmem:[#allocation47_spill] sm:$0xff] %v12794_v58  ;;  %v6139_v13 = vor.u32 %v6138_v24, %v6135_v4  ;;  %v6153_v60 = vor.u32 %v6152_v63, %v6149_v0  ;;  %v12826_v31 = vrot.slane %v6125_v26, 4  ;;  %v7308_v25 = vshll.u32 %v12796_v55, 16  ;;  %v10308_v0 = vld [vmem:[%s13871_s4 + $0x100] sm:$0xff]  }
 0x3b6   :  { %v7322_v40 = vshll.u32 %v12798_v12, 16  ;;  %v7350_v58 = vshll.u32 %v12813_v51, 16 }
 0x3b7   :  { %v7310_v36 = vrot.slane %v7308_v25, 5  ;;  %v12837_v63 = vrot.slane %v6139_v13, 4  ;;  %v12839_v26 = vrot.slane %v6153_v60, 4  ;;  %v10309_v60 = vld [vmem:[%s13871_s4 + $0x108] sm:$0xff]   ;;  %v7670_v13 = vld [vmem:[#allocation2 + $0x20] sm:$0xee] }
 0x3b8   :  { %v7324_v4 = vrot.slane %v7322_v40, 5 }
 0x3b9   :  { %v12851_v40 = vsel %vm10692_vm12, %v12807_v61, %v7310_v36  ;;  %v12881_v36 = vld [vmem:[#allocation2 + $0x28] sm:$0x11] }
 0x3ba   :  { %5532 = vmatmul.mubr.bf16.vlgmr.msra.gmra.mrb[0].mxu1 %v14060_v33  ;;  %v7294_v33 = vshll.u32 %v12784_v16, 16  ;;  %14063 = vst [vmem:[#allocation49_spill] sm:$0xff] %v12851_v40  ;;  %v12856_v25 = vsel %vm10692_vm12, %v12822_v39, %v7324_v4  ;;  %v7352_v4 = vrot.slane %v7350_v58, 5  ;;  %14068 = vst [vmem:[#allocation52_spill] sm:$0xff] %v12881_v36  ;;  %v7671_v58 = vld [vmem:[#allocation2 + $0x30] sm:$0xee] }
 0x3bb   :  { %9131 = vmatprep.mubr.msk.bf16.mxu1 %vm848_vm13, %v14061_v44  ;;  %5806 = vmatpush1.bf16.msra.mxu1 %v10306_v48  ;;  %v7336_v48 = vshll.u32 %v12800_v5, 16  ;;  %v12831_v44 = vld [vmem:[#allocation2 + $0x118] sm:$0x11]  ;;  %14064 = vst [vmem:[#allocation50_spill] sm:$0xff] %v12856_v25  ;;  %v7720_v25 = vrot.slane %v12881_v36, 5  ;;  %v9425_v40 = vrot.slane %v7671_v58, 9 }
 0x3bc   :  { %5807 = vmatprep.subr.bf16.mxu1 %v14000_v43  ;;  %v7296_v9 = vrot.slane %v7294_v33, 5  ;;  %v7364_v46 = vshll.u32 %v12831_v44, 16  ;;  %v7675_v58 = vld [vmem:[#allocation2 + $0x70] sm:$0xee]  ;;  %v7680_v36 = vld [vmem:[#allocation2 + $0xe0] sm:$0xee] }
 0x3bd   :  { %v7338_v24 = vrot.slane %v7336_v48, 5  ;;  %v14066_v48 = vcombine.low %v12310_v32, %v12314_v17  ;;  %v12884_v32 = vld [vmem:[#allocation2 + $0x38] sm:$0x11]  ;;  %v12889_v17 = vsel %vm10692_vm12, %v12837_v63, %v7352_v4  ;;  %v10310_v4 = vld [vmem:[%s13871_s4 + $0x110] sm:$0xff]  }
 0x3be   :  { %v12846_v33 = vsel %vm10692_vm12, %v12805_v3, %v7296_v9  ;;  %v7366_v42 = vrot.slane %v7364_v46, 5  ;;  %14069 = vst [vmem:[#allocation53_spill] sm:$0xff] %v12889_v17  ;;  %v9424_v9 = vrot.slane %v7670_v13, 9  ;;  %v12922_v17 = vld [vmem:[#allocation2 + $0x88] sm:$0x11] }
 0x3bf   :  { %5808 = vmatpush1.bf16.msra.mxu1 %v10307_v52  ;;  %14062 = vst [vmem:[#allocation48_spill] sm:$0xff] %v12846_v33  ;;  %v12861_v52 = vsel %vm10692_vm12, %v12826_v31, %v7338_v24  ;;  %v14067_v24 = vcombine.high %v12325_v30, %v12329_v1 }
 0x3c0   :  { %5809 = vmatprep.subr.bf16.mxu1 %v14000_v43  ;;  %14065 = vst [vmem:[#allocation51_spill] sm:$0xff] %v12861_v52  ;;  %v12894_v46 = vsel %vm10692_vm12, %v12839_v26, %v7366_v42  ;;  %v7673_v52 = vld [vmem:[#allocation2 + $0x50] sm:$0xee]  ;;  %v7724_v42 = vrot.slane %v12884_v32, 5  ;;  %v12909_v13 = vsel %vm11076_vm0, %v9424_v9, %v7720_v25  ;;  %v12924_v25 = vld [vmem:[#allocation2 + $0x98] sm:$0x11] }
 0x3c1   :  { %14070 = vst [vmem:[#allocation54_spill] sm:$0xff] %v12894_v46  ;;  %14071 = vst [vmem:[#allocation55_spill] sm:$0xff] %v12909_v13  ;;  %v7732_v46 = vrot.slane %v12724_v29, 5  ;;  %v14074_v29 = vcombine.high %v12338_v57, %v12342_v20  ;;  %v9428_v9 = vrot.slane %v7674_v49, 9  ;;  %v7740_v49 = vrot.slane %v12747_v14, 5 }
 0x3c2   :  { %5540 = vmatmul.mubr.bf16.gmra.mrb[4].mxu1 %v14066_v48  ;;  %v7728_v48 = vrot.slane %v12722_v35, 5  ;;  %v10311_v35 = vld [vmem:[%s13871_s4 + $0x118] sm:$0xff]   ;;  %v7748_v13 = vrot.slane %v12924_v25, 5 }
 0x3c3   :  { %9132 = vmatprep.mubr.msk.bf16.mxu1 %vm848_vm13, %v14067_v24  ;;  %5810 = vmatpush1.bf16.msra.mxu1 %v10308_v0  ;;  %v7672_v0 = vld [vmem:[#allocation2 + $0x40] sm:$0xee]  ;;  %v9427_v24 = vrot.slane %v7673_v52, 9 }
 0x3c4   :  { %5811 = vmatprep.subr.bf16.mxu1 %v14000_v43  ;;  %v9426_v33 = vrot.slane %v7672_v0, 9  ;;  %v14073_v0 = vcombine.low %v12325_v30, %v12329_v1 }
 0x3c5   :  { %v12940_v1 = vsel %vm11076_vm0, %v9427_v24, %v7732_v46  ;;  %v7744_v24 = vrot.slane %v12922_v17, 5 }
 0x3c6   :  { %v12936_v30 = vsel %vm11076_vm0, %v9426_v33, %v7728_v48  ;;  %14075 = vst [vmem:[#allocation57_spill] sm:$0xff] %v12940_v1  ;;  %v7678_v33 = vld [vmem:[#allocation2 + $0xc0] sm:$0xee]  ;;  %v7679_v48 = vld [vmem:[#allocation2 + $0xd0] sm:$0xee]  ;;  %v7764_v1 = vrot.slane %v12800_v5, 5 }
 0x3c7   :  { %5812 = vmatpush1.bf16.msra.mxu1 %v10309_v60  ;;  %v12913_v60 = vsel %vm11076_vm0, %v9425_v40, %v7724_v42  ;;  %v7736_v42 = vrot.slane %v12743_v45, 5  ;;  %v7677_v40 = vld [vmem:[#allocation2 + $0x90] sm:$0xee]  ;;  %v9433_v14 = vrot.slane %v7679_v48, 9  ;;  %v12976_v48 = vld [vmem:[#allocation2 + $0x128] sm:$0x11] }
 0x3c8   :  { %5813 = vmatprep.subr.bf16.mxu1 %v14000_v43  ;;  %14072 = vst [vmem:[#allocation56_spill] sm:$0xff] %v12913_v60  ;;  %v9431_v60 = vrot.slane %v7677_v40, 9  ;;  %v7684_v40 = vld [vmem:[#allocation2 + $0x120] sm:$0xee]  ;;  %v7685_v5 = vld [vmem:[#allocation2 + $0x130] sm:$0xee] }
 0x3c9   :  { %v12950_v46 = vsel %vm11076_vm0, %v9428_v9, %v7736_v42  ;;  %v9432_v9 = vrot.slane %v7678_v33, 9  ;;  %v7752_v42 = vrot.slane %v12784_v16, 5  ;;  %v7682_v33 = vld [vmem:[#allocation2 + $0x100] sm:$0xee]  ;;  %v7683_v16 = vld [vmem:[#allocation2 + $0x110] sm:$0xee] }
 0x3ca   :  { %5548 = vmatmul.mubr.bf16.gmra.mrb[8].mxu1 %v14073_v0  ;;  %v7676_v0 = vld [vmem:[#allocation2 + $0x80] sm:$0xee]  ;;  %14076 = vst [vmem:[#allocation58_spill] sm:$0xff] %v12950_v46 }
 0x3cb   :  { %9133 = vmatprep.mubr.msk.bf16.mxu1 %vm848_vm13, %v14074_v29  ;;  %5814 = vmatpush1.bf16.msra.mxu1 %v10310_v4  ;;  %v9429_v29 = vrot.slane %v7675_v58, 9  ;;  %v9430_v45 = vrot.slane %v7676_v0, 9  ;;  %v10312_v58 = vld [vmem:[%s13871_s4 + $0x120] sm:$0xff]   ;;  %v7681_v0 = vld [vmem:[#allocation2 + $0xf0] sm:$0xee] }
 0x3cc   :  { %5815 = vmatprep.subr.bf16.mxu1 %v14000_v43  ;;  %v9435_v46 = vrot.slane %v7681_v0, 9 }
 0x3cd   :  { %v12960_v4 = vsel %vm11076_vm0, %v9429_v29, %v7740_v49  ;;  %v12970_v52 = vsel %vm11076_vm0, %v9430_v45, %v7744_v24  ;;  %v12974_v29 = vsel %vm11076_vm0, %v9431_v60, %v7748_v13  ;;  %v12978_v49 = vld [vmem:[#allocation2 + $0x138] sm:$0x11]  ;;  %v12986_v45 = vsel %vm11076_vm0, %v9432_v9, %v7752_v42  ;;  %v14189_v62 = vld [vmem:[#allocation57_spill] sm:$0xff] }
 0x3ce   :  { %14077 = vst [vmem:[#allocation59_spill] sm:$0xff] %v12960_v4  ;;  %v7756_v24 = vrot.slane %v12796_v55, 5  ;;  %v14078_v13 = vcombine.low %v12338_v57, %v12342_v20  ;;  %v9434_v60 = vrot.slane %v7680_v36, 9  ;;  %v7760_v4 = vrot.slane %v12798_v12, 5  ;;  %v10313_v55 = vld [vmem:[%s13871_s4 + $0x128] sm:$0xff]  }
 0x3cf   :  { %5816 = vmatpush1.bf16.msra.mxu1 %v10311_v35  ;;  %v14079_v35 = vcombine.high %v12243_v34, %v12353_v2  ;;  %v9436_v20 = vrot.slane %v7682_v33, 9  ;;  %v7768_v12 = vrot.slane %v12813_v51, 5  ;;  %v9437_v36 = vrot.slane %v7683_v16, 9 }
 0x3d0   :  { %5817 = vmatprep.subr.bf16.mxu1 %v14000_v43  ;;  %v13003_v57 = vsel %vm11076_vm0, %v9433_v14, %v7756_v24  ;;  %v13013_v42 = vsel %vm11076_vm0, %v9434_v60, %v7760_v4  ;;  %v13017_v14 = vsel %vm11076_vm0, %v9435_v46, %v7764_v1  ;;  %v9438_v33 = vrot.slane %v7684_v40, 9  ;;  %v10314_v1 = vld [vmem:[%s13871_s4 + $0x130] sm:$0xff]  }
 0x3d1   :  { %v9469_v9 = vcombine.high %v12986_v45, %v13003_v57  ;;  %v9471_v51 = vcombine.high %v13013_v42, %v13017_v14  ;;  %v9470_v0 = vcombine.low %v13013_v42, %v13017_v14  ;;  %v7776_v16 = vrot.slane %v12976_v48, 5  ;;  %v8132_v42 = vld [vmem:[%s13874_s7 + $0x20] sm:$0xff]  ;;  %v8133_v14 = vld [vmem:[%s13874_s7 + $0x28] sm:$0xff] }
 0x3d2   :  { %5556 = vmatmul.mubr.bf16.gmra.mrb[12].mxu1 %v14078_v13  ;;  %v9439_v24 = vrot.slane %v7685_v5, 9  ;;  %v7780_v13 = vrot.slane %v12978_v49, 5  ;;  %v13031_v4 = vsel %vm11076_vm0, %v9436_v20, %v7768_v12  ;;  %v14081_v5 = vcombine.high %v12357_v6, %v12367_v27 }
 0x3d3   :  { %9134 = vmatprep.mubr.msk.bf16.mxu1 %vm848_vm13, %v14079_v35  ;;  %5818 = vmatpush1.bf16.msra.mxu1 %v10312_v58  ;;  %v9468_v58 = vcombine.low %v12986_v45, %v13003_v57  ;;  %v7772_v35 = vrot.slane %v12831_v44, 5  ;;  %v13044_v60 = vsel %vm11076_vm0, %v9438_v33, %v7776_v16  ;;  %v14085_v33 = vcombine.high %v12392_v37, %v12396_v53  ;;  %v5612_v16 = vld [vmem:[#allocation2 + $0x10] sm:$0xff] }
 0x3d4   :  { %5819 = vmatprep.subr.bf16.mxu1 %v14000_v43  ;;  %v8130_v57 = vld [vmem:[%s13874_s7 + $0x10] sm:$0xff] }
 0x3d5   :  { %v13035_v46 = vsel %vm11076_vm0, %v9437_v36, %v7772_v35  ;;  %v14080_v36 = vcombine.low %v12243_v34, %v12353_v2  ;;  %v14082_v35 = vcombine.low %v12357_v6, %v12367_v27  ;;  %v14083_v34 = vcombine.high %v12380_v41, %v12384_v54  ;;  %v10319_v27 = vld [vmem:[%s13871_s4 + $0x140] sm:$0xff]  }
 0x3d6   :  { %v9473_v44 = vcombine.high %v13031_v4, %v13035_v46  ;;  %v9472_v40 = vcombine.low %v13031_v4, %v13035_v46  ;;  %v14084_v2 = vcombine.low %v12380_v41, %v12384_v54  ;;  %v14086_v6 = vcombine.low %v12392_v37, %v12396_v53  ;;  %v10414_v54 = vld [vmem:[#allocation2 + $0x40] sm:$0xff]  ;;  %v10321_v37 = vld [vmem:[%s13871_s4 + $0x148] sm:$0xff]   ;;  %v10323_v53 = vld [vmem:[%s13871_s4 + $0x150] sm:$0xff]  }
 0x3d7   :  { %5820 = vmatpush1.bf16.msra.mxu1 %v10313_v55  ;;  %v13048_v55 = vsel %vm11076_vm0, %v9439_v24, %v7780_v13  ;;  %v9159_v24 = vcombine.high %v5612_v16, %v12669_v8  ;;  %v9158_v41 = vcombine.low %v5612_v16, %v12669_v8  ;;  %v9161_v13 = vcombine.high %v12647_v7, %v10414_v54  ;;  %v8135_v4 = vld [vmem:[%s13874_s7 + $0x38] sm:$0xff] }
 0x3d8   :  { %5821 = vmatprep.subr.bf16.mxu1 %v14000_v43  ;;  %v9475_v20 = vcombine.high %v13044_v60, %v13048_v55  ;;  %v9474_v12 = vcombine.low %v13044_v60, %v13048_v55  ;;  %v8138_v55 = vld [vmem:[%s13874_s7 + $0x50] sm:$0xff] }
 0x3da   :  { %5564 = vmatmul.mubr.bf16.gmra.mrb[16].mxu1 %v14080_v36  ;;  %v14087_v36 = vcombine.high %v12094_v22, %v12123_v28 }
 0x3db   :  { %9135 = vmatprep.mubr.msk.bf16.mxu1 %vm848_vm13, %v14081_v5  ;;  %5822 = vmatpush1.bf16.msra.mxu1 %v10314_v1  ;;  %v9160_v1 = vcombine.low %v12647_v7, %v10414_v54  ;;  %v10326_v5 = vld [vmem:[%s13871_s4 + $0x158] sm:$0xff]   ;;  %v14090_v54 = vcombine.low %v12164_v11, %v12177_v15 }
 0x3dc   :  { %5823 = vmatprep.subr.bf16.mxu1 %v14000_v43 }
 0x3df   :  { %5824 = vmatpush1.bf16.msra.mxu1 %v10317_v21  ;;  %v13108_v21 = vld [vmem:[#allocation2 + $0x80] sm:$0xff] }
 0x3e0   :  { %6335 = vmatprep.subr.bf16.mxu1 %v14000_v43 }
 0x3e2   :  { %5572 = vmatmul.mubr.bf16.gmra.mrb[20].mxu1 %v14082_v35  ;;  %v10329_v35 = vld [vmem:[%s13871_s4 + $0x160] sm:$0xff]  }
 0x3e3   :  { %9136 = vmatprep.mubr.msk.bf16.mxu1 %vm848_vm13, %v14083_v34  ;;  %v10415_v34 = vld [vmem:[#allocation2 + $0x70] sm:$0xff] }
 0x3ea   :  { %5580 = vmatmul.mubr.bf16.gmra.mrb[24].mxu1 %v14084_v2  ;;  %v9165_v2 = vcombine.high %v10415_v34, %v13108_v21 }
 0x3eb   :  { %9137 = vmatprep.mubr.msk.bf16.mxu1 %vm848_vm13, %v14085_v33  ;;  %v14088_v33 = vcombine.low %v12094_v22, %v12123_v28  ;;  %v14089_v22 = vcombine.high %v12164_v11, %v12177_v15  ;;  %v10336_v28 = vld [vmem:[%s13871_s4 + $0x178] sm:$0xff]   ;;  %v5954_v11 = vshll.u32 %v5612_v16, 16 }
 0x3f2   :  { %5588 = vmatmul.mubr.bf16.gmra.mrb[28].mxu1 %v14086_v6  ;;  %v10334_v6 = vld [vmem:[%s13871_s4 + $0x170] sm:$0xff]  }
 0x3f3   :  { %9184 = vmatprep.mubr.msk.bf16.mxu1 %vm848_vm13, %v9159_v24  ;;  %v10332_v24 = vld [vmem:[%s13871_s4 + $0x168] sm:$0xff]  }
 0x3fa   :  { %5838 = vmatmul.mubr.bf16.vlgmr.msra.gmra.mrb[0].mxu1 %v9158_v41  ;;  %v10339_v41 = vld [vmem:[%s13871_s4 + $0x180] sm:$0xff]  }
 0x3fb   :  { %9185 = vmatprep.mubr.msk.bf16.mxu1 %vm848_vm13, %v9161_v13  ;;  %6336 = vmatpush1.bf16.msra.mxu1 %v10319_v27  ;;  %v9164_v27 = vcombine.low %v10415_v34, %v13108_v21  ;;  %v14091_v13 = vld [vmem:[#allocation3_spill] sm:$0xff] }
 0x3fc   :  { %6337 = vmatprep.subr.bf16.mxu1 %v14000_v43  ;;  %v14093_v15 = vcombine.low %v14091_v13, %v12205_v19 }
 0x3ff   :  { %6338 = vmatpush1.bf16.msra.mxu1 %v10321_v37  ;;  %v14092_v37 = vcombine.high %v14091_v13, %v12205_v19  ;;  %v5982_v19 = vshll.u32 %v12647_v7, 16 }
 0x400   :  { %6339 = vmatprep.subr.bf16.mxu1 %v14000_v43 }
 0x402   :  { %5846 = vmatmul.mubr.bf16.gmra.mrb[4].mxu1 %v9160_v1  ;;  %v5965_v1 = vshrl.u32 %v12669_v8, 16 }
 0x403   :  { %9186 = vmatprep.mubr.msk.bf16.mxu1 %vm848_vm13, %v14087_v36  ;;  %6340 = vmatpush1.bf16.msra.mxu1 %v10323_v53  ;;  %v10341_v53 = vld [vmem:[%s13871_s4 + $0x188] sm:$0xff]   ;;  %v5968_v36 = vshll.u32 %v12669_v8, 16 }
 0x404   :  { %6341 = vmatprep.subr.bf16.mxu1 %v14000_v43 }
 0x405   :  { %v5970_v34 = vrot.slane %v5968_v36, 5 }
 0x407   :  { %6342 = vmatpush1.bf16.msra.mxu1 %v10326_v5  ;;  %v5951_v5 = vshrl.u32 %v5612_v16, 16  ;;  %v14095_v16 = vld [vmem:[#allocation9_spill] sm:$0xff] }
 0x408   :  { %6343 = vmatprep.subr.bf16.mxu1 %v14000_v43 }
 0x40a   :  { %5854 = vmatmul.mubr.bf16.gmra.mrb[8].mxu1 %v14088_v33  ;;  %v5953_v33 = vrot.slane %v5951_v5, 4 }
 0x40b   :  { %9187 = vmatprep.mubr.msk.bf16.mxu1 %vm848_vm13, %v9165_v2  ;;  %6344 = vmatpush1.bf16.msra.mxu1 %v10329_v35  ;;  %v5967_v35 = vrot.slane %v5965_v1, 4  ;;  %v14094_v2 = vcombine.high %v12210_v56, %v12222_v10 }
 0x40c   :  { %6345 = vmatprep.subr.bf16.mxu1 %v14000_v43 }
 0x40f   :  { %6346 = vmatpush1.bf16.msra.mxu1 %v10332_v24  ;;  %v5956_v24 = vrot.slane %v5954_v11, 5 }
 0x410   :  { %6347 = vmatprep.subr.bf16.mxu1 %v14000_v43 }
 0x412   :  { %5862 = vmatmul.mubr.bf16.gmra.mrb[12].mxu1 %v9164_v27  ;;  %v5971_v27 = vor.u32 %v5970_v34, %v5967_v35  ;;  %v5984_v35 = vrot.slane %v5982_v19, 5 }
 0x413   :  { %9188 = vmatprep.mubr.msk.bf16.mxu1 %vm848_vm13, %v14089_v22  ;;  %6348 = vmatpush1.bf16.msra.mxu1 %v10334_v6  ;;  %v13161_v6 = vld [vmem:[#allocation2 + $0x120] sm:$0xff]  ;;  %v5957_v22 = vor.u32 %v5956_v24, %v5953_v33 }
 0x414   :  { %6349 = vmatprep.subr.bf16.mxu1 %v14000_v43  ;;  %v5972_v36 = vrot.slane %v5971_v27, 4  ;;  %v14099_v27 = vld [vmem:[#allocation10_spill] sm:$0xff] }
 0x415   :  { %v5958_v5 = vrot.slane %v5957_v22, 4 }
 0x417   :  { %6350 = vmatpush1.bf16.msra.mxu1 %v10336_v28  ;;  %v5974_v28 = vshll.u32 %v14095_v16, 16 }
 0x418   :  { %6351 = vmatprep.subr.bf16.mxu1 %v14000_v43 }
 0x419   :  { %v5976_v11 = vrot.slane %v5974_v28, 5 }
 0x41a   :  { %5870 = vmatmul.mubr.bf16.gmra.mrb[16].mxu1 %v14090_v54  ;;  %v10416_v54 = vld [vmem:[#allocation2 + $0x110] sm:$0xff] }
 0x41b   :  { %9189 = vmatprep.mubr.msk.bf16.mxu1 %vm848_vm13, %v14092_v37  ;;  %6352 = vmatpush1.bf16.msra.mxu1 %v10339_v41  ;;  %v5979_v41 = vshrl.u32 %v12647_v7, 16  ;;  %v9173_v13 = vcombine.high %v10416_v54, %v13161_v6  ;;  %v14096_v37 = vcombine.low %v12210_v56, %v12222_v10  ;;  %v9172_v33 = vcombine.low %v10416_v54, %v13161_v6  ;;  %v14098_v10 = vld [vmem:[#allocation11_spill] sm:$0xff] }
 0x41c   :  { %6353 = vmatprep.subr.bf16.mxu1 %v14000_v43  ;;  %v6002_v16 = vshll.u32 %v14098_v10, 16  ;;  %v6049_v54 = vshrl.u32 %v13108_v21, 16  ;;  %v10343_v10 = vld [vmem:[%s13871_s4 + $0x198] sm:$0xff]  }
 0x41e   :  { %v6004_v28 = vrot.slane %v6002_v16, 5 }
 0x41f   :  { %6354 = vmatpush1.bf16.msra.mxu1 %v10341_v53  ;;  %v14097_v53 = vld [vmem:[#allocation8_spill] sm:$0xff] }
 0x420   :  { %6721 = vmatprep.subr.bf16.mxu1 %v14000_v43  ;;  %v5960_v1 = vshll.u32 %v14097_v53, 16  ;;  %v6005_v19 = vsel %vm10692_vm12, %v12514_v59, %v6004_v28  ;;  %v6052_v53 = vshll.u32 %v13108_v21, 16 }
 0x422   :  { %5878 = vmatmul.mubr.bf16.gmra.mrb[20].mxu1 %v14093_v15  ;;  %v5981_v15 = vrot.slane %v5979_v41, 4  ;;  %v5962_v34 = vrot.slane %v5960_v1, 5  ;;  %v10342_v1 = vld [vmem:[%s13871_s4 + $0x190] sm:$0xff]   ;;  %v6054_v59 = vrot.slane %v6052_v53, 5 }
 0x423   :  { %9190 = vmatprep.mubr.msk.bf16.mxu1 %vm848_vm13, %v14094_v2  ;;  %v5977_v2 = vsel %vm10692_vm12, %v5972_v36, %v5976_v11  ;;  %v14100_v11 = vld [vmem:[#allocation13_spill] sm:$0xff] }
 0x424   :  { %v5963_v24 = vsel %vm10692_vm12, %v5958_v5, %v5962_v34  ;;  %v5985_v56 = vor.u32 %v5984_v35, %v5981_v15  ;;  %v6030_v15 = vshll.u32 %v14100_v11, 16  ;;  %v14101_v34 = vld [vmem:[#allocation12_spill] sm:$0xff] }
 0x425   :  { %v9212_v36 = vcombine.low %v5963_v24, %v5977_v2 }
 0x426   :  { %v5986_v22 = vrot.slane %v5985_v56, 4  ;;  %v6051_v56 = vrot.slane %v6049_v54, 4 }
 0x42a   :  { %5886 = vmatmul.mubr.bf16.gmra.mrb[24].mxu1 %v14096_v37  ;;  %v9213_v37 = vcombine.high %v5963_v24, %v5977_v2  ;;  %v6032_v2 = vrot.slane %v6030_v15, 5  ;;  %v5934_v24 = vld [vmem:[#allocation2 + $0xb0] sm:$0xff] }
 0x42b   :  { %9191 = vmatprep.mubr.msk.bf16.mxu1 %vm848_vm13, %v9173_v13  ;;  %v5988_v13 = vshll.u32 %v14099_v27, 16  ;;  %v6055_v27 = vor.u32 %v6054_v59, %v6051_v56  ;;  %v6063_v53 = vshrl.u32 %v5934_v24, 16  ;;  %v10346_v56 = vld [vmem:[%s13871_s4 + $0x1b0] sm:$0xff]  }
 0x42d   :  { %v5990_v41 = vrot.slane %v5988_v13, 5 }
 0x42f   :  { %v5991_v5 = vsel %vm10692_vm12, %v5986_v22, %v5990_v41  ;;  %v10344_v22 = vld [vmem:[%s13871_s4 + $0x1a0] sm:$0xff]   ;;  %v14102_v41 = vld [vmem:[#allocation18_spill] sm:$0xff] }
 0x430   :  { %v9215_v35 = vcombine.high %v5991_v5, %v6005_v19  ;;  %v9214_v13 = vcombine.low %v5991_v5, %v6005_v19  ;;  %v6058_v54 = vshll.u32 %v14102_v41, 16  ;;  %v6056_v19 = vrot.slane %v6055_v27, 4  ;;  %v10345_v5 = vld [vmem:[%s13871_s4 + $0x1a8] sm:$0xff]   ;;  %v10348_v41 = vld [vmem:[%s13871_s4 + $0x1c0] sm:$0xff]  }
 0x431   :  { %v14104_v27 = vld [vmem:[#allocation20_spill] sm:$0xff] }
 0x432   :  { %5894 = vmatmul.mubr.bf16.gmra.mrb[28].mxu1 %v9172_v33  ;;  %v6016_v33 = vshll.u32 %v14101_v34, 16  ;;  %v6060_v15 = vrot.slane %v6058_v54, 5 }
 0x433   :  { %9238 = vmatprep.mubr.msk.bf16.mxu1 %vm848_vm13, %v9213_v37  ;;  %v6033_v37 = vsel %vm10692_vm12, %v12729_v38, %v6032_v2  ;;  %v14103_v38 = vld [vmem:[#allocation15_spill] sm:$0xff] }
 0x434   :  { %v6018_v16 = vrot.slane %v6016_v33, 5  ;;  %v6044_v11 = vshll.u32 %v14103_v38, 16  ;;  %v6061_v33 = vsel %vm10692_vm12, %v6056_v19, %v6060_v15  ;;  %v14105_v38 = vld [vmem:[#allocation23_spill] sm:$0xff]  ;;  %v6161_v15 = vshrl.u32 %v13161_v6, 16 }
 0x436   :  { %v6019_v28 = vsel %vm10692_vm12, %v12526_v18, %v6018_v16  ;;  %v6065_v18 = vrot.slane %v6063_v53, 4  ;;  %v6046_v34 = vrot.slane %v6044_v11, 5  ;;  %v6100_v11 = vshll.u32 %v14105_v38, 16 }
 0x437   :  { %v9216_v59 = vcombine.low %v6019_v28, %v6033_v37 }
 0x43a   :  { %6368 = vmatmul.mubr.bf16.vlgmr.msra.gmra.mrb[0].mxu1 %v9212_v36  ;;  %v9217_v36 = vcombine.high %v6019_v28, %v6033_v37  ;;  %v10347_v37 = vld [vmem:[%s13871_s4 + $0x1b8] sm:$0xff]  }
 0x43b   :  { %9239 = vmatprep.mubr.msk.bf16.mxu1 %vm848_vm13, %v9215_v35  ;;  %6722 = vmatpush1.bf16.msra.mxu1 %v10342_v1  ;;  %v6066_v1 = vshll.u32 %v5934_v24, 16  ;;  %v6086_v24 = vshll.u32 %v12557_v50, 16 }
 0x43c   :  { %6723 = vmatprep.subr.bf16.mxu1 %v14000_v43 }
 0x43d   :  { %v6068_v35 = vrot.slane %v6066_v1, 5  ;;  %v6088_v28 = vrot.slane %v6086_v24, 5  ;;  %v6114_v1 = vshll.u32 %v12580_v23, 16  ;;  %v6163_v24 = vrot.slane %v6161_v15, 4  ;;  %v14111_v15 = vld [vmem:[#allocation17_spill] sm:$0xff] }
 0x43f   :  { %6724 = vmatpush1.bf16.msra.mxu1 %v10343_v10  ;;  %v6047_v10 = vsel %vm10692_vm12, %v12755_v47, %v6046_v34  ;;  %v6069_v2 = vor.u32 %v6068_v35, %v6065_v18  ;;  %v6089_v50 = vsel %vm10692_vm12, %v12805_v3, %v6088_v28  ;;  %v10349_v3 = vld [vmem:[%s13871_s4 + $0x1c8] sm:$0xff]   ;;  %v6116_v19 = vrot.slane %v6114_v1, 5  ;;  %v10350_v35 = vld [vmem:[%s13871_s4 + $0x1d0] sm:$0xff]  }
 0x440   :  { %6725 = vmatprep.subr.bf16.mxu1 %v14000_v43  ;;  %v9219_v16 = vcombine.high %v6047_v10, %v6061_v33  ;;  %v9218_v54 = vcombine.low %v6047_v10, %v6061_v33  ;;  %v6164_v18 = vshll.u32 %v13161_v6, 16 }
 0x441   :  { %v6117_v23 = vsel %vm10692_vm12, %v12822_v39, %v6116_v19  ;;  %v14107_v39 = vld [vmem:[#allocation27_spill] sm:$0xff] }
 0x442   :  { %6376 = vmatmul.mubr.bf16.gmra.mrb[4].mxu1 %v9214_v13  ;;  %v6072_v13 = vshll.u32 %v14104_v27, 16  ;;  %v10351_v27 = vld [vmem:[%s13871_s4 + $0x1d8] sm:$0xff]  }
 0x443   :  { %9240 = vmatprep.mubr.msk.bf16.mxu1 %vm848_vm13, %v9217_v36  ;;  %6726 = vmatpush1.bf16.msra.mxu1 %v10344_v22  ;;  %v6070_v22 = vrot.slane %v6069_v2, 4  ;;  %v6128_v2 = vshll.u32 %v14107_v39, 16 }
 0x444   :  { %6727 = vmatprep.subr.bf16.mxu1 %v14000_v43  ;;  %v6074_v47 = vrot.slane %v6072_v13, 5 }
 0x446   :  { %v6075_v53 = vsel %vm10692_vm12, %v6070_v22, %v6074_v47 }
 0x447   :  { %6728 = vmatpush1.bf16.msra.mxu1 %v10345_v5  ;;  %v9221_v36 = vcombine.high %v6075_v53, %v6089_v50  ;;  %v6102_v5 = vrot.slane %v6100_v11, 5  ;;  %v9220_v34 = vcombine.low %v6075_v53, %v6089_v50  ;;  %v14108_v50 = vld [vmem:[#allocation35_spill] sm:$0xff]  ;;  %v14109_v53 = vld [vmem:[#allocation30_spill] sm:$0xff] }
 0x448   :  { %6729 = vmatprep.subr.bf16.mxu1 %v14000_v43  ;;  %v6156_v1 = vshll.u32 %v14109_v53, 16  ;;  %v14127_v53 = vld [vmem:[#allocation32_spill] sm:$0xff] }
 0x449   :  { %v6103_v33 = vsel %vm10692_vm12, %v12807_v61, %v6102_v5  ;;  %v6130_v61 = vrot.slane %v6128_v2, 5  ;;  %v14118_v2 = vld [vmem:[#allocation24_spill] sm:$0xff] }
 0x44a   :  { %6384 = vmatmul.mubr.bf16.gmra.mrb[8].mxu1 %v9216_v59  ;;  %v9223_v10 = vcombine.high %v6103_v33, %v6117_v23  ;;  %v9222_v28 = vcombine.low %v6103_v33, %v6117_v23  ;;  %v14110_v23 = vld [vmem:[#allocation16_spill] sm:$0xff]  ;;  %v14115_v33 = vld [vmem:[#allocation22_spill] sm:$0xff] }
 0x44b   :  { %9241 = vmatprep.mubr.msk.bf16.mxu1 %vm848_vm13, %v9219_v16  ;;  %6730 = vmatpush1.bf16.msra.mxu1 %v10346_v56  ;;  %v14106_v56 = vld [vmem:[#allocation28_spill] sm:$0xff]  ;;  %v6166_v16 = vrot.slane %v6164_v18, 5  ;;  %v6131_v47 = vsel %vm10692_vm12, %v12826_v31, %v6130_v61  ;;  %v14112_v18 = vcombine.high %v14110_v23, %v14111_v15 }
 0x44c   :  { %6731 = vmatprep.subr.bf16.mxu1 %v14000_v43  ;;  %v6142_v59 = vshll.u32 %v14106_v56, 16 }
 0x44d   :  { %v6167_v22 = vor.u32 %v6166_v16, %v6163_v24  ;;  %v14119_v24 = vld [vmem:[#allocation25_spill] sm:$0xff] }
 0x44e   :  { %v6144_v13 = vrot.slane %v6142_v59, 5  ;;  %v10353_v59 = vld [vmem:[%s13871_s4 + $0x1e8] sm:$0xff]   ;;  %v14120_v16 = vcombine.high %v14118_v2, %v14119_v24  ;;  %v14121_v61 = vcombine.low %v14118_v2, %v14119_v24  ;;  %v14145_v24 = vld [vmem:[#allocation5_spill] sm:$0xff] }
 0x44f   :  { %6732 = vmatpush1.bf16.msra.mxu1 %v10347_v37  ;;  %v14144_v2 = vld [vmem:[#allocation4_spill] sm:$0xff] }
 0x450   :  { %6733 = vmatprep.subr.bf16.mxu1 %v14000_v43  ;;  %v6145_v37 = vsel %vm10692_vm12, %v12837_v63, %v6144_v13  ;;  %v6158_v63 = vrot.slane %v6156_v1, 5  ;;  %v10356_v13 = vld [vmem:[%s13871_s4 + $0x200] sm:$0xff]  }
 0x452   :  { %6392 = vmatmul.mubr.bf16.gmra.mrb[12].mxu1 %v9218_v54  ;;  %v9225_v54 = vcombine.high %v6131_v47, %v6145_v37  ;;  %v6159_v31 = vsel %vm10692_vm12, %v12839_v26, %v6158_v63  ;;  %v14114_v26 = vld [vmem:[#allocation21_spill] sm:$0xff] }
 0x453   :  { %9242 = vmatprep.mubr.msk.bf16.mxu1 %vm848_vm13, %v9221_v36  ;;  %6734 = vmatpush1.bf16.msra.mxu1 %v10348_v41  ;;  %v6170_v41 = vshll.u32 %v14108_v50, 16  ;;  %v6168_v36 = vrot.slane %v6167_v22, 4  ;;  %v14116_v56 = vcombine.high %v14114_v26, %v14115_v33  ;;  %v14117_v39 = vcombine.low %v14114_v26, %v14115_v33  ;;  %v14123_v22 = vld [vmem:[#allocation29_spill] sm:$0xff]  ;;  %v14139_v26 = vld [vmem:[#allocation42_spill] sm:$0xff] }
 0x454   :  { %6735 = vmatprep.subr.bf16.mxu1 %v14000_v43  ;;  %v10358_v50 = vld [vmem:[%s13871_s4 + $0x210] sm:$0xff]  }
 0x455   :  { %v6172_v38 = vrot.slane %v6170_v41, 5 }
 0x457   :  { %6736 = vmatpush1.bf16.msra.mxu1 %v10349_v3  ;;  %v6173_v11 = vsel %vm10692_vm12, %v6168_v36, %v6172_v38  ;;  %v9224_v3 = vcombine.low %v6131_v47, %v6145_v37  ;;  %v14122_v37 = vld [vmem:[#allocation26_spill] sm:$0xff]  ;;  %v10357_v47 = vld [vmem:[%s13871_s4 + $0x208] sm:$0xff]   ;;  %v10360_v38 = vld [vmem:[%s13871_s4 + $0x220] sm:$0xff]  }
 0x458   :  { %6737 = vmatprep.subr.bf16.mxu1 %v14000_v43  ;;  %v9227_v19 = vcombine.high %v6159_v31, %v6173_v11  ;;  %v9226_v5 = vcombine.low %v6159_v31, %v6173_v11  ;;  %v14125_v41 = vcombine.low %v14122_v37, %v14123_v22  ;;  %v10359_v36 = vld [vmem:[%s13871_s4 + $0x218] sm:$0xff]  }
 0x459   :  { %v14130_v11 = vld [vmem:[#allocation34_spill] sm:$0xff] }
 0x45a   :  { %6400 = vmatmul.mubr.bf16.gmra.mrb[16].mxu1 %v9220_v34  ;;  %v14113_v34 = vcombine.low %v14110_v23, %v14111_v15  ;;  %v14134_v23 = vld [vmem:[#allocation37_spill] sm:$0xff]  ;;  %v14135_v15 = vld [vmem:[#allocation38_spill] sm:$0xff] }
 0x45b   :  { %9243 = vmatprep.mubr.msk.bf16.mxu1 %vm848_vm13, %v9223_v10  ;;  %6738 = vmatpush1.bf16.msra.mxu1 %v10350_v35  ;;  %v10352_v35 = vld [vmem:[%s13871_s4 + $0x1e0] sm:$0xff]   ;;  %v10354_v10 = vld [vmem:[%s13871_s4 + $0x1f0] sm:$0xff]  }
 0x45c   :  { %6739 = vmatprep.subr.bf16.mxu1 %v14000_v43 }
 0x45f   :  { %6740 = vmatpush1.bf16.msra.mxu1 %v10351_v27  ;;  %v10355_v27 = vld [vmem:[%s13871_s4 + $0x1f8] sm:$0xff]  }
 0x460   :  { %7027 = vmatprep.subr.bf16.mxu1 %v14000_v43 }
 0x462   :  { %6408 = vmatmul.mubr.bf16.gmra.mrb[20].mxu1 %v9222_v28  ;;  %v14124_v28 = vcombine.high %v14122_v37, %v14123_v22  ;;  %v10372_v22 = vld [vmem:[%s13871_s4 + $0x248] sm:$0xff]  }
 0x463   :  { %9244 = vmatprep.mubr.msk.bf16.mxu1 %vm848_vm13, %v9225_v54  ;;  %v14126_v54 = vld [vmem:[#allocation31_spill] sm:$0xff] }
 0x464   :  { %v14128_v1 = vcombine.high %v14126_v54, %v14127_v53  ;;  %v14129_v63 = vcombine.low %v14126_v54, %v14127_v53  ;;  %v10378_v54 = vld [vmem:[%s13871_s4 + $0x258] sm:$0xff]   ;;  %v10380_v53 = vld [vmem:[%s13871_s4 + $0x260] sm:$0xff]  }
 0x46a   :  { %6416 = vmatmul.mubr.bf16.gmra.mrb[24].mxu1 %v9224_v3  ;;  %v14131_v3 = vld [vmem:[#allocation36_spill] sm:$0xff] }
 0x46b   :  { %9245 = vmatprep.mubr.msk.bf16.mxu1 %vm848_vm13, %v9227_v19  ;;  %v14132_v31 = vcombine.high %v14130_v11, %v14131_v3  ;;  %v10363_v19 = vld [vmem:[%s13871_s4 + $0x228] sm:$0xff]  }
 0x472   :  { %6424 = vmatmul.mubr.bf16.gmra.mrb[28].mxu1 %v9226_v5  ;;  %v14133_v5 = vcombine.low %v14130_v11, %v14131_v3  ;;  %v10382_v11 = vld [vmem:[%s13871_s4 + $0x268] sm:$0xff]  }
 0x473   :  { %9308 = vmatprep.mubr.msk.bf16.mxu1 %vm848_vm13, %v14112_v18  ;;  %v14136_v18 = vcombine.high %v14134_v23, %v14135_v15 }
 0x47a   :  { %6754 = vmatmul.mubr.bf16.vlgmr.msra.gmra.mrb[0].mxu1 %v14113_v34  ;;  %v14138_v34 = vld [vmem:[#allocation41_spill] sm:$0xff] }
 0x47b   :  { %9309 = vmatprep.mubr.msk.bf16.mxu1 %vm848_vm13, %v14116_v56  ;;  %7028 = vmatpush1.bf16.msra.mxu1 %v10352_v35  ;;  %v14137_v35 = vcombine.low %v14134_v23, %v14135_v15  ;;  %v14140_v33 = vcombine.high %v14138_v34, %v14139_v26  ;;  %v14141_v56 = vcombine.low %v14138_v34, %v14139_v26  ;;  %v7142_v23 = vld [vmem:[#allocation2 + $0x30] sm:$0xff]  ;;  %v10387_v15 = vld [vmem:[%s13871_s4 + $0x278] sm:$0xff]  }
 0x47c   :  { %7029 = vmatprep.subr.bf16.mxu1 %v14000_v43  ;;  %v7190_v34 = vshll.u32 %v7142_v23, 16 }
 0x47f   :  { %7030 = vmatpush1.bf16.msra.mxu1 %v10353_v59  ;;  %v14142_v59 = vcombine.high %v12669_v8, %v12647_v7 }
 0x480   :  { %7031 = vmatprep.subr.bf16.mxu1 %v14000_v43 }
 0x482   :  { %6762 = vmatmul.mubr.bf16.gmra.mrb[4].mxu1 %v14117_v39  ;;  %v14143_v39 = vcombine.low %v12669_v8, %v12647_v7  ;;  %v14147_v7 = vcombine.low %v14144_v2, %v14145_v24  ;;  %v14148_v8 = vld [vmem:[#allocation6_spill] sm:$0xff] }
 0x483   :  { %9310 = vmatprep.mubr.msk.bf16.mxu1 %vm848_vm13, %v14120_v16  ;;  %7032 = vmatpush1.bf16.msra.mxu1 %v10354_v10  ;;  %v10365_v10 = vld [vmem:[%s13871_s4 + $0x230] sm:$0xff]   ;;  %v14146_v16 = vcombine.high %v14144_v2, %v14145_v24  ;;  %v14161_v2 = vld [vmem:[#allocation40_spill] sm:$0xff] }
 0x484   :  { %7033 = vmatprep.subr.bf16.mxu1 %v14000_v43 }
 0x487   :  { %7034 = vmatpush1.bf16.msra.mxu1 %v10355_v27  ;;  %v10367_v27 = vld [vmem:[%s13871_s4 + $0x238] sm:$0xff]  }
 0x488   :  { %7035 = vmatprep.subr.bf16.mxu1 %v14000_v43 }
 0x48a   :  { %6770 = vmatmul.mubr.bf16.gmra.mrb[8].mxu1 %v14121_v61  ;;  %v14149_v61 = vld [vmem:[#allocation7_spill] sm:$0xff] }
 0x48b   :  { %9311 = vmatprep.mubr.msk.bf16.mxu1 %vm848_vm13, %v14124_v28  ;;  %7036 = vmatpush1.bf16.msra.mxu1 %v10356_v13  ;;  %v10369_v13 = vld [vmem:[%s13871_s4 + $0x240] sm:$0xff]   ;;  %v14150_v37 = vcombine.high %v14148_v8, %v14149_v61  ;;  %v13410_v28 = vld [vmem:[#allocation2 + $0x90] sm:$0xff] }
 0x48c   :  { %7037 = vmatprep.subr.bf16.mxu1 %v14000_v43 }
 0x48f   :  { %7038 = vmatpush1.bf16.msra.mxu1 %v10357_v47  ;;  %v10375_v47 = vld [vmem:[%s13871_s4 + $0x250] sm:$0xff]  }
 0x490   :  { %7039 = vmatprep.subr.bf16.mxu1 %v14000_v43 }
 0x492   :  { %6778 = vmatmul.mubr.bf16.gmra.mrb[12].mxu1 %v14125_v41  ;;  %v14151_v41 = vcombine.low %v14148_v8, %v14149_v61  ;;  %v7196_v61 = vshll.u32 %v12884_v32, 16 }
 0x493   :  { %9312 = vmatprep.mubr.msk.bf16.mxu1 %vm848_vm13, %v14128_v1  ;;  %7040 = vmatpush1.bf16.msra.mxu1 %v10358_v50  ;;  %v9343_v50 = vcombine.high %v13108_v21, %v13410_v28  ;;  %v9342_v1 = vcombine.low %v13108_v21, %v13410_v28  ;;  %v10385_v21 = vld [vmem:[%s13871_s4 + $0x270] sm:$0xff]  }
 0x494   :  { %7041 = vmatprep.subr.bf16.mxu1 %v14000_v43 }
 0x497   :  { %7042 = vmatpush1.bf16.msra.mxu1 %v10359_v36  ;;  %v14152_v36 = vld [vmem:[#allocation14_spill] sm:$0xff] }
 0x498   :  { %7043 = vmatprep.subr.bf16.mxu1 %v14000_v43 }
 0x49a   :  { %6786 = vmatmul.mubr.bf16.gmra.mrb[16].mxu1 %v14129_v63 }
 0x49b   :  { %9313 = vmatprep.mubr.msk.bf16.mxu1 %vm848_vm13, %v14132_v31  ;;  %7044 = vmatpush1.bf16.msra.mxu1 %v10360_v38  ;;  %v14153_v38 = vld [vmem:[#allocation19_spill] sm:$0xff]  ;;  %v14156_v31 = vld [vmem:[#allocation33_spill] sm:$0xff] }
 0x49c   :  { %7045 = vmatprep.subr.bf16.mxu1 %v14000_v43  ;;  %v14154_v63 = vcombine.high %v14152_v36, %v14153_v38  ;;  %v14155_v3 = vcombine.low %v14152_v36, %v14153_v38 }
 0x49f   :  { %7046 = vmatpush1.bf16.msra.mxu1 %v10363_v19  ;;  %v14157_v19 = vld [vmem:[#allocation39_spill] sm:$0xff] }
 0x4a0   :  { %7557 = vmatprep.subr.bf16.mxu1 %v14000_v43 }
 0x4a2   :  { %6794 = vmatmul.mubr.bf16.gmra.mrb[20].mxu1 %v14133_v5  ;;  %v14158_v5 = vcombine.high %v14156_v31, %v14157_v19 }
 0x4a3   :  { %9314 = vmatprep.mubr.msk.bf16.mxu1 %vm848_vm13, %v14136_v18  ;;  %v7140_v18 = vld [vmem:[#allocation2 + $0x20] sm:$0xff] }
 0x4a4   :  { %v7173_v26 = vshrl.u32 %v7140_v18, 16 }
 0x4aa   :  { %6802 = vmatmul.mubr.bf16.gmra.mrb[24].mxu1 %v14137_v35  ;;  %v7187_v35 = vshrl.u32 %v7142_v23, 16 }
 0x4ab   :  { %9315 = vmatprep.mubr.msk.bf16.mxu1 %vm848_vm13, %v14140_v33  ;;  %v7176_v33 = vshll.u32 %v7140_v18, 16 }
 0x4b2   :  { %6810 = vmatmul.mubr.bf16.gmra.mrb[28].mxu1 %v14141_v56  ;;  %v14159_v56 = vcombine.low %v14156_v31, %v14157_v19  ;;  %v7271_v31 = vshrl.u32 %v13410_v28, 16  ;;  %v7274_v19 = vshll.u32 %v13410_v28, 16  ;;  %v10389_v28 = vld [vmem:[%s13871_s4 + $0x288] sm:$0xff]  }
 0x4b3   :  { %9362 = vmatprep.mubr.msk.bf16.mxu1 %vm848_vm13, %v14142_v59  ;;  %v7189_v59 = vrot.slane %v7187_v35, 4 }
 0x4b4   :  { %v7273_v18 = vrot.slane %v7271_v31, 4  ;;  %v7276_v35 = vrot.slane %v7274_v19, 5 }
 0x4ba   :  { %7060 = vmatmul.mubr.bf16.vlgmr.msra.gmra.mrb[0].mxu1 %v14143_v39  ;;  %v14160_v39 = vld [vmem:[#allocation43_spill] sm:$0xff] }
 0x4bb   :  { %9363 = vmatprep.mubr.msk.bf16.mxu1 %vm848_vm13, %v14146_v16  ;;  %7558 = vmatpush1.bf16.msra.mxu1 %v10365_v10  ;;  %v7192_v10 = vrot.slane %v7190_v34, 5  ;;  %v14162_v24 = vcombine.high %v14160_v39, %v14161_v2  ;;  %v7175_v16 = vrot.slane %v7173_v26, 4  ;;  %v14165_v34 = vld [vmem:[#allocation44_spill] sm:$0xff]  ;;  %v14166_v26 = vld [vmem:[#allocation45_spill] sm:$0xff] }
 0x4bc   :  { %7559 = vmatprep.subr.bf16.mxu1 %v14000_v43 }
 0x4bf   :  { %7560 = vmatpush1.bf16.msra.mxu1 %v10367_v27  ;;  %v7178_v27 = vrot.slane %v7176_v33, 5  ;;  %v14167_v33 = vcombine.high %v14165_v34, %v14166_v26 }
 0x4c0   :  { %7561 = vmatprep.subr.bf16.mxu1 %v14000_v43 }
 0x4c1   :  { %v7179_v8 = vor.u32 %v7178_v27, %v7175_v16 }
 0x4c2   :  { %7068 = vmatmul.mubr.bf16.gmra.mrb[4].mxu1 %v14147_v7  ;;  %v7193_v7 = vor.u32 %v7192_v10, %v7189_v59  ;;  %v7277_v59 = vor.u32 %v7276_v35, %v7273_v18  ;;  %v7280_v10 = vshll.u32 %v12924_v25, 16  ;;  %v10391_v25 = vld [vmem:[%s13871_s4 + $0x298] sm:$0xff]  }
 0x4c3   :  { %9364 = vmatprep.mubr.msk.bf16.mxu1 %vm848_vm13, %v14150_v37  ;;  %7562 = vmatpush1.bf16.msra.mxu1 %v10369_v13  ;;  %v13463_v13 = vld [vmem:[#allocation2 + $0x130] sm:$0xff] }
 0x4c4   :  { %7563 = vmatprep.subr.bf16.mxu1 %v14000_v43  ;;  %v9351_v37 = vcombine.high %v13161_v6, %v13463_v13  ;;  %v9350_v32 = vcombine.low %v13161_v6, %v13463_v13  ;;  %v7278_v27 = vrot.slane %v7277_v59, 4  ;;  %v7383_v19 = vshrl.u32 %v13463_v13, 16 }
 0x4c6   :  { %v7385_v35 = vrot.slane %v7383_v19, 4 }
 0x4c7   :  { %7564 = vmatpush1.bf16.msra.mxu1 %v10372_v22  ;;  %v14163_v22 = vcombine.low %v14160_v39, %v14161_v2  ;;  %v10390_v39 = vld [vmem:[%s13871_s4 + $0x290] sm:$0xff]   ;;  %v7266_v2 = vshll.u32 %v12922_v17, 16 }
 0x4c8   :  { %7565 = vmatprep.subr.bf16.mxu1 %v14000_v43 }
 0x4ca   :  { %7076 = vmatmul.mubr.bf16.gmra.mrb[8].mxu1 %v14151_v41  ;;  %v7194_v41 = vrot.slane %v7193_v7, 4  ;;  %v7282_v7 = vrot.slane %v7280_v10, 5  ;;  %v7392_v10 = vshll.u32 %v12978_v49, 16 }
 0x4cb   :  { %9365 = vmatprep.mubr.msk.bf16.mxu1 %vm848_vm13, %v9343_v50  ;;  %7566 = vmatpush1.bf16.msra.mxu1 %v10375_v47  ;;  %v14164_v47 = vld [vmem:[#allocation52_spill] sm:$0xff] }
 0x4cc   :  { %7567 = vmatprep.subr.bf16.mxu1 %v14000_v43  ;;  %v7182_v50 = vshll.u32 %v14164_v47, 16  ;;  %v7283_v47 = vsel %vm10692_vm12, %v7278_v27, %v7282_v7  ;;  %v7394_v27 = vrot.slane %v7392_v10, 5  ;;  %v14181_v7 = vld [vmem:[#allocation53_spill] sm:$0xff] }
 0x4cf   :  { %7568 = vmatpush1.bf16.msra.mxu1 %v10378_v54  ;;  %v7180_v54 = vrot.slane %v7179_v8, 4  ;;  %v14169_v8 = vld [vmem:[#allocation46_spill] sm:$0xff] }
 0x4d0   :  { %7569 = vmatprep.subr.bf16.mxu1 %v14000_v43 }
 0x4d2   :  { %7084 = vmatmul.mubr.bf16.gmra.mrb[12].mxu1 %v9342_v1  ;;  %v7184_v1 = vrot.slane %v7182_v50, 5  ;;  %v10392_v50 = vld [vmem:[%s13871_s4 + $0x2a0] sm:$0xff]  }
 0x4d3   :  { %9366 = vmatprep.mubr.msk.bf16.mxu1 %vm848_vm13, %v14154_v63  ;;  %7570 = vmatpush1.bf16.msra.mxu1 %v10380_v53  ;;  %v7198_v53 = vrot.slane %v7196_v61, 5  ;;  %v14170_v61 = vld [vmem:[#allocation47_spill] sm:$0xff] }
 0x4d4   :  { %7571 = vmatprep.subr.bf16.mxu1 %v14000_v43  ;;  %v7185_v38 = vsel %vm10692_vm12, %v7180_v54, %v7184_v1  ;;  %v14172_v54 = vcombine.low %v14169_v8, %v14170_v61  ;;  %v10394_v1 = vld [vmem:[%s13871_s4 + $0x2b0] sm:$0xff]  }
 0x4d5   :  { %v7199_v36 = vsel %vm10692_vm12, %v7194_v41, %v7198_v53  ;;  %v10393_v53 = vld [vmem:[%s13871_s4 + $0x2a8] sm:$0xff]  }
 0x4d6   :  { %v9391_v63 = vcombine.high %v7185_v38, %v7199_v36  ;;  %v9390_v23 = vcombine.low %v7185_v38, %v7199_v36  ;;  %v14174_v38 = vld [vmem:[#allocation49_spill] sm:$0xff] }
 0x4d7   :  { %7572 = vmatpush1.bf16.msra.mxu1 %v10382_v11  ;;  %v7152_v11 = vld [vmem:[#allocation2 + $0x80] sm:$0xff] }
 0x4d8   :  { %7573 = vmatprep.subr.bf16.mxu1 %v14000_v43 }
 0x4da   :  { %7092 = vmatmul.mubr.bf16.gmra.mrb[16].mxu1 %v14155_v3  ;;  %v7260_v3 = vshll.u32 %v7152_v11, 16 }
 0x4db   :  { %9367 = vmatprep.mubr.msk.bf16.mxu1 %vm848_vm13, %v14158_v5  ;;  %7574 = vmatpush1.bf16.msra.mxu1 %v10385_v21  ;;  %v7257_v21 = vshrl.u32 %v7152_v11, 16  ;;  %v10388_v5 = vld [vmem:[%s13871_s4 + $0x280] sm:$0xff]   ;;  %v10395_v11 = vld [vmem:[%s13871_s4 + $0x2b8] sm:$0xff]  }
 0x4dc   :  { %7575 = vmatprep.subr.bf16.mxu1 %v14000_v43 }
 0x4dd   :  { %v7259_v6 = vrot.slane %v7257_v21, 4  ;;  %v7168_v21 = vld [vmem:[#allocation2 + $0x120] sm:$0xff] }
 0x4de   :  { %v7372_v31 = vshll.u32 %v7168_v21, 16 }
 0x4df   :  { %7576 = vmatpush1.bf16.msra.mxu1 %v10387_v15  ;;  %v7262_v15 = vrot.slane %v7260_v3, 5  ;;  %v7369_v3 = vshrl.u32 %v7168_v21, 16  ;;  %v8140_v21 = vld [vmem:[%s13874_s7 + $0x60] sm:$0xff] }
 0x4e0   :  { %7943 = vmatprep.subr.bf16.mxu1 %v14000_v43  ;;  %v7374_v18 = vrot.slane %v7372_v31, 5  ;;  %v8142_v31 = vld [vmem:[%s13874_s7 + $0x70] sm:$0xff] }
 0x4e2   :  { %7100 = vmatmul.mubr.bf16.gmra.mrb[20].mxu1 %v14159_v56  ;;  %v7263_v56 = vor.u32 %v7262_v15, %v7259_v6  ;;  %v7371_v15 = vrot.slane %v7369_v3, 4  ;;  %v8141_v3 = vld [vmem:[%s13874_s7 + $0x68] sm:$0xff] }
 0x4e3   :  { %9368 = vmatprep.mubr.msk.bf16.mxu1 %vm848_vm13, %v14162_v24  ;;  %v14168_v24 = vcombine.low %v14165_v34, %v14166_v26  ;;  %v14177_v26 = vld [vmem:[#allocation50_spill] sm:$0xff]  ;;  %v9610_v19 = vpack.c.bf16 %v8141_v3, %v8140_v21 }
 0x4e4   :  { %v7264_v16 = vrot.slane %v7263_v56, 4  ;;  %v7375_v56 = vor.u32 %v7374_v18, %v7371_v15  ;;  %v8227_v15 = vld [vmem:[%s13875_s9] sm:$0xff] }
 0x4ea   :  { %7108 = vmatmul.mubr.bf16.gmra.mrb[24].mxu1 %v14163_v22  ;;  %v7268_v22 = vrot.slane %v7266_v2, 5 }
 0x4eb   :  { %9369 = vmatprep.mubr.msk.bf16.mxu1 %vm848_vm13, %v9351_v37  ;;  %v14171_v37 = vcombine.high %v14169_v8, %v14170_v61  ;;  %v14182_v8 = vld [vmem:[#allocation54_spill] sm:$0xff] }
 0x4ec   :  { %v7269_v17 = vsel %vm10692_vm12, %v7264_v16, %v7268_v22  ;;  %v14183_v61 = vcombine.high %v14181_v7, %v14182_v8 }
 0x4ed   :  { %v9397_v41 = vcombine.high %v7269_v17, %v7283_v47  ;;  %v9396_v36 = vcombine.low %v7269_v17, %v7283_v47  ;;  %v14185_v17 = vld [vmem:[#allocation55_spill] sm:$0xff]  ;;  %v14186_v47 = vld [vmem:[#allocation56_spill] sm:$0xff] }
 0x4f2   :  { %7116 = vmatmul.mubr.bf16.gmra.mrb[28].mxu1 %v9350_v32  ;;  %v14173_v32 = vld [vmem:[#allocation48_spill] sm:$0xff] }
 0x4f3   :  { %9416 = vmatprep.mubr.msk.bf16.mxu1 %vm848_vm13, %v9391_v63  ;;  %v14175_v63 = vcombine.high %v14173_v32, %v14174_v38  ;;  %v14176_v6 = vcombine.low %v14173_v32, %v14174_v38 }
 0x4fa   :  { %7590 = vmatmul.mubr.bf16.vlgmr.msra.gmra.mrb[0].mxu1 %v9390_v23  ;;  %v10396_v23 = vld [vmem:[%s13871_s4 + $0x2c0] sm:$0xff]  }
 0x4fb   :  { %9417 = vmatprep.mubr.msk.bf16.mxu1 %vm848_vm13, %v14167_v33  ;;  %7944 = vmatpush1.bf16.msra.mxu1 %v10388_v5  ;;  %v7386_v5 = vshll.u32 %v13463_v13, 16  ;;  %v14178_v33 = vld [vmem:[#allocation51_spill] sm:$0xff]  ;;  %v10397_v13 = vld [vmem:[%s13871_s4 + $0x2c8] sm:$0xff]  }
 0x4fc   :  { %7945 = vmatprep.subr.bf16.mxu1 %v14000_v43  ;;  %v14180_v2 = vcombine.low %v14177_v26, %v14178_v33 }
 0x4fd   :  { %v7388_v34 = vrot.slane %v7386_v5, 5  ;;  %v8143_v5 = vld [vmem:[%s13874_s7 + $0x78] sm:$0xff] }
 0x4ff   :  { %7946 = vmatpush1.bf16.msra.mxu1 %v10389_v28  ;;  %v14179_v28 = vcombine.high %v14177_v26, %v14178_v33  ;;  %v7389_v59 = vor.u32 %v7388_v34, %v7385_v35 }
 0x500   :  { %7947 = vmatprep.subr.bf16.mxu1 %v14000_v43 }
 0x501   :  { %v7390_v16 = vrot.slane %v7389_v59, 4 }
 0x502   :  { %7598 = vmatmul.mubr.bf16.gmra.mrb[4].mxu1 %v14168_v24  ;;  %v7376_v24 = vrot.slane %v7375_v56, 4 }
 0x503   :  { %9418 = vmatprep.mubr.msk.bf16.mxu1 %vm848_vm13, %v14171_v37  ;;  %7948 = vmatpush1.bf16.msra.mxu1 %v10390_v39  ;;  %v7378_v39 = vshll.u32 %v12976_v48, 16  ;;  %v7395_v49 = vsel %vm10692_vm12, %v7390_v16, %v7394_v27 }
 0x504   :  { %7949 = vmatprep.subr.bf16.mxu1 %v14000_v43 }
 0x507   :  { %7950 = vmatpush1.bf16.msra.mxu1 %v10391_v25  ;;  %v14184_v25 = vcombine.low %v14181_v7, %v14182_v8 }
 0x508   :  { %7951 = vmatprep.subr.bf16.mxu1 %v14000_v43 }
 0x50a   :  { %7606 = vmatmul.mubr.bf16.gmra.mrb[8].mxu1 %v14172_v54  ;;  %v14190_v54 = vcombine.high %v12936_v30, %v14189_v62 }
 0x50b   :  { %9419 = vmatprep.mubr.msk.bf16.mxu1 %vm848_vm13, %v9397_v41  ;;  %7952 = vmatpush1.bf16.msra.mxu1 %v10392_v50  ;;  %v14187_v50 = vcombine.high %v14185_v17, %v14186_v47  ;;  %v14188_v41 = vcombine.low %v14185_v17, %v14186_v47 }
 0x50c   :  { %7953 = vmatprep.subr.bf16.mxu1 %v14000_v43 }
 0x50f   :  { %7954 = vmatpush1.bf16.msra.mxu1 %v10393_v53  ;;  %v14191_v53 = vcombine.low %v12936_v30, %v14189_v62  ;;  %v8128_v30 = vld [vmem:[%s13874_s7] sm:$0xff] }
 0x510   :  { %7955 = vmatprep.subr.bf16.mxu1 %v14000_v43 }
 0x512   :  { %7614 = vmatmul.mubr.bf16.gmra.mrb[12].mxu1 %v9396_v36  ;;  %v14193_v36 = vld [vmem:[#allocation59_spill] sm:$0xff] }
 0x513   :  { %9420 = vmatprep.mubr.msk.bf16.mxu1 %vm848_vm13, %v14175_v63  ;;  %7956 = vmatpush1.bf16.msra.mxu1 %v10394_v1  ;;  %v14192_v1 = vld [vmem:[#allocation58_spill] sm:$0xff]  ;;  %v14196_v63 = vcombine.high %v12970_v52, %v12974_v29 }
 0x514   :  { %7957 = vmatprep.subr.bf16.mxu1 %v14000_v43  ;;  %v14194_v32 = vcombine.high %v14192_v1, %v14193_v36  ;;  %v14195_v38 = vcombine.low %v14192_v1, %v14193_v36 }
 0x517   :  { %7958 = vmatpush1.bf16.msra.mxu1 %v10395_v11  ;;  %v14197_v11 = vcombine.low %v12970_v52, %v12974_v29  ;;  %v10418_v52 = vmov 0.0|0.0   ;;  %v8129_v29 = vld [vmem:[%s13874_s7 + $0x8] sm:$0xff] }
 0x518   :  { %7959 = vmatprep.subr.bf16.mxu1 %v14000_v43  ;;  %9591 = vmatprep.subr.bf16.mxu0 %v10418_v52  ;;  %v9592_v45 = vpack.c.bf16 %v8129_v29, %v8128_v30 }
 0x51a   :  { %7622 = vmatmul.mubr.bf16.gmra.mrb[16].mxu1 %v14176_v6  ;;  %9593 = vmatpush3.bf16.msra.mxu0 %v9592_v45  ;;  %v9613_v6 = vpack.c.bf16 %v8143_v5, %v8142_v31 }
 0x51b   :  { %9421 = vmatprep.mubr.msk.bf16.mxu1 %vm848_vm13, %v14179_v28  ;;  %7960 = vmatpush1.bf16.msra.mxu1 %v10396_v23  ;;  %v10420_v23 = vmov 0.0  }
 0x51c   :  { %7961 = vmatprep.subr.bf16.mxu1 %v14000_v43  ;;  %v7380_v43 = vrot.slane %v7378_v39, 5  ;;  %9594 = vmatprep.subr.bf16.mxu0 %v10418_v52 }
 0x51d   :  { %9583 = vmatprep.mubr.msk.f32.mxu0 %vm10419_vm1, %v10420_v23 }
 0x51e   :  { %v7381_v37 = vsel %vm10692_vm12, %v7376_v24, %v7380_v43  ;;  %v13682_v24 = vld [vmem:[%s13876_s5] ss:$0 sm:$0xff] }
 0x51f   :  { %7962 = vmatpush1.bf16.msra.mxu1 %v10397_v13  ;;  %v9405_v48 = vcombine.high %v7381_v37, %v7395_v49  ;;  %v9404_v22 = vcombine.low %v7381_v37, %v7395_v49  ;;  %v9495_v49 = vld [vmem:[%s13877_s6] ss:$0 sm:$0xff] }
 0x520   :  { %9586 = vmatprep.subr.mxu1 %v10420_v23 }
 0x522   :  { %7630 = vmatmul.mubr.bf16.gmra.mrb[20].mxu1 %v14180_v2 }
 0x523   :  { %9422 = vmatprep.mubr.msk.bf16.mxu1 %vm848_vm13, %v14183_v61 }
 0x52a   :  { %7638 = vmatmul.mubr.bf16.gmra.mrb[24].mxu1 %v14184_v25 }
 0x52b   :  { %9423 = vmatprep.mubr.msk.bf16.mxu1 %vm848_vm13, %v9405_v48 }
 0x532   :  { %7646 = vmatmul.mubr.bf16.gmra.mrb[28].mxu1 %v9404_v22 }
 0x533   :  { %9486 = vmatprep.mubr.msk.bf16.mxu1 %vm848_vm13, %v14187_v50 }
 0x53a   :  { %7976 = vmatmul.mubr.bf16.vlgmr.msra.gmra.mrb[0].mxu1 %v14188_v41 }
 0x53b   :  { %9487 = vmatprep.mubr.msk.bf16.mxu1 %vm848_vm13, %v14190_v54  ;;  %9587 = vmatpush3.msra.mxu1 %v8227_v15 }
 0x542   :  { %7984 = vmatmul.mubr.bf16.gmra.mrb[4].mxu1 %v14191_v53 }
 0x543   :  { %9488 = vmatprep.mubr.msk.bf16.mxu1 %vm848_vm13, %v14194_v32 }
 0x54a   :  { %7992 = vmatmul.mubr.bf16.gmra.mrb[8].mxu1 %v14195_v38 }
 0x54b   :  { %9489 = vmatprep.mubr.msk.bf16.mxu1 %vm848_vm13, %v14196_v63 }
 0x552   :  { %8000 = vmatmul.mubr.bf16.gmra.mrb[12].mxu1 %v14197_v11 }
 0x553   :  { %9490 = vmatprep.mubr.msk.bf16.mxu1 %vm848_vm13, %v9469_v9  ;;  %v8131_v9 = vld [vmem:[%s13874_s7 + $0x18] sm:$0xff] }
 0x55a   :  { %8008 = vmatmul.mubr.bf16.gmra.mrb[16].mxu1 %v9468_v58  ;;  %v9595_v58 = vpack.c.bf16 %v8131_v9, %v8130_v57 }
 0x55b   :  { %9491 = vmatprep.mubr.msk.bf16.mxu1 %vm848_vm13, %v9471_v51  ;;  %v8134_v51 = vld [vmem:[%s13874_s7 + $0x30] sm:$0xff] }
 0x55c   :  { %9596 = vmatpush3.bf16.msra.mxu0 %v9595_v58  ;;  %v9601_v46 = vpack.c.bf16 %v8135_v4, %v8134_v51 }
 0x55d   :  { %9597 = vmatprep.subr.bf16.mxu0 %v10418_v52 }
 0x562   :  { %8016 = vmatmul.mubr.bf16.gmra.mrb[20].mxu1 %v9470_v0  ;;  %v9598_v0 = vpack.c.bf16 %v8133_v14, %v8132_v42 }
 0x563   :  { %9492 = vmatprep.mubr.msk.bf16.mxu1 %vm848_vm13, %v9473_v44  ;;  %v8136_v44 = vld [vmem:[%s13874_s7 + $0x40] sm:$0xff] }
 0x564   :  { %9599 = vmatpush3.bf16.msra.mxu0 %v9598_v0 }
 0x565   :  { %9600 = vmatprep.subr.bf16.mxu0 %v10418_v52 }
 0x568   :  { %9602 = vmatpush3.bf16.msra.mxu0 %v9601_v46 }
 0x569   :  { %9603 = vmatprep.subr.bf16.mxu0 %v10418_v52 }
 0x56a   :  { %8024 = vmatmul.mubr.bf16.gmra.mrb[24].mxu1 %v9472_v40  ;;  %v8137_v40 = vld [vmem:[%s13874_s7 + $0x48] sm:$0xff] }
 0x56b   :  { %9493 = vmatprep.mubr.msk.bf16.mxu1 %vm848_vm13, %v9475_v20  ;;  %v9604_v60 = vpack.c.bf16 %v8137_v40, %v8136_v44  ;;  %v8139_v20 = vld [vmem:[%s13874_s7 + $0x58] sm:$0xff] }
 0x56d   :  { %9605 = vmatpush3.bf16.msra.mxu0 %v9604_v60 }
 0x56e   :  { %9606 = vmatprep.subr.bf16.mxu0 %v10418_v52 }
 0x572   :  { %8032 = vmatmul.mubr.bf16.gmra.mrb[28].mxu1 %v9474_v12  ;;  %v9607_v12 = vpack.c.bf16 %v8139_v20, %v8138_v55 }
 0x573   :  { %9588 = vmatprep.mubr.msk.f32.mxu1 %vm10419_vm1, %v10420_v23 }
 0x574   :  { %9608 = vmatpush3.bf16.msra.mxu0 %v9607_v12 }
 0x575   :  { %9609 = vmatprep.subr.bf16.mxu0 %v10418_v52 }
 0x578   :  { %9611 = vmatpush3.bf16.msra.mxu0 %v9610_v19 }
 0x579   :  { %9612 = vmatprep.subr.bf16.mxu0 %v10418_v52 }
 0x57c   :  { %9614 = vmatpush3.bf16.msra.mxu0 %v9613_v6 }
 0x60d   :  { %v7977_v18 = vpop.f32.mrb[0].mxu1 }
 0x60e   :  { %v7979_v35 = vpop.f32.mrb[1].mxu1  ;;  %v8063_v61 = vmul.f32 %v13682_v24, %v7977_v18 }
 0x60f   :  { %v7980_v34 = vpop.f32.mrb[2].mxu1 }
 0x610   :  { %v7982_v26 = vpop.f32.mrb[3].mxu1  ;;  %v8064_v27 = vmul.f32 %v13682_v24, %v7980_v34  ;;  %v13692_v25 = vadd.f32 %v9495_v49, %v8063_v61 }
 0x612   :  { %v13690_v48 = vadd.f32 %v9495_v49, %v8064_v27 }
 0x614   :  { %v8102_v50 = vadd.f32 %v13690_v48, %v13692_v25 }
 0x615   :  { %v7985_v33 = vpop.f32.mrb[4].mxu1 }
 0x616   :  { %v7987_v28 = vpop.f32.mrb[5].mxu1  ;;  %v8065_v43 = vmul.f32 %v13682_v24, %v7985_v33 }
 0x617   :  { %v7988_v13 = vpop.f32.mrb[6].mxu1 }
 0x618   :  { %v7990_v56 = vpop.f32.mrb[7].mxu1  ;;  %v13694_v22 = vadd.f32 %v9495_v49, %v8065_v43  ;;  %v8066_v17 = vmul.f32 %v13682_v24, %v7988_v13 }
 0x61a   :  { %v8103_v53 = vadd.f32 %v8102_v50, %v13694_v22  ;;  %v13701_v1 = vadd.f32 %v9495_v49, %v8066_v17 }
 0x61c   :  { %v8104_v63 = vadd.f32 %v8103_v53, %v13701_v1 }
 0x61d   :  { %v7993_v59 = vpop.f32.mrb[8].mxu1 }
 0x61e   :  { %v7995_v10 = vpop.f32.mrb[9].mxu1  ;;  %v8067_v41 = vmul.f32 %v13682_v24, %v7993_v59 }
 0x61f   :  { %v7996_v39 = vpop.f32.mrb[10].mxu1 }
 0x620   :  { %v7998_v2 = vpop.f32.mrb[11].mxu1  ;;  %v13703_v32 = vadd.f32 %v9495_v49, %v8067_v41  ;;  %v8068_v38 = vmul.f32 %v13682_v24, %v7996_v39 }
 0x622   :  { %v8105_v29 = vadd.f32 %v8104_v63, %v13703_v32  ;;  %v13710_v45 = vadd.f32 %v9495_v49, %v8068_v38 }
 0x624   :  { %v8106_v46 = vadd.f32 %v8105_v29, %v13710_v45  ;;  %v9497_v29 = vld [vmem:[%s13879_s10] ss:$0 sm:$0xff] }
 0x625   :  { %v8001_v16 = vpop.f32.mrb[12].mxu1 }
 0x626   :  { %v8003_v7 = vpop.f32.mrb[13].mxu1  ;;  %v8069_v11 = vmul.f32 %v13682_v24, %v8001_v16 }
 0x627   :  { %v8004_v8 = vpop.f32.mrb[14].mxu1 }
 0x628   :  { %v8006_v37 = vpop.f32.mrb[15].mxu1  ;;  %v13714_v14 = vadd.f32 %v9495_v49, %v8069_v11  ;;  %v8070_v51 = vmul.f32 %v13682_v24, %v8004_v8 }
 0x62a   :  { %v8107_v55 = vadd.f32 %v8106_v46, %v13714_v14  ;;  %v13726_v20 = vadd.f32 %v9495_v49, %v8070_v51  ;;  %v10421_v46 = vmov 1966171168  }
 0x62c   :  { %v8108_v6 = vadd.f32 %v8107_v55, %v13726_v20  ;;  %v8335_v55 = vlaneseq }
 0x62d   :  { %v8009_v47 = vpop.f32.mrb[16].mxu1 }
 0x62e   :  { %v8011_v62 = vpop.f32.mrb[17].mxu1  ;;  %v8071_v57 = vmul.f32 %v13682_v24, %v8009_v47  ;;  %v8109_v26 = vrot.slane %v8108_v6, 4 }
 0x62f   :  { %v8012_v54 = vpop.f32.mrb[18].mxu1 }
 0x630   :  { %v8014_v36 = vpop.f32.mrb[19].mxu1  ;;  %v8072_v52 = vmul.f32 %v13682_v24, %v8012_v54  ;;  %v13720_v44 = vadd.f32 %v9495_v49, %v8071_v57  ;;  %v8110_v39 = vadd.f32 %v8109_v26, %v8108_v6  ;;  %v8315_v26 = vld [vmem:[%s13870_s0] sm:$0xff] }
 0x632   :  { %v13717_v0 = vadd.f32 %v9495_v49, %v8072_v52  ;;  %v8111_v43 = vrot.slane %v8110_v39, 2 }
 0x634   :  { %v8115_v12 = vadd.f32 %v13717_v0, %v13720_v44  ;;  %v8112_v47 = vadd.f32 %v8111_v43, %v8110_v39  ;;  %v8321_v43 = vld [vmem:[%s13870_s0 + $0x30] sm:$0xff] }
 0x635   :  { %v8017_v30 = vpop.f32.mrb[20].mxu1 }
 0x636   :  { %v8073_v9 = vmul.f32 %v13682_v24, %v8017_v30  ;;  %v8019_v58 = vpop.f32.mrb[21].mxu1  ;;  %v8113_v62 = vrot.slane %v8112_v47, 1 }
 0x637   :  { %v8020_v42 = vpop.f32.mrb[22].mxu1 }
 0x638   :  { %v8022_v4 = vpop.f32.mrb[23].mxu1  ;;  %v13722_v40 = vadd.f32 %v9495_v49, %v8073_v9  ;;  %v8074_v60 = vmul.f32 %v13682_v24, %v8020_v42  ;;  %v8114_v36 = vadd.f32 %v8113_v62, %v8112_v47  ;;  %v8324_v47 = vld [vmem:[%s13870_s0 + $0x48] sm:$0xff]  ;;  %v8327_v62 = vld [vmem:[%s13870_s0 + $0x60] sm:$0xff] }
 0x63a   :  { %v8116_v3 = vadd.f32 %v8115_v12, %v13722_v40  ;;  %v13731_v31 = vadd.f32 %v9495_v49, %v8074_v60  ;;  %v8333_v60 = vunpack.c.l.s4 %v10421_v46 }
 0x63c   :  { %v8117_v34 = vadd.f32 %v8116_v3, %v13731_v31  ;;  %v8334_v12 = vunpack.c.0.s8 %v8333_v60 }
 0x63d   :  { %v8025_v21 = vpop.f32.mrb[24].mxu1 }
 0x63e   :  { %v8075_v19 = vmul.f32 %v13682_v24, %v8025_v21  ;;  %v8027_v5 = vpop.f32.mrb[25].mxu1  ;;  %v8336_v21 = vshrl.u32 %v8335_v55, 7 }
 0x63f   :  { %v8028_v23 = vpop.f32.mrb[26].mxu1 }
 0x640   :  { %v13735_v15 = vadd.f32 %v9495_v49, %v8075_v19  ;;  %v8076_v18 = vmul.f32 %v13682_v24, %v8028_v23  ;;  %v8030_v35 = vpop.f32.mrb[27].mxu1  ;;  %v8337_v3 = vsub.s32 %v8334_v12, %v8336_v21  ;;  %v8356_v23 = vsub.s32 0, %v8336_v21 }
 0x642   :  { %v8118_v33 = vadd.f32 %v8117_v34, %v13735_v15  ;;  %v13740_v28 = vadd.f32 %v9495_v49, %v8076_v18 }
 0x644   :  { %v8119_v2 = vadd.f32 %v8118_v33, %v13740_v28  ;;  %v8316_v33 = vld [vmem:[%s13870_s0 + $0x8] sm:$0xff] }
 0x645   :  { %v8033_v13 = vpop.f32.mrb[28].mxu1 }
 0x646   :  { %v8077_v56 = vmul.f32 %v13682_v24, %v8033_v13  ;;  %v8035_v59 = vpop.f32.mrb[29].mxu1  ;;  %v8317_v13 = vld [vmem:[%s13870_s0 + $0x10] sm:$0xff] }
 0x647   :  { %v8036_v10 = vpop.f32.mrb[30].mxu1 }
 0x648   :  { %v13744_v16 = vadd.f32 %v9495_v49, %v8077_v56  ;;  %v8078_v27 = vmul.f32 %v13682_v24, %v8036_v10  ;;  %v8038_v7 = vpop.f32.mrb[31].mxu1  ;;  %v9496_v24 = vld [vmem:[%s13878_s8] ss:$0 sm:$0xff] }
 0x649   :  { %v8320_v7 = vld [vmem:[%s13870_s0 + $0x28] sm:$0xff] }
 0x64a   :  { %v8120_v8 = vadd.f32 %v8119_v2, %v13744_v16  ;;  %v13748_v61 = vadd.f32 %v9495_v49, %v8078_v27  ;;  %v8318_v2 = vld [vmem:[%s13870_s0 + $0x18] sm:$0xff]  ;;  %v8319_v27 = vld [vmem:[%s13870_s0 + $0x20] sm:$0xff] }
 0x64c   :  { %v8121_v37 = vadd.f32 %v8120_v8, %v13748_v61 }
 0x64e   :  { %v8122_v17 = vrot.slane %v8121_v37, 4 }
 0x650   :  { %v8123_v50 = vadd.f32 %v8122_v17, %v8121_v37  ;;  %v8322_v37 = vld [vmem:[%s13870_s0 + $0x38] sm:$0xff]  ;;  %v8323_v17 = vld [vmem:[%s13870_s0 + $0x40] sm:$0xff] }
 0x652   :  { %v8124_v41 = vrot.slane %v8123_v50, 2 }
 0x654   :  { %v8125_v54 = vadd.f32 %v8124_v41, %v8123_v50  ;;  %v8325_v50 = vld [vmem:[%s13870_s0 + $0x50] sm:$0xff]  ;;  %v8326_v41 = vld [vmem:[%s13870_s0 + $0x58] sm:$0xff] }
 0x656   :  { %v8126_v53 = vrot.slane %v8125_v54, 1 }
 0x658   :  { %v8127_v38 = vadd.f32 %v8126_v53, %v8125_v54  ;;  %v8328_v54 = vld [vmem:[%s13870_s0 + $0x68] sm:$0xff]  ;;  %v8329_v53 = vld [vmem:[%s13870_s0 + $0x70] sm:$0xff] }
 0x65a   :  { %v8154_v63 = vsel %vm8153_vm2, %v8127_v38, %v8114_v36 }
 0x65b   :  { %9584 = vmatmul.mubr.f32.vlgmr.msra.gmra.mrb[32].mxu0 %v8154_v63 }
 0x72e   :  { %v8222_v49 = vpop.f32.mrb[32].mxu0 }
 0x72f   :  { %v8223_v11 = vadd.f32 %v9496_v24, %v8222_v49  ;;  %v9585_v52 = vpop.f32.mrb[33].mxu0 }
 0x731   :  { %v8226_v30 = vmax.f32 %v8223_v11, 0.0 }
 0x733   :  { %9589 = vmatmul.mubr.msk.f32.vlgmr.msra.gmra.mrb[32].mxu1 %vm8235_vm3, %v8226_v30 }
 0x806   :  { %v8305_v57 = vpop.f32.mrb[32].mxu1 }
 0x807   :  { %v8306_v9 = vadd.f32 %v9497_v29, %v8305_v57  ;;  %v9590_v58 = vpop.f32.mrb[33].mxu1 }
 0x809   :  { %v9499_v42 = vmul.f32 -1.442695, %v8306_v9 }
 0x80b   :  { %10398 = vpow2.f32 %v9499_v42 }
 0x815   :  { %v10399_v51 = vpop.eup %10398 }
 0x816   :  { %v8312_v4 = vadd.f32 1.0, %v10399_v51 }
 0x818   :  { %10400 = vrcp.f32 %v8312_v4 }
 0x822   :  { %v10401_v19 = vpop.eup %10400 }
 0x823   :  { %v8338_v5 = vrot.slane %v10401_v19, %v8337_v3 }
 0x825   :  { %v8339_v6 = vcombine.high %v8338_v5, %v8338_v5  ;;  %v8346_v18 = vrot.slane %v8338_v5, %v8337_v3 }
 0x827   :  { %v8353_v35 = vrot.slane %v8339_v6, %v8337_v3  ;;  %v8357_v34 = vrot.slane %v8346_v18, %v8356_v23 }
 0x829   :  { %v8361_v56 = vrot.slane %v8353_v35, %v8356_v23  ;;  %v8364_v59 = vmul.f32 %v8357_v34, %v13692_v25  ;;  %v8365_v10 = vmul.f32 %v8357_v34, %v13690_v48  ;;  %v8366_v39 = vmul.f32 %v8357_v34, %v13694_v22 }
 0x82a   :  { %v8367_v8 = vmul.f32 %v8357_v34, %v13701_v1  ;;  %v8368_v25 = vmul.f32 %v8357_v34, %v13703_v32  ;;  %v8369_v48 = vmul.f32 %v8357_v34, %v13710_v45  ;;  %v8370_v22 = vmul.f32 %v8357_v34, %v13714_v14 }
 0x82b   :  { %v8371_v1 = vmul.f32 %v8357_v34, %v13726_v20  ;;  %v8372_v32 = vmul.f32 %v8361_v56, %v13720_v44  ;;  %v8373_v45 = vmul.f32 %v8361_v56, %v13717_v0  ;;  %v8374_v14 = vmul.f32 %v8361_v56, %v13722_v40 }
 0x82c   :  { %v8375_v20 = vmul.f32 %v8361_v56, %v13731_v31  ;;  %v8376_v44 = vmul.f32 %v8361_v56, %v13735_v15  ;;  %v8377_v0 = vmul.f32 %v8361_v56, %v13740_v28  ;;  %v8378_v40 = vmul.f32 %v8361_v56, %v13744_v16  ;;  %v8330_v28 = vld [vmem:[%s13870_s0 + $0x78] sm:$0xff] }
 0x82d   :  { %v8379_v31 = vmul.f32 %v8361_v56, %v13748_v61  ;;  %v8380_v36 = vadd.f32 %v8364_v59, %v8315_v26  ;;  %v8381_v15 = vadd.f32 %v8365_v10, %v8316_v33  ;;  %v8382_v38 = vadd.f32 %v8366_v39, %v8317_v13 }
 0x82e   :  { %v8383_v16 = vadd.f32 %v8367_v8, %v8318_v2  ;;  %v8384_v63 = vadd.f32 %v8368_v25, %v8319_v27  ;;  %v8385_v24 = vadd.f32 %v8369_v48, %v8320_v7  ;;  %v8386_v49 = vadd.f32 %v8370_v22, %v8321_v43 }
 0x82f   :  { %v8387_v11 = vadd.f32 %v8371_v1, %v8322_v37  ;;  %v8388_v52 = vadd.f32 %v8372_v32, %v8323_v17  ;;  %v8389_v30 = vadd.f32 %v8373_v45, %v8324_v47  ;;  %v8390_v29 = vadd.f32 %v8374_v14, %v8325_v50 }
 0x830   :  { %v8391_v57 = vadd.f32 %v8375_v20, %v8326_v41  ;;  %v8392_v9 = vadd.f32 %v8376_v44, %v8327_v62  ;;  %v8393_v58 = vadd.f32 %v8377_v0, %v8328_v54  ;;  %v8394_v42 = vadd.f32 %v8378_v40, %v8329_v53 }
 0x831   :  { %v8395_v61 = vadd.f32 %v8379_v31, %v8330_v28  ;;  %v8396_v51 = vmax.f32 %v8380_v36, 0.0  ;;  %v8397_v4 = vmax.f32 %v8381_v15, 0.0  ;;  %v8398_v46 = vmax.f32 %v8382_v38, 0.0 }
 0x832   :  { %v8399_v60 = vmax.f32 %v8383_v16, 0.0  ;;  %v8400_v55 = vmax.f32 %v8384_v63, 0.0  ;;  %v8401_v12 = vmax.f32 %v8385_v24, 0.0  ;;  %v8402_v21 = vmax.f32 %v8386_v49, 0.0 }
 0x833   :  { %v8403_v3 = vmax.f32 %v8387_v11, 0.0  ;;  %v8404_v19 = vmax.f32 %v8388_v52, 0.0  ;;  %v8405_v5 = vmax.f32 %v8389_v30, 0.0  ;;  %v8406_v23 = vmax.f32 %v8390_v29, 0.0  ;;  %8412 = vst [vmem:[%s13880_s11] sm:$0xff] %v8396_v51  ;;  %8413 = vst [vmem:[%s13880_s11 + $0x8] sm:$0xff] %v8397_v4 }
 0x834   :  { %8414 = vst [vmem:[%s13880_s11 + $0x10] sm:$0xff] %v8398_v46  ;;  %v8407_v6 = vmax.f32 %v8391_v57, 0.0  ;;  %v8408_v18 = vmax.f32 %v8392_v9, 0.0  ;;  %v8409_v35 = vmax.f32 %v8393_v58, 0.0  ;;  %v8410_v34 = vmax.f32 %v8394_v42, 0.0  ;;  %8415 = vst [vmem:[%s13880_s11 + $0x18] sm:$0xff] %v8399_v60 }
 0x835   :  { %8416 = vst [vmem:[%s13880_s11 + $0x20] sm:$0xff] %v8400_v55  ;;  %8417 = vst [vmem:[%s13880_s11 + $0x28] sm:$0xff] %v8401_v12  ;;  %v8411_v26 = vmax.f32 %v8395_v61, 0.0 }
 0x836   :  { %8418 = vst [vmem:[%s13880_s11 + $0x30] sm:$0xff] %v8402_v21  ;;  %8419 = vst [vmem:[%s13880_s11 + $0x38] sm:$0xff] %v8403_v3 }
 0x837   :  { %8420 = vst [vmem:[%s13880_s11 + $0x40] sm:$0xff] %v8404_v19  ;;  %8421 = vst [vmem:[%s13880_s11 + $0x48] sm:$0xff] %v8405_v5 }
 0x838   :  { %8422 = vst [vmem:[%s13880_s11 + $0x50] sm:$0xff] %v8406_v23  ;;  %8423 = vst [vmem:[%s13880_s11 + $0x58] sm:$0xff] %v8407_v6 }
 0x839   :  { %8424 = vst [vmem:[%s13880_s11 + $0x60] sm:$0xff] %v8408_v18  ;;  %8425 = vst [vmem:[%s13880_s11 + $0x68] sm:$0xff] %v8409_v35 }
 0x83a   :  { %8426 = vst [vmem:[%s13880_s11 + $0x70] sm:$0xff] %v8410_v34  ;;  %8427 = vst [vmem:[%s13880_s11 + $0x78] sm:$0xff] %v8411_v26 }

</bundles_post_ra>
